<compile_context>
chip_gen: v7x
topology: tpu7x:2x2x1
jax: 0.10.0
libtpu: 0.0.40
codegen_flags: <defaults>
</compile_context>

<pallas_src>
import numpy as np
import jax
import jax.numpy as jnp
from jax.experimental import pallas as pl
from jax.experimental.pallas import tpu as pltpu


def _hardswish(x):
    # PyTorch nn.Hardswish: x * relu6(x + 3) / 6
    return x * jnp.clip(x + 3.0, 0.0, 6.0) * (1.0 / 6.0)


def _round_up(n, m):
    return ((n + m - 1) // m) * m


# ---------------------------------------------------------------------------
# Bilinear (align_corners=True) interpolation matrix, matching PyTorch
# nn.Upsample(mode='bilinear', align_corners=True).
# ---------------------------------------------------------------------------
def _bilinear_matrix(out_size, in_size):
    A = np.zeros((out_size, in_size), dtype=np.float32)
    if in_size == 1:
        A[:, 0] = 1.0
        return A
    scale = (in_size - 1) / (out_size - 1)
    for o in range(out_size):
        src = o * scale
        i0 = min(int(np.floor(src)), in_size - 1)
        i1 = min(i0 + 1, in_size - 1)
        f = src - i0
        A[o, i0] += 1.0 - f
        A[o, i1] += f
    return A


def _tap_masks(H, W):
    """(9, 1, H*W) f32 validity masks for the 3x3 conv taps (zero padding)."""
    HW = H * W
    p = np.arange(HW)
    row, col = p // W, p % W
    masks = np.zeros((9, 1, HW), dtype=np.float32)
    k = 0
    for dh in (-1, 0, 1):
        for dw in (-1, 0, 1):
            valid = ((row + dh >= 0) & (row + dh < H) &
                     (col + dw >= 0) & (col + dw < W))
            masks[k, 0] = valid.astype(np.float32)
            k += 1
    return masks


# ---------------------------------------------------------------------------
# The single fused kernel (one grid step = one batch element).
# ---------------------------------------------------------------------------
def _make_fused_kernel(C0, C, CP, ch_out, H, W):
    HW = H * W
    taps = [(dh, dw) for dh in (-1, 0, 1) for dw in (-1, 0, 1)]

    def kernel(x0_ref, xsblk_ref, kron_ref, mask_ref,
               wbig_ref, b3p_ref, b1p_ref, wfy_ref, bf_ref,
               o_ref, x_ref, taps_ref, pre_ref, y_ref):
        # ---- Stage 1: all bilinear upsamples as ONE block-diagonal matmul,
        # concat with the full-resolution level into the CP-padded x scratch.
        up = jnp.dot(xsblk_ref[0], kron_ref[...],
                     preferred_element_type=jnp.float32)          # (C-C0, HW)
        x_ref[0:C0, :] = x0_ref[0]
        x_ref[C0:C, :] = up
        if CP > C:
            x_ref[C:CP, :] = jnp.zeros((CP - C, HW), jnp.float32)
        xp = x_ref[...]                                            # (CP, HW) f32

        # ---- Stage 2: stage the 9 shifted/masked tap copies (bf16) ----------
        # Shifts are lane rolls (XLU); borders zeroed via precomputed masks
        # (VPU, f32).  Pad rows of xp are zero, so every CP-row block store is
        # aligned and fully initialized.
        for k, (dh, dw) in enumerate(taps):
            s = dh * W + dw
            if s == 0:
                xs = xp
            else:
                xs = pltpu.roll(xp, shift=(-s) % HW, axis=1) * mask_ref[k]
            taps_ref[k * CP:(k + 1) * CP, :] = xs.astype(taps_ref.dtype)

        # ---- Stage 3: one stacked matmul ------------------------------------
        #   rows [0:CP)        -> 3x3 conv + folded-BN pre-activation (y2)
        #   rows [CP:2CP)      -> 1x1 conv + folded-BN pre-activation (y1)
        #   rows [2CP:2CP+co)  -> wf_x @ x  (x-slice of the final 1x1 conv)
        pre_ref[...] = jnp.dot(wbig_ref[...], taps_ref[...],
                               preferred_element_type=jnp.float32)

        # ---- Stage 4: bias + Hardswish (f32 VPU), stage y1/y2 as bf16 --------
        y2p = _hardswish(pre_ref[0:CP, :] + b3p_ref[...])
        y1p = _hardswish(pre_ref[CP:2 * CP, :] + b1p_ref[...])
        y_ref[0:CP, :] = y1p.astype(y_ref.dtype)
        y_ref[CP:2 * CP, :] = y2p.astype(y_ref.dtype)

        # ---- Stage 5: final 1x1 conv: wf_y @ [y1|y2] + (wf_x @ x) + bias -----
        out = (jnp.dot(wfy_ref[...], y_ref[...],
                       preferred_element_type=jnp.float32)
               + pre_ref[2 * CP:2 * CP + ch_out, :] + bf_ref[...])
        o_ref[0] = out.astype(o_ref.dtype)

    return kernel


def multi_scale_aggregation_forward(x_list, params, H, W):
    wbig, b3p, b1p, wfy, bf = params
    B = int(x_list[0].shape[0])
    ch_list = [int(x.shape[1]) for x in x_list]
    C0 = ch_list[0]
    C = sum(ch_list)
    HW = H * W
    CP = int(wbig.shape[1]) // 9
    ch_out = int(wbig.shape[0]) - 2 * CP

    # Level 0 is already full resolution; flatten spatial (lane axis).
    x0 = x_list[0].reshape(B, C0, HW).astype(jnp.float32)

    # Levels 1..n: block-diagonal staging tensor (B, C-C0, K_up) + row-stacked
    # kron(A_h, A_w)^T matrix (K_up, HW) so all upsamples are ONE matmul.
    hw_list = [int(x.shape[2]) * int(x.shape[3]) for x in x_list[1:]]
    K_up = _round_up(max(sum(hw_list), 1), 128)
    xs_blk = jnp.zeros((B, C - C0, K_up), jnp.float32)
    kron_np = np.zeros((K_up, HW), np.float32)
    roff, coff = 0, 0
    for x in x_list[1:]:
        c_i, h_i, w_i = int(x.shape[1]), int(x.shape[2]), int(x.shape[3])
        hw_i = h_i * w_i
        xs_blk = xs_blk.at[:, roff:roff + c_i, coff:coff + hw_i].set(
            x.reshape(B, c_i, hw_i).astype(jnp.float32))
        kron_np[coff:coff + hw_i, :] = np.kron(_bilinear_matrix(H, h_i),
                                               _bilinear_matrix(W, w_i)).T
        roff += c_i
        coff += hw_i
    xs_blk = xs_blk.astype(jnp.bfloat16)                 # MXU operand -> bf16
    kron_stack = jnp.asarray(kron_np).astype(jnp.bfloat16)
    masks = jnp.asarray(_tap_masks(H, W))                # stays f32 (VPU path)

    kernel = _make_fused_kernel(C0, C, CP, ch_out, H, W)

    in_specs = [
        pl.BlockSpec((1, C0, HW), lambda b: (b, 0, 0)),
        pl.BlockSpec((1, C - C0, K_up), lambda b: (b, 0, 0)),
        pl.BlockSpec(kron_stack.shape, lambda b: (0, 0)),
        pl.BlockSpec(masks.shape, lambda b: (0, 0, 0)),
        pl.BlockSpec(wbig.shape, lambda b: (0, 0)),
        pl.BlockSpec(b3p.shape, lambda b: (0, 0)),
        pl.BlockSpec(b1p.shape, lambda b: (0, 0)),
        pl.BlockSpec(wfy.shape, lambda b: (0, 0)),
        pl.BlockSpec(bf.shape, lambda b: (0, 0)),
    ]

    out = pl.pallas_call(
        kernel,
        out_shape=jax.ShapeDtypeStruct((B, ch_out, HW), jnp.float32),
        grid=(B,),
        in_specs=in_specs,
        out_specs=pl.BlockSpec((1, ch_out, HW), lambda b: (b, 0, 0)),
        scratch_shapes=[
            pltpu.VMEM((CP, HW), jnp.float32),               # padded x_cat
            pltpu.VMEM((9 * CP, HW), jnp.bfloat16),          # shifted taps
            pltpu.VMEM((2 * CP + ch_out, HW), jnp.float32),  # stacked dot result
            pltpu.VMEM((2 * CP, HW), jnp.bfloat16),          # [y1 | y2]
        ],
        compiler_params=pltpu.CompilerParams(
            dimension_semantics=("parallel",)),
    )(x0, xs_blk, kron_stack, masks, wbig, b3p, b1p, wfy, bf)
    return out.reshape(B, ch_out, H, W)


# ---------------------------------------------------------------------------
# Parameter construction / folding (plain JAX glue).
# ---------------------------------------------------------------------------
def init_params(key, ch_in, ch_out):
    ks = jax.random.split(key, 14)

    def rnd(k, shape, s=0.1):
        return (s * jax.random.normal(k, shape)).astype(jnp.float32)

    return dict(
        w1=rnd(ks[0], (ch_in, ch_in, 1, 1)), b1=rnd(ks[1], (ch_in,)),
        g1=1.0 + rnd(ks[2], (ch_in,)), beta1=rnd(ks[3], (ch_in,)),
        m1=rnd(ks[4], (ch_in,)), v1=1.0 + jnp.abs(rnd(ks[5], (ch_in,))),
        w3=rnd(ks[6], (ch_in, ch_in, 3, 3), 0.05), b3=rnd(ks[7], (ch_in,)),
        g3=1.0 + rnd(ks[8], (ch_in,)), beta3=rnd(ks[9], (ch_in,)),
        m3=rnd(ks[10], (ch_in,)), v3=1.0 + jnp.abs(rnd(ks[11], (ch_in,))),
        wf=rnd(ks[12], (ch_out, 3 * ch_in, 1, 1)), bf=rnd(ks[13], (ch_out,)),
    )


def fold_params(raw, eps=1e-5):
    """Fold inference-mode BN into conv weights and build the stacked weights."""
    C = int(raw['w1'].shape[0])
    ch_out = int(raw['wf'].shape[0])
    CP = _round_up(C, 8)

    s1 = raw['g1'] / jnp.sqrt(raw['v1'] + eps)
    w1f = raw['w1'][:, :, 0, 0] * s1[:, None]                       # (C, C)
    b1f = s1 * (raw['b1'] - raw['m1']) + raw['beta1']               # (C,)

    s3 = raw['g3'] / jnp.sqrt(raw['v3'] + eps)
    # (co, ci, kh, kw) -> per-tap (9, co, ci), tap order k = kh*3 + kw.
    w3f = (jnp.transpose(raw['w3'], (2, 3, 0, 1)).reshape(9, C, C)
           * s3[None, :, None])
    b3f = s3 * (raw['b3'] - raw['m3']) + raw['beta3']               # (C,)

    wf = raw['wf'][:, :, 0, 0]                                      # (co, 3C)
    wf_x, wf_y1, wf_y2 = wf[:, 0:C], wf[:, C:2 * C], wf[:, 2 * C:3 * C]

    # Big stacked weight (2*CP + ch_out, 9*CP):
    #   rows [0:C)            : 3x3+BN folded weights, one CP column block per tap
    #   rows [CP:CP+C)        : 1x1+BN folded weights in the center-tap block
    #   rows [2CP:2CP+ch_out) : wf_x (x-slice of the final 1x1 conv), center tap
    Kb = 9 * CP
    wbig = jnp.zeros((2 * CP + ch_out, Kb), jnp.float32)
    for k in range(9):
        wbig = wbig.at[0:C, k * CP:k * CP + C].set(w3f[k])
    ctr = 4 * CP
    wbig = wbig.at[CP:CP + C, ctr:ctr + C].set(w1f)
    wbig = wbig.at[2 * CP:2 * CP + ch_out, ctr:ctr + C].set(wf_x)

    b3p = jnp.zeros((CP, 1), jnp.float32).at[0:C, 0].set(b3f)
    b1p = jnp.zeros((CP, 1), jnp.float32).at[0:C, 0].set(b1f)

    # Final-conv weight over [y1 | y2] (each segment CP-padded with zeros).
    wfy = jnp.zeros((ch_out, 2 * CP), jnp.float32)
    wfy = wfy.at[:, 0:C].set(wf_y1).at[:, CP:CP + C].set(wf_y2)
    bf = raw['bf'][:, None].astype(jnp.float32)                     # (co, 1)

    return (wbig.astype(jnp.bfloat16), b3p, b1p,
            wfy.astype(jnp.bfloat16), bf)


# ---------------------------------------------------------------------------
# Pure-JAX reference (XLA convs, HIGHEST precision) for validation.
# ---------------------------------------------------------------------------
def reference_forward(x_list, raw, H, W, eps=1e-5):
    hp = jax.lax.Precision.HIGHEST
    ups = [x_list[0]]
    for x in x_list[1:]:
        Ah = jnp.asarray(_bilinear_matrix(H, int(x.shape[2])))
        Aw = jnp.asarray(_bilinear_matrix(W, int(x.shape[3])))
        ups.append(jnp.einsum('Oh,bchw,Pw->bcOP', Ah, x, Aw, precision=hp))
    xc = jnp.concatenate(ups, axis=1)

    def conv(x, w, b, pad):
        y = jax.lax.conv_general_dilated(
            x, w, (1, 1), [(pad, pad), (pad, pad)],
            dimension_numbers=('NCHW', 'OIHW', 'NCHW'), precision=hp)
        return y + b[None, :, None, None]

    def bn(x, g, be, m, v):
        return ((x - m[None, :, None, None]) /
                jnp.sqrt(v[None, :, None, None] + eps) * g[None, :, None, None]
                + be[None, :, None, None])

    y1 = _hardswish(bn(conv(xc, raw['w1'], raw['b1'], 0),
                       raw['g1'], raw['beta1'], raw['m1'], raw['v1']))
    y2 = _hardswish(bn(conv(xc, raw['w3'], raw['b3'], 1),
                       raw['g3'], raw['beta3'], raw['m3'], raw['v3']))
    return conv(jnp.concatenate([xc, y1, y2], axis=1), raw['wf'], raw['bf'], 0)


if __name__ == "__main__":
    B = 2
    H = W = 32
    per_scale_ch = 4
    scales = [1, 2, 4, 8, 16]            # 5 pyramid levels (4 upsamplers used)
    ch_in = per_scale_ch * len(scales)   # 20 channels after concat
    ch_out = 2

    key = jax.random.PRNGKey(0)
    keys = jax.random.split(key, len(scales) + 1)

    def q(x):
        # Quantize test data to bf16-representable f32 values so the check is
        # insensitive to MXU-operand bf16 rounding.
        return x.astype(jnp.bfloat16).astype(jnp.float32)

    x_list = [q(jax.random.normal(keys[i], (B, per_scale_ch, H // s, W // s),
                                  dtype=jnp.float32))
              for i, s in enumerate(scales)]

    raw = init_params(keys[-1], ch_in, ch_out)
    raw = {k: q(v) for k, v in raw.items()}
    params = fold_params(raw)

    out = multi_scale_aggregation_forward(x_list, params, H, W)
    out = jax.block_until_ready(out)
    assert out.shape == (B, ch_out, H, W)

    ref = jax.block_until_ready(reference_forward(x_list, raw, H, W))
    # Tolerance sized for bf16 MXU operands with f32 accumulation (observed
    # error is a few 1e-3; full-f32 path was ~1e-5).
    np.testing.assert_allclose(np.asarray(out), np.asarray(ref),
                               rtol=2e-2, atol=2e-2)
    print("KERNEL_OK")
</pallas_src>

<mosaic_0001>
module attributes {stable_mosaic.version = 11 : i64} {
  func.func @kernel(%arg0: i32, %arg1: memref<1x4x1024xf32, #tpu.memory_space<vmem>>, %arg2: memref<1x16x384xbf16, #tpu.memory_space<vmem>>, %arg3: memref<384x1024xbf16, #tpu.memory_space<vmem>>, %arg4: memref<9x1x1024xf32, #tpu.memory_space<vmem>>, %arg5: memref<50x216xbf16, #tpu.memory_space<vmem>>, %arg6: memref<24x1xf32, #tpu.memory_space<vmem>>, %arg7: memref<24x1xf32, #tpu.memory_space<vmem>>, %arg8: memref<2x48xbf16, #tpu.memory_space<vmem>>, %arg9: memref<2x1xf32, #tpu.memory_space<vmem>>, %arg10: memref<1x2x1024xf32, #tpu.memory_space<vmem>>, %arg11: memref<24x1024xf32, #tpu.memory_space<vmem>>, %arg12: memref<216x1024xbf16, #tpu.memory_space<vmem>>, %arg13: memref<50x1024xf32, #tpu.memory_space<vmem>>, %arg14: memref<48x1024xbf16, #tpu.memory_space<vmem>>) attributes {dimension_semantics = [#tpu.dimension_semantics<parallel>], iteration_bounds = array<i64: 2>, scalar_prefetch = 0 : i64, scratch_operands = 4 : i64, tpu.core_type = #tpu.core_type<tc>, window_params = [{transform_indices = @transform_0, window_bounds = array<i64: 1, 4, 1024>}, {transform_indices = @transform_1, window_bounds = array<i64: 1, 16, 384>}, {pipeline_mode = #tpu.pipeline_mode<synchronous>, transform_indices = @transform_2, window_bounds = array<i64: 384, 1024>}, {pipeline_mode = #tpu.pipeline_mode<synchronous>, transform_indices = @transform_3, window_bounds = array<i64: 9, 1, 1024>}, {pipeline_mode = #tpu.pipeline_mode<synchronous>, transform_indices = @transform_4, window_bounds = array<i64: 50, 216>}, {pipeline_mode = #tpu.pipeline_mode<synchronous>, transform_indices = @transform_5, window_bounds = array<i64: 24, 1>}, {pipeline_mode = #tpu.pipeline_mode<synchronous>, transform_indices = @transform_6, window_bounds = array<i64: 24, 1>}, {pipeline_mode = #tpu.pipeline_mode<synchronous>, transform_indices = @transform_7, window_bounds = array<i64: 2, 48>}, {pipeline_mode = #tpu.pipeline_mode<synchronous>, transform_indices = @transform_8, window_bounds = array<i64: 2, 1>}, {transform_indices = @transform_9, window_bounds = array<i64: 1, 2, 1024>}]} {
    %c0 = arith.constant 0 : index
    %c0_0 = arith.constant 0 : index
    %c0_1 = arith.constant 0 : index
    %0 = vector.load %arg2[%c0, %c0_0, %c0_1] : memref<1x16x384xbf16, #tpu.memory_space<vmem>>, vector<1x16x384xbf16>
    %1 = vector.shape_cast %0 : vector<1x16x384xbf16> to vector<16x384xbf16>
    %c0_2 = arith.constant 0 : index
    %c0_3 = arith.constant 0 : index
    %2 = vector.load %arg3[%c0_2, %c0_3] : memref<384x1024xbf16, #tpu.memory_space<vmem>>, vector<384x1024xbf16>
    %cst = arith.constant dense<0.000000e+00> : vector<16x1024xf32>
    %3 = tpu.matmul %1, %2, %cst {dimension_numbers = #tpu.dot_dimension_numbers<[1], [0], [0], [1], [0, 0, 1, 1], [], []>} : vector<16x384xbf16>, vector<384x1024xbf16>, vector<16x1024xf32> -> vector<16x1024xf32>
    %c0_4 = arith.constant 0 : index
    %c0_5 = arith.constant 0 : index
    %c0_6 = arith.constant 0 : index
    %4 = vector.load %arg1[%c0_4, %c0_5, %c0_6] : memref<1x4x1024xf32, #tpu.memory_space<vmem>>, vector<1x4x1024xf32>
    %5 = vector.shape_cast %4 : vector<1x4x1024xf32> to vector<4x1024xf32>
    %c0_7 = arith.constant 0 : index
    %c0_8 = arith.constant 0 : index
    %6 = vector.load %arg11[%c0_7, %c0_8] : memref<24x1024xf32, #tpu.memory_space<vmem>>, vector<4x1024xf32>
    tpu.vector_store %arg11[%c0_7, %c0_8], %5 {strides = array<i32>} : memref<24x1024xf32, #tpu.memory_space<vmem>>, vector<4x1024xf32>,
    %c4 = arith.constant 4 : index
    %c0_9 = arith.constant 0 : index
    %7 = vector.load %arg11[%c4, %c0_9] : memref<24x1024xf32, #tpu.memory_space<vmem>>, vector<16x1024xf32>
    tpu.vector_store %arg11[%c4, %c0_9], %3 {strides = array<i32>} : memref<24x1024xf32, #tpu.memory_space<vmem>>, vector<16x1024xf32>,
    %cst_10 = arith.constant 0.000000e+00 : f32
    %8 = vector.broadcast %cst_10 : f32 to vector<4x1024xf32>
    %c20 = arith.constant 20 : index
    %c0_11 = arith.constant 0 : index
    %9 = vector.load %arg11[%c20, %c0_11] : memref<24x1024xf32, #tpu.memory_space<vmem>>, vector<4x1024xf32>
    tpu.vector_store %arg11[%c20, %c0_11], %8 {strides = array<i32>} : memref<24x1024xf32, #tpu.memory_space<vmem>>, vector<4x1024xf32>,
    %c0_12 = arith.constant 0 : index
    %c0_13 = arith.constant 0 : index
    %10 = vector.load %arg11[%c0_12, %c0_13] : memref<24x1024xf32, #tpu.memory_space<vmem>>, vector<24x1024xf32>
    %c33_i32 = arith.constant 33 : i32
    %11 = tpu.dynamic_rotate %10 by %c33_i32 dim 1 : vector<24x1024xf32>, i32 -> vector<24x1024xf32>
    %c0_14 = arith.constant 0 : index
    %c0_15 = arith.constant 0 : index
    %c0_16 = arith.constant 0 : index
    %12 = vector.load %arg4[%c0_14, %c0_15, %c0_16] : memref<9x1x1024xf32, #tpu.memory_space<vmem>>, vector<1x1x1024xf32>
    %13 = vector.shape_cast %12 : vector<1x1x1024xf32> to vector<1x1024xf32>
    %14 = vector.broadcast %13 : vector<1x1024xf32> to vector<24x1024xf32>
    %15 = arith.mulf %11, %14 : vector<24x1024xf32>
    %16 = arith.truncf %15 : vector<24x1024xf32> to vector<24x1024xbf16>
    %c0_17 = arith.constant 0 : index
    %c0_18 = arith.constant 0 : index
    %17 = vector.load %arg12[%c0_17, %c0_18] : memref<216x1024xbf16, #tpu.memory_space<vmem>>, vector<24x1024xbf16>
    tpu.vector_store %arg12[%c0_17, %c0_18], %16 {strides = array<i32>} : memref<216x1024xbf16, #tpu.memory_space<vmem>>, vector<24x1024xbf16>,
    %c32_i32 = arith.constant 32 : i32
    %18 = tpu.dynamic_rotate %10 by %c32_i32 dim 1 : vector<24x1024xf32>, i32 -> vector<24x1024xf32>
    %c1 = arith.constant 1 : index
    %c0_19 = arith.constant 0 : index
    %c0_20 = arith.constant 0 : index
    %19 = vector.load %arg4[%c1, %c0_19, %c0_20] : memref<9x1x1024xf32, #tpu.memory_space<vmem>>, vector<1x1x1024xf32>
    %20 = vector.shape_cast %19 : vector<1x1x1024xf32> to vector<1x1024xf32>
    %21 = vector.broadcast %20 : vector<1x1024xf32> to vector<24x1024xf32>
    %22 = arith.mulf %18, %21 : vector<24x1024xf32>
    %23 = arith.truncf %22 : vector<24x1024xf32> to vector<24x1024xbf16>
    %c24 = arith.constant 24 : index
    %c0_21 = arith.constant 0 : index
    %24 = vector.load %arg12[%c24, %c0_21] : memref<216x1024xbf16, #tpu.memory_space<vmem>>, vector<24x1024xbf16>
    tpu.vector_store %arg12[%c24, %c0_21], %23 {strides = array<i32>} : memref<216x1024xbf16, #tpu.memory_space<vmem>>, vector<24x1024xbf16>,
    %c31_i32 = arith.constant 31 : i32
    %25 = tpu.dynamic_rotate %10 by %c31_i32 dim 1 : vector<24x1024xf32>, i32 -> vector<24x1024xf32>
    %c2 = arith.constant 2 : index
    %c0_22 = arith.constant 0 : index
    %c0_23 = arith.constant 0 : index
    %26 = vector.load %arg4[%c2, %c0_22, %c0_23] : memref<9x1x1024xf32, #tpu.memory_space<vmem>>, vector<1x1x1024xf32>
    %27 = vector.shape_cast %26 : vector<1x1x1024xf32> to vector<1x1024xf32>
    %28 = vector.broadcast %27 : vector<1x1024xf32> to vector<24x1024xf32>
    %29 = arith.mulf %25, %28 : vector<24x1024xf32>
    %30 = arith.truncf %29 : vector<24x1024xf32> to vector<24x1024xbf16>
    %c48 = arith.constant 48 : index
    %c0_24 = arith.constant 0 : index
    %31 = vector.load %arg12[%c48, %c0_24] : memref<216x1024xbf16, #tpu.memory_space<vmem>>, vector<24x1024xbf16>
    tpu.vector_store %arg12[%c48, %c0_24], %30 {strides = array<i32>} : memref<216x1024xbf16, #tpu.memory_space<vmem>>, vector<24x1024xbf16>,
    %c1_i32 = arith.constant 1 : i32
    %32 = tpu.dynamic_rotate %10 by %c1_i32 dim 1 : vector<24x1024xf32>, i32 -> vector<24x1024xf32>
    %c3 = arith.constant 3 : index
    %c0_25 = arith.constant 0 : index
    %c0_26 = arith.constant 0 : index
    %33 = vector.load %arg4[%c3, %c0_25, %c0_26] : memref<9x1x1024xf32, #tpu.memory_space<vmem>>, vector<1x1x1024xf32>
    %34 = vector.shape_cast %33 : vector<1x1x1024xf32> to vector<1x1024xf32>
    %35 = vector.broadcast %34 : vector<1x1024xf32> to vector<24x1024xf32>
    %36 = arith.mulf %32, %35 : vector<24x1024xf32>
    %37 = arith.truncf %36 : vector<24x1024xf32> to vector<24x1024xbf16>
    %c72 = arith.constant 72 : index
    %c0_27 = arith.constant 0 : index
    %38 = vector.load %arg12[%c72, %c0_27] : memref<216x1024xbf16, #tpu.memory_space<vmem>>, vector<24x1024xbf16>
    tpu.vector_store %arg12[%c72, %c0_27], %37 {strides = array<i32>} : memref<216x1024xbf16, #tpu.memory_space<vmem>>, vector<24x1024xbf16>,
    %39 = arith.truncf %10 : vector<24x1024xf32> to vector<24x1024xbf16>
    %c96 = arith.constant 96 : index
    %c0_28 = arith.constant 0 : index
    %40 = vector.load %arg12[%c96, %c0_28] : memref<216x1024xbf16, #tpu.memory_space<vmem>>, vector<24x1024xbf16>
    tpu.vector_store %arg12[%c96, %c0_28], %39 {strides = array<i32>} : memref<216x1024xbf16, #tpu.memory_space<vmem>>, vector<24x1024xbf16>,
    %c1023_i32 = arith.constant 1023 : i32
    %41 = tpu.dynamic_rotate %10 by %c1023_i32 dim 1 : vector<24x1024xf32>, i32 -> vector<24x1024xf32>
    %c5 = arith.constant 5 : index
    %c0_29 = arith.constant 0 : index
    %c0_30 = arith.constant 0 : index
    %42 = vector.load %arg4[%c5, %c0_29, %c0_30] : memref<9x1x1024xf32, #tpu.memory_space<vmem>>, vector<1x1x1024xf32>
    %43 = vector.shape_cast %42 : vector<1x1x1024xf32> to vector<1x1024xf32>
    %44 = vector.broadcast %43 : vector<1x1024xf32> to vector<24x1024xf32>
    %45 = arith.mulf %41, %44 : vector<24x1024xf32>
    %46 = arith.truncf %45 : vector<24x1024xf32> to vector<24x1024xbf16>
    %c120 = arith.constant 120 : index
    %c0_31 = arith.constant 0 : index
    %47 = vector.load %arg12[%c120, %c0_31] : memref<216x1024xbf16, #tpu.memory_space<vmem>>, vector<24x1024xbf16>
    tpu.vector_store %arg12[%c120, %c0_31], %46 {strides = array<i32>} : memref<216x1024xbf16, #tpu.memory_space<vmem>>, vector<24x1024xbf16>,
    %c993_i32 = arith.constant 993 : i32
    %48 = tpu.dynamic_rotate %10 by %c993_i32 dim 1 : vector<24x1024xf32>, i32 -> vector<24x1024xf32>
    %c6 = arith.constant 6 : index
    %c0_32 = arith.constant 0 : index
    %c0_33 = arith.constant 0 : index
    %49 = vector.load %arg4[%c6, %c0_32, %c0_33] : memref<9x1x1024xf32, #tpu.memory_space<vmem>>, vector<1x1x1024xf32>
    %50 = vector.shape_cast %49 : vector<1x1x1024xf32> to vector<1x1024xf32>
    %51 = vector.broadcast %50 : vector<1x1024xf32> to vector<24x1024xf32>
    %52 = arith.mulf %48, %51 : vector<24x1024xf32>
    %53 = arith.truncf %52 : vector<24x1024xf32> to vector<24x1024xbf16>
    %c144 = arith.constant 144 : index
    %c0_34 = arith.constant 0 : index
    %54 = vector.load %arg12[%c144, %c0_34] : memref<216x1024xbf16, #tpu.memory_space<vmem>>, vector<24x1024xbf16>
    tpu.vector_store %arg12[%c144, %c0_34], %53 {strides = array<i32>} : memref<216x1024xbf16, #tpu.memory_space<vmem>>, vector<24x1024xbf16>,
    %c992_i32 = arith.constant 992 : i32
    %55 = tpu.dynamic_rotate %10 by %c992_i32 dim 1 : vector<24x1024xf32>, i32 -> vector<24x1024xf32>
    %c7 = arith.constant 7 : index
    %c0_35 = arith.constant 0 : index
    %c0_36 = arith.constant 0 : index
    %56 = vector.load %arg4[%c7, %c0_35, %c0_36] : memref<9x1x1024xf32, #tpu.memory_space<vmem>>, vector<1x1x1024xf32>
    %57 = vector.shape_cast %56 : vector<1x1x1024xf32> to vector<1x1024xf32>
    %58 = vector.broadcast %57 : vector<1x1024xf32> to vector<24x1024xf32>
    %59 = arith.mulf %55, %58 : vector<24x1024xf32>
    %60 = arith.truncf %59 : vector<24x1024xf32> to vector<24x1024xbf16>
    %c168 = arith.constant 168 : index
    %c0_37 = arith.constant 0 : index
    %61 = vector.load %arg12[%c168, %c0_37] : memref<216x1024xbf16, #tpu.memory_space<vmem>>, vector<24x1024xbf16>
    tpu.vector_store %arg12[%c168, %c0_37], %60 {strides = array<i32>} : memref<216x1024xbf16, #tpu.memory_space<vmem>>, vector<24x1024xbf16>,
    %c991_i32 = arith.constant 991 : i32
    %62 = tpu.dynamic_rotate %10 by %c991_i32 dim 1 : vector<24x1024xf32>, i32 -> vector<24x1024xf32>
    %c8 = arith.constant 8 : index
    %c0_38 = arith.constant 0 : index
    %c0_39 = arith.constant 0 : index
    %63 = vector.load %arg4[%c8, %c0_38, %c0_39] : memref<9x1x1024xf32, #tpu.memory_space<vmem>>, vector<1x1x1024xf32>
    %64 = vector.shape_cast %63 : vector<1x1x1024xf32> to vector<1x1024xf32>
    %65 = vector.broadcast %64 : vector<1x1024xf32> to vector<24x1024xf32>
    %66 = arith.mulf %62, %65 : vector<24x1024xf32>
    %67 = arith.truncf %66 : vector<24x1024xf32> to vector<24x1024xbf16>
    %c192 = arith.constant 192 : index
    %c0_40 = arith.constant 0 : index
    %68 = vector.load %arg12[%c192, %c0_40] : memref<216x1024xbf16, #tpu.memory_space<vmem>>, vector<24x1024xbf16>
    tpu.vector_store %arg12[%c192, %c0_40], %67 {strides = array<i32>} : memref<216x1024xbf16, #tpu.memory_space<vmem>>, vector<24x1024xbf16>,
    %c0_41 = arith.constant 0 : index
    %c0_42 = arith.constant 0 : index
    %69 = vector.load %arg5[%c0_41, %c0_42] : memref<50x216xbf16, #tpu.memory_space<vmem>>, vector<50x216xbf16>
    %c0_43 = arith.constant 0 : index
    %c0_44 = arith.constant 0 : index
    %70 = vector.load %arg12[%c0_43, %c0_44] : memref<216x1024xbf16, #tpu.memory_space<vmem>>, vector<216x1024xbf16>
    %cst_45 = arith.constant dense<0.000000e+00> : vector<50x1024xf32>
    %71 = tpu.matmul %69, %70, %cst_45 {dimension_numbers = #tpu.dot_dimension_numbers<[1], [0], [0], [1], [0, 0, 1, 1], [], []>} : vector<50x216xbf16>, vector<216x1024xbf16>, vector<50x1024xf32> -> vector<50x1024xf32>
    %c0_46 = arith.constant 0 : index
    %c0_47 = arith.constant 0 : index
    %72 = vector.load %arg13[%c0_46, %c0_47] : memref<50x1024xf32, #tpu.memory_space<vmem>>, vector<50x1024xf32>
    tpu.vector_store %arg13[%c0_46, %c0_47], %71 {strides = array<i32>} : memref<50x1024xf32, #tpu.memory_space<vmem>>, vector<50x1024xf32>,
    %c0_48 = arith.constant 0 : index
    %c0_49 = arith.constant 0 : index
    %73 = vector.load %arg13[%c0_48, %c0_49] : memref<50x1024xf32, #tpu.memory_space<vmem>>, vector<24x1024xf32>
    %c0_50 = arith.constant 0 : index
    %c0_51 = arith.constant 0 : index
    %74 = vector.load %arg6[%c0_50, %c0_51] : memref<24x1xf32, #tpu.memory_space<vmem>>, vector<24x1xf32>
    %75 = vector.broadcast %74 : vector<24x1xf32> to vector<24x1024xf32>
    %76 = arith.addf %73, %75 : vector<24x1024xf32>
    %cst_52 = arith.constant 3.000000e+00 : f32
    %77 = vector.broadcast %cst_52 : f32 to vector<24x1024xf32>
    %78 = arith.addf %76, %77 : vector<24x1024xf32>
    %cst_53 = arith.constant 0.000000e+00 : f32
    %cst_54 = arith.constant 6.000000e+00 : f32
    %79 = vector.broadcast %cst_53 : f32 to vector<24x1024xf32>
    %80 = arith.maximumf %79, %78 : vector<24x1024xf32>
    %81 = vector.broadcast %cst_54 : f32 to vector<24x1024xf32>
    %82 = arith.minimumf %81, %80 : vector<24x1024xf32>
    %83 = arith.mulf %76, %82 : vector<24x1024xf32>
    %cst_55 = arith.constant 0.166666672 : f32
    %84 = vector.broadcast %cst_55 : f32 to vector<24x1024xf32>
    %85 = arith.mulf %83, %84 : vector<24x1024xf32>
    %c24_56 = arith.constant 24 : index
    %c0_57 = arith.constant 0 : index
    %86 = vector.load %arg13[%c24_56, %c0_57] : memref<50x1024xf32, #tpu.memory_space<vmem>>, vector<24x1024xf32>
    %c0_58 = arith.constant 0 : index
    %c0_59 = arith.constant 0 : index
    %87 = vector.load %arg7[%c0_58, %c0_59] : memref<24x1xf32, #tpu.memory_space<vmem>>, vector<24x1xf32>
    %88 = vector.broadcast %87 : vector<24x1xf32> to vector<24x1024xf32>
    %89 = arith.addf %86, %88 : vector<24x1024xf32>
    %cst_60 = arith.constant 3.000000e+00 : f32
    %90 = vector.broadcast %cst_60 : f32 to vector<24x1024xf32>
    %91 = arith.addf %89, %90 : vector<24x1024xf32>
    %cst_61 = arith.constant 0.000000e+00 : f32
    %cst_62 = arith.constant 6.000000e+00 : f32
    %92 = vector.broadcast %cst_61 : f32 to vector<24x1024xf32>
    %93 = arith.maximumf %92, %91 : vector<24x1024xf32>
    %94 = vector.broadcast %cst_62 : f32 to vector<24x1024xf32>
    %95 = arith.minimumf %94, %93 : vector<24x1024xf32>
    %96 = arith.mulf %89, %95 : vector<24x1024xf32>
    %cst_63 = arith.constant 0.166666672 : f32
    %97 = vector.broadcast %cst_63 : f32 to vector<24x1024xf32>
    %98 = arith.mulf %96, %97 : vector<24x1024xf32>
    %99 = arith.truncf %98 : vector<24x1024xf32> to vector<24x1024xbf16>
    %c0_64 = arith.constant 0 : index
    %c0_65 = arith.constant 0 : index
    %100 = vector.load %arg14[%c0_64, %c0_65] : memref<48x1024xbf16, #tpu.memory_space<vmem>>, vector<24x1024xbf16>
    tpu.vector_store %arg14[%c0_64, %c0_65], %99 {strides = array<i32>} : memref<48x1024xbf16, #tpu.memory_space<vmem>>, vector<24x1024xbf16>,
    %101 = arith.truncf %85 : vector<24x1024xf32> to vector<24x1024xbf16>
    %c24_66 = arith.constant 24 : index
    %c0_67 = arith.constant 0 : index
    %102 = vector.load %arg14[%c24_66, %c0_67] : memref<48x1024xbf16, #tpu.memory_space<vmem>>, vector<24x1024xbf16>
    tpu.vector_store %arg14[%c24_66, %c0_67], %101 {strides = array<i32>} : memref<48x1024xbf16, #tpu.memory_space<vmem>>, vector<24x1024xbf16>,
    %c0_68 = arith.constant 0 : index
    %c0_69 = arith.constant 0 : index
    %103 = vector.load %arg8[%c0_68, %c0_69] : memref<2x48xbf16, #tpu.memory_space<vmem>>, vector<2x48xbf16>
    %c0_70 = arith.constant 0 : index
    %c0_71 = arith.constant 0 : index
    %104 = vector.load %arg14[%c0_70, %c0_71] : memref<48x1024xbf16, #tpu.memory_space<vmem>>, vector<48x1024xbf16>
    %cst_72 = arith.constant dense<0.000000e+00> : vector<2x1024xf32>
    %105 = tpu.matmul %103, %104, %cst_72 {dimension_numbers = #tpu.dot_dimension_numbers<[1], [0], [0], [1], [0, 0, 1, 1], [], []>} : vector<2x48xbf16>, vector<48x1024xbf16>, vector<2x1024xf32> -> vector<2x1024xf32>
    %c48_73 = arith.constant 48 : index
    %c0_74 = arith.constant 0 : index
    %106 = vector.load %arg13[%c48_73, %c0_74] : memref<50x1024xf32, #tpu.memory_space<vmem>>, vector<2x1024xf32>
    %107 = arith.addf %105, %106 : vector<2x1024xf32>
    %c0_75 = arith.constant 0 : index
    %c0_76 = arith.constant 0 : index
    %108 = vector.load %arg9[%c0_75, %c0_76] : memref<2x1xf32, #tpu.memory_space<vmem>>, vector<2x1xf32>
    %109 = vector.broadcast %108 : vector<2x1xf32> to vector<2x1024xf32>
    %110 = arith.addf %107, %109 : vector<2x1024xf32>
    %c0_77 = arith.constant 0 : index
    %c0_78 = arith.constant 0 : index
    %c0_79 = arith.constant 0 : index
    %111 = vector.load %arg10[%c0_77, %c0_78, %c0_79] : memref<1x2x1024xf32, #tpu.memory_space<vmem>>, vector<1x2x1024xf32>
    %112 = vector.shape_cast %111 : vector<1x2x1024xf32> to vector<2x1024xf32>
    %113 = vector.shape_cast %110 : vector<2x1024xf32> to vector<1x2x1024xf32>
    tpu.vector_store %arg10[%c0_77, %c0_78, %c0_79], %113 {strides = array<i32>} : memref<1x2x1024xf32, #tpu.memory_space<vmem>>, vector<1x2x1024xf32>,
    return
  }
  func.func @transform_0(%arg0: i32) -> (i32, i32, i32) {
    %c0_i32 = arith.constant 0 : i32
    %c0_i32_0 = arith.constant 0 : i32
    %c0_i32_1 = arith.constant 0 : i32
    return %arg0, %c0_i32, %c0_i32_0 : i32, i32, i32
  }
  func.func @transform_1(%arg0: i32) -> (i32, i32, i32) {
    %c0_i32 = arith.constant 0 : i32
    %c0_i32_0 = arith.constant 0 : i32
    %c0_i32_1 = arith.constant 0 : i32
    return %arg0, %c0_i32, %c0_i32_0 : i32, i32, i32
  }
  func.func @transform_2(%arg0: i32) -> (i32, i32) {
    %c0_i32 = arith.constant 0 : i32
    %c0_i32_0 = arith.constant 0 : i32
    %c0_i32_1 = arith.constant 0 : i32
    return %c0_i32, %c0_i32_0 : i32, i32
  }
  func.func @transform_3(%arg0: i32) -> (i32, i32, i32) {
    %c0_i32 = arith.constant 0 : i32
    %c0_i32_0 = arith.constant 0 : i32
    %c0_i32_1 = arith.constant 0 : i32
    %c0_i32_2 = arith.constant 0 : i32
    return %c0_i32, %c0_i32_0, %c0_i32_1 : i32, i32, i32
  }
  func.func @transform_4(%arg0: i32) -> (i32, i32) {
    %c0_i32 = arith.constant 0 : i32
    %c0_i32_0 = arith.constant 0 : i32
    %c0_i32_1 = arith.constant 0 : i32
    return %c0_i32, %c0_i32_0 : i32, i32
  }
  func.func @transform_5(%arg0: i32) -> (i32, i32) {
    %c0_i32 = arith.constant 0 : i32
    %c0_i32_0 = arith.constant 0 : i32
    %c0_i32_1 = arith.constant 0 : i32
    return %c0_i32, %c0_i32_0 : i32, i32
  }
  func.func @transform_6(%arg0: i32) -> (i32, i32) {
    %c0_i32 = arith.constant 0 : i32
    %c0_i32_0 = arith.constant 0 : i32
    %c0_i32_1 = arith.constant 0 : i32
    return %c0_i32, %c0_i32_0 : i32, i32
  }
  func.func @transform_7(%arg0: i32) -> (i32, i32) {
    %c0_i32 = arith.constant 0 : i32
    %c0_i32_0 = arith.constant 0 : i32
    %c0_i32_1 = arith.constant 0 : i32
    return %c0_i32, %c0_i32_0 : i32, i32
  }
  func.func @transform_8(%arg0: i32) -> (i32, i32) {
    %c0_i32 = arith.constant 0 : i32
    %c0_i32_0 = arith.constant 0 : i32
    %c0_i32_1 = arith.constant 0 : i32
    return %c0_i32, %c0_i32_0 : i32, i32
  }
  func.func @transform_9(%arg0: i32) -> (i32, i32, i32) {
    %c0_i32 = arith.constant 0 : i32
    %c0_i32_0 = arith.constant 0 : i32
    %c0_i32_1 = arith.constant 0 : i32
    return %arg0, %c0_i32, %c0_i32_0 : i32, i32, i32
  }
}

</mosaic_0001>

<bundles_post_ra>
// kernel: tpu_custom_call.1
= control target key start
LH: loop header
LB: loop body
LE: loop exit
PB: predicated region body
PF: predicated region fallthrough
CT: control target
= control target key end

     0   :  { %s9744_s0 = inlined_call_operand.hbm [shape: f32[2,4,1024], index: 0, kind: input, shape index: {}]   ;;  %s9745_s1 = inlined_call_operand.hbm [shape: bf16[2,16,384], index: 1, kind: input, shape index: {}]   ;;  %s9746_s2 = inlined_call_operand.hbm [shape: bf16[384,1024], index: 2, kind: input, shape index: {}]   ;;  %s9747_s3 = inlined_call_operand.hbm [shape: f32[9,1,1024], index: 3, kind: input, shape index: {}]   ;;  %s9748_s4 = inlined_call_operand.vmem [shape: bf16[50,216], index: 4, kind: input, shape index: {}]   ;;  %s9749_s5 = inlined_call_operand.vmem [shape: f32[24,1], index: 5, kind: input, shape index: {}]   ;;  %s9750_s6 = inlined_call_operand.vmem [shape: f32[24,1], index: 6, kind: input, shape index: {}]   ;;  %s9751_s7 = inlined_call_operand.vmem [shape: bf16[2,48], index: 7, kind: input, shape index: {}]   ;;  %s9752_s8 = inlined_call_operand.vmem [shape: f32[2,1], index: 8, kind: input, shape index: {}]   ;;  %s9753_s9 = inlined_call_operand.hbm [shape: f32[2,2,1024], index: 9, kind: output, shape index: {}]  }
   0x1   :  { %9947 = sst [smem:[#allocation138_spill]] %s9744_s0 }
   0x2   :  { %9948 = sst [smem:[#allocation139_spill]] %s9746_s2 }
   0x3   :  { %9949 = sst [smem:[#allocation140_spill]] %s9747_s3 }
   0x4   :  { %14 = vsyncpa [#allocation7], 0 }
   0x5   :  { %16 = vsyncpa [#allocation7 + $0x1], 0 }
   0x6   :  { %17 = vsyncpa [#allocation10], 0 }
   0x7   :  { %19 = vsyncpa [#allocation10 + $0x1], 0 }
   0x8   :  { %20 = vsyncpa [#allocation13], 0 }
   0x9   :  { %21 = vsyncpa [#allocation8], 0 }
   0xa   :  { %23 = vsyncpa [#allocation8 + $0x1], 0  ;;  %s7081_s30 = smov 0   ;;  %s7083_s10 = smov 0  }
   0xb   :  { %s7085_s11 = smov 0   ;;  %s7087_s12 = smov 0  }
   0xc LB: > { %s7102_s13 = sadd.s32 4294967295, %s7007_s12   ;;  %s5975_s14 = sadd.s32 4294967294, %s7007_s12   ;;  %s7007_s12 = sphi %s7087_s12, %s10355_s12   ;;  %s7003_s11 = sphi %s7085_s11, %s10354_s11   ;;  %s6999_s10 = sphi %s7083_s10, %s10353_s10   ;;  %s6995_s30 = sphi %s7081_s30, %s10352_s30  }
   0xd   : > { %p49_p0 = scmp.ne.s32.totalorder %s6999_s10, %s6995_s30  ;;  %p9754_p1 = scmp.eq.s32.totalorder %s7102_s13, 0 }
   0xe   : > { %p252_p3 = scmp.eq.s32.totalorder %s5975_s14, 1  ;;  %p5976_p5 = scmp.ge.s32.totalorder %s7007_s12, 1 }
   0xf   : > { %p7111_p4 = por %p9754_p1, %p49_p0  ;;  %p259_p7 = scmp.lt.s32.totalorder %s7007_s12, 3 }
  0x10   : > { %p7116_p6 = por %p252_p3, %p49_p0  ;;  %s7009_s18 = smov [#allocation11]  }
  0x11   : > { %s9950_s15 = scalar_select %p7111_p4, 1, 0 }
  0x12   : > { %s9951_s16 = scalar_select %p7116_p6, 1, 0 }
  0x13   : > { %p7121_p8 = pnand %p5976_p5, %p259_p7  ;;  %s271_s19 = sshll.u32 %s7009_s18, 4  ;;  %s7125_s19 = int_to_ptr.vmem [resolvable:$true] %s271_s19 }
  0x14   : > { %9952 = sst [smem:[#allocation20_spill]] %s9951_s16  ;;  %s7010_s21 = smov [#allocation12]  }
  0x15   : > { %p6696_p9 = pneg %p7121_p8  ;;  %s284_s22 = sshll.u32 %s7010_s21, 4  ;;  %s7136_s22 = int_to_ptr.vmem [resolvable:$true] %s284_s22 }
  0x16   : > { %s9955_s2 = sld [smem:[#allocation139_spill]] }
  0x17   : > { %p7132_p11 = pnand %p6696_p9, %p9754_p1 }
  0x19   : > { %p6815_p13 = pneg %p7132_p11 }
  0x1c   : > { %s6813_s25 = scalar_lea.hbm %s9955_s2, 24576 }
  0x1d   : > { %p6814_p12 = scmp.ne.s32.totalorder %s9955_s2, %s6813_s25  ;;  %p6820_p5 = scmp.lt.u32.totalorder %s6813_s25, %s9955_s2 }
  0x1f   : > { %p6816_p0 = pnand %p6815_p13, %p6814_p12 }
  0x21   : > { %p6817_p3 = pneg %p6816_p0 }
  0x23   : > { %p6822_p7 = pnand %p6820_p5, %p6817_p3 }
  0x25   : > { %6825 = shalt.err (!%p6822_p7)
}
  0x26   : > { %s6826_s14 = scalar_lea.vmem %s7125_s19, 24576  ;;  %p6834_p2 = scmp.lt.s32.totalorder %s7125_s19, %s7125_s19 }
  0x27   : > { %p6827_p9 = scmp.ne.s32.totalorder %s7125_s19, %s6826_s14  ;;  %p6835_p12 = scmp.lt.s32.totalorder %s6826_s14, %s6826_s14 }
  0x29   : > { %p6829_p10 = pnand %p6827_p9, %p6815_p13  ;;  %p6836_p0 = por %p6835_p12, %p6834_p2 }
  0x2b   : > { %p6830_p1 = pneg %p6829_p10 }
  0x2d   : > { %p6837_p6 = pnand %p6836_p0, %p6830_p1 }
  0x2f   : > { %6840 = shalt.err (!%p6837_p6)
}
  0x30   : > { %s7011_s18 = smov 512   ;;  %s7012_s21 = smov 32  }
  0x31   : > { %6699 = dma.hbm_to_vmem [thread:$0]  (!%p7132_p11), %s9955_s2, 24576, %s7125_s19, [#allocation10], %s7011_s18, %s7011_s18, %s7012_s21  }
  0x32   : > { %s9956_s3 = sld [smem:[#allocation140_spill]] }
  0x38   : > { %s6841_s27 = scalar_lea.hbm %s9956_s3, 1152 }
  0x39   : > { %p6842_p2 = scmp.ne.s32.totalorder %s9956_s3, %s6841_s27  ;;  %p6848_p10 = scmp.lt.u32.totalorder %s6841_s27, %s9956_s3 }
  0x3b   : > { %p6844_p1 = pnand %p6842_p2, %p6815_p13 }
  0x3d   : > { %p6845_p6 = pneg %p6844_p1 }
  0x3f   : > { %p6850_p3 = pnand %p6848_p10, %p6845_p6 }
  0x41   : > { %6853 = shalt.err (!%p6850_p3)
}
  0x42   : > { %s6854_s19 = scalar_lea.vmem %s7136_s22, 1152  ;;  %p6862_p12 = scmp.lt.s32.totalorder %s7136_s22, %s7136_s22 }
  0x43   : > { %p6855_p5 = scmp.ne.s32.totalorder %s7136_s22, %s6854_s19  ;;  %p6863_p0 = scmp.lt.s32.totalorder %s6854_s19, %s6854_s19 }
  0x45   : > { %p6857_p7 = pnand %p6855_p5, %p6815_p13  ;;  %p6864_p2 = por %p6863_p0, %p6862_p12 }
  0x47   : > { %p6858_p9 = pneg %p6857_p7 }
  0x49   : > { %p6865_p1 = pnand %p6864_p2, %p6858_p9 }
  0x4b   : > { %6868 = shalt.err (!%p6865_p1)
}
  0x4c   : > { %s7013_s16 = smov 128   ;;  %s7014_s18 = smov 8  }
  0x4d   : > { %6702 = dma.hbm_to_vmem [thread:$0]  (!%p7132_p11), %s9956_s3, 1152, %s7136_s22, [#allocation13], %s7013_s16, %s7013_s16, %s7014_s18  }
  0x4e   : > { %s7191_s24 = sadd.s32 1, %s7007_s12   ;;  %s36_s26 = sadd.s32 1, %s7003_s11 }
  0x4f   : > { %s33_s25 = ssub.s32 %s7007_s12, %s7191_s24  ;;  %p43_p6 = scmp.ne.s32.totalorder %s7003_s11, %s6999_s10 }
  0x50   : > { %p34_p13 = scmp.eq.s32.totalorder %s33_s25, 0  ;;  %p44_p10 = scmp.eq.s32.totalorder %s7007_s12, 0 }
  0x51   : > { %p9958_p5 = scmp.eq.s32.totalorder %s7102_s13, 1  ;;  %p6716_p9 = scmp.lt.s32.totalorder %s7007_s12, 2 }
  0x52   : > { %s7200_s27 = scalar_select %p34_p13, %s7003_s11, %s36_s26  }
  0x53   : > { %p45_p3 = por %p44_p10, %p43_p6  ;;  %p7204_p7 = por %p9958_p5, %p43_p6 }
  0x54   : > { %9957 = sst [smem:[#allocation21_spill]] %s7200_s27  ;;  %s7210_s20 = sand.u32 1, %s7003_s11  }
  0x55   : > { %s9959_s28 = scalar_select %p7204_p7, 1, 0 }
  0x56   : > { %s5980_s22 = sshll.u32 %s7210_s20, 5  ;;  %s6441_s29 = sshll.u32 %s7007_s12, 9 }
  0x57   : > { %s9960_s0 = sld [smem:[#allocation138_spill]]  ;;  %s317_s18 = scalar_lea.vmem [#allocation6], %s5980_s22 }
  0x58   : > { %s325_s21 = sshll.u32 %s317_s18, 4  ;;  %p7221_p11 = pnand %p6716_p9, %p45_p3  ;;  %s7219_s21 = int_to_ptr.vmem [resolvable:$true] %s325_s21 }
  0x59   : > { %s6679_s25 = smul.u32 24, %s7210_s20  ;;  %s314_s2 = scalar_lea.sflag [#allocation7], %s7210_s20 }
  0x5a   : > { %p6871_p0 = pneg %p7221_p11 }
  0x5d   : > { %s7217_s16 = scalar_lea.hbm %s9960_s0, %s6441_s29  ;;  %s6874_s19 = scalar_lea.hbm %s9960_s0, 1024 }
  0x5e   : > { %s6869_s14 = scalar_lea.hbm %s7217_s16, 512  ;;  %p6875_p13 = scmp.lt.u32.totalorder %s7217_s16, %s9960_s0 }
  0x5f   : > { %p6870_p12 = scmp.ne.s32.totalorder %s7217_s16, %s6869_s14  ;;  %p6876_p6 = scmp.lt.u32.totalorder %s6874_s19, %s6869_s14 }
  0x60   : > { %p6878_p3 = scmp.lt.u32.totalorder %s6869_s14, %s7217_s16 }
  0x61   : > { %p6872_p2 = pnand %p6871_p0, %p6870_p12  ;;  %p6877_p10 = por %p6876_p6, %p6875_p13 }
  0x63   : > { %p6873_p1 = pneg %p6872_p2  ;;  %p6879_p5 = por %p6878_p3, %p6877_p10 }
  0x65   : > { %p6880_p9 = pnand %p6879_p5, %p6873_p1 }
  0x67   : > { %6883 = shalt.err (!%p6880_p9)
}
  0x68   : > { %s6884_s26 = scalar_lea.vmem %s7219_s21, 512  ;;  %s7015_s22 = smov [#allocation6]  }
  0x69   : > { %p6885_p12 = scmp.ne.s32.totalorder %s7219_s21, %s6884_s26  ;;  %s6889_s29 = sshll.u32 %s7015_s22, 4  ;;  %s6890_s29 = int_to_ptr.vmem [resolvable:$false] %s6889_s29 }
  0x6a   : > { %s6891_s3 = scalar_lea.vmem %s6890_s29, 1024  ;;  %p6892_p4 = scmp.lt.s32.totalorder %s7219_s21, %s6890_s29 }
  0x6b   : > { %p6887_p2 = pnand %p6885_p12, %p6871_p0  ;;  %p6893_p13 = scmp.lt.s32.totalorder %s6891_s3, %s6884_s26 }
  0x6d   : > { %p6888_p7 = pneg %p6887_p2  ;;  %p6894_p6 = por %p6893_p13, %p6892_p4 }
  0x6f   : > { %p6895_p10 = pnand %p6894_p6, %p6888_p7 }
  0x71   : > { %6898 = shalt.err (!%p6895_p10)
}
  0x72   : > { %6706 = dma.hbm_to_vmem [thread:$0]  (!%p7221_p11), %s7217_s16, 512, %s7219_s21, %s314_s2  }
  0x73   : > { %s6680_s14 = smul.u32 384, %s7007_s12  ;;  %s336_s19 = scalar_lea.vmem [#allocation9], %s6679_s25 }
  0x74   : > { %s343_s18 = sshll.u32 %s336_s19, 4  ;;  %s9962_s3 = sand.u32 1, %s7007_s12   ;;  %s7256_s18 = int_to_ptr.vmem [resolvable:$true] %s343_s18 }
  0x75   : > { %s7261_s29 = scalar_lea.hbm %s9745_s1, %s6680_s14  ;;  %s7265_s0 = scalar_lea.sflag [#allocation10], %s9962_s3 }
  0x76   : > { %s6899_s27 = scalar_lea.hbm %s7261_s29, 384  ;;  %s6904_s16 = scalar_lea.hbm %s9745_s1, 768 }
  0x77   : > { %p6900_p4 = scmp.ne.s32.totalorder %s7261_s29, %s6899_s27  ;;  %p6905_p3 = scmp.lt.u32.totalorder %s7261_s29, %s9745_s1 }
  0x78   : > { %p6906_p5 = scmp.lt.u32.totalorder %s6904_s16, %s6899_s27  ;;  %p6908_p12 = scmp.lt.u32.totalorder %s6899_s27, %s7261_s29 }
  0x79   : > { %p6902_p7 = pnand %p6900_p4, %p6871_p0 }
  0x7a   : > { %p6907_p9 = por %p6906_p5, %p6905_p3 }
  0x7b   : > { %p6903_p1 = pneg %p6902_p7 }
  0x7c   : > { %p6909_p2 = por %p6908_p12, %p6907_p9 }
  0x7e   : > { %p6910_p13 = pnand %p6909_p2, %p6903_p1 }
  0x80   : > { %6913 = shalt.err (!%p6910_p13)
}
  0x81   : > { %s6914_s14 = scalar_lea.vmem %s7256_s18, 384  ;;  %s7016_s19 = smov [#allocation9]  }
  0x82   : > { %p6915_p6 = scmp.ne.s32.totalorder %s7256_s18, %s6914_s14  ;;  %s6919_s22 = sshll.u32 %s7016_s19, 4  ;;  %s6920_s22 = int_to_ptr.vmem [resolvable:$false] %s6919_s22 }
  0x83   : > { %s6921_s26 = scalar_lea.vmem %s6920_s22, 768  ;;  %p6922_p7 = scmp.lt.s32.totalorder %s7256_s18, %s6920_s22 }
  0x84   : > { %p6917_p10 = pnand %p6915_p6, %p6871_p0  ;;  %p6923_p3 = scmp.lt.s32.totalorder %s6921_s26, %s6914_s14 }
  0x86   : > { %p6918_p4 = pneg %p6917_p10  ;;  %p6924_p5 = por %p6923_p3, %p6922_p7 }
  0x88   : > { %p6925_p9 = pnand %p6924_p5, %p6918_p4 }
  0x8a   : > { %6928 = shalt.err (!%p6925_p9)
}
  0x8b   : > { %s7017_s27 = smov 192   ;;  %s7018_s3 = smov 12  }
  0x8c   : > { %6709 = dma.hbm_to_vmem [thread:$0]  (!%p7221_p11), %s7261_s29, 384, %s7256_s18, %s7265_s0, %s7017_s27, %s7017_s27, %s7018_s3  }
  0x8d   : > { %355 = sbr.rel (%p7121_p8) target bundleno = 1501 (0x5dd), region = 56 }
  0x94   : > { %s7294_s2 = sand.u32 1, %s6999_s10   ;;  %p9963_p0 = scmp.ne.s32.totalorder %s9950_s15, 0 }
  0x95   : > { %s5985_s20 = sshll.u32 %s7294_s2, 5  ;;  %s358_s16 = scalar_lea.sflag [#allocation7], %s7294_s2 }
  0x96   : > { %s7298_s21 = scalar_lea.vmem [#allocation6], %s5985_s20 }
  0x97   : > { %6974 = dma.done.wait (%p9963_p0), %s358_s16, 512  }
  0x98   : > { %6976 = vsyncadd (%p9963_p0), %s358_s16, 4294966784  ;;  %s366_s0 = sand.u32 1, %s7102_s13   ;;  %s6681_s17 = smul.u32 24, %s7294_s2 }
  0x99   : > { %s367_s23 = scalar_lea.sflag [#allocation10], %s366_s0 }
  0x9a   : > { %s7306_s18 = scalar_lea.vmem [#allocation9], %s6681_s17 }
  0x9b   : > { %6978 = dma.done.wait (%p9963_p0), %s367_s23, 384  }
  0x9c   : > { %6980 = vsyncadd (%p9963_p0), %s367_s23, 4294966912  ;;  %p9964_p8 = scmp.eq.s32.totalorder %s7102_s13, 0 }
  0x9e   : > { %6982 = dma.done.wait (%p9964_p8), [#allocation10], 24576   ;;  %p9965_p11 = pmov %p9964_p8 }
  0x9f   : > { %p9966_p1 = pmov %p9964_p8 }
  0xa0   : > { %6984 = vsyncadd (%p9965_p11), [#allocation10], 4294942720 }
  0xa1   : > { %6986 = dma.done.wait (%p9966_p1), [#allocation13], 1152   ;;  %p9967_p12 = pmov %p9966_p1 }
  0xa2   : > { %v9758_v0 = vmov 0   ;;  %v423_v1 = vld [vmem:[#allocation11] sm:$0xff]  ;;  %v424_v3 = vld [vmem:[#allocation11 + $0x8] sm:$0xff]  ;;  %vm1975_vm0 = vcmask 1043456   ;;  %s7021_s15 = smov 33   ;;  %s7022_s29 = smov 127  }
  0xa3   : > { %6988 = vsyncadd (%p9967_p12), [#allocation13], 4294966144  ;;  %6772 = vset.pattern.permute.xlu1 %v9758_v0  ;;  %6771 = vset.pattern.permute.xlu0 %v9758_v0  ;;  %v427_v2 = vld [vmem:[#allocation11 + $0x20] sm:$0xff]  ;;  %v428_v5 = vld [vmem:[#allocation11 + $0x28] sm:$0xff]  ;;  %s7023_s25 = smov 97   ;;  %s7024_s14 = smov 32  }
  0xa4   : > { %v5993_v4 = vcombine.high %v423_v1, %v427_v2  ;;  %v5992_v6 = vcombine.low %v423_v1, %v427_v2  ;;  %v431_v7 = vld [vmem:[#allocation11 + $0x40] sm:$0xff]  ;;  %v5995_v9 = vcombine.high %v424_v3, %v428_v5  ;;  %v5994_v10 = vcombine.low %v424_v3, %v428_v5  ;;  %v432_v12 = vld [vmem:[#allocation11 + $0x48] sm:$0xff]  ;;  %s7025_s19 = smov 95   ;;  %s7026_s22 = smov 31  }
  0xa5   : > { %v435_v8 = vld [vmem:[#allocation11 + $0x60] sm:$0xff]  ;;  %v436_v13 = vld [vmem:[#allocation11 + $0x68] sm:$0xff]  ;;  %s7027_s26 = smov 1   ;;  %s7028_s27 = smov 96   ;;  %vm4717_vm2 = vcmask 719872   ;;  %vm5620_vm10 = vcmask 392192  }
  0xa6   : > { %v6001_v11 = vcombine.high %v431_v7, %v435_v8  ;;  %v439_v14 = vld [vmem:[#allocation11 + $0x80] sm:$0xff]  ;;  %1591 = vmatprep.subr.bf16.mxu0 %v5993_v4  ;;  %v6003_v15 = vcombine.high %v432_v12, %v436_v13  ;;  %v440_v17 = vld [vmem:[#allocation11 + $0x88] sm:$0xff]  ;;  %1677 = vmatprep.subr.bf16.mxu1 %v5995_v9  ;;  %v6000_v19 = vcombine.low %v431_v7, %v435_v8  ;;  %s5988_s3 = sshll.u32 %s7294_s2, 4  ;;  %s6550_s16 = sshll.u32 %s7102_s13, 8 }
  0xa7   : > { %v443_v16 = vld [vmem:[#allocation11 + $0xa0] sm:$0xff]  ;;  %v444_v18 = vld [vmem:[#allocation11 + $0xa8] sm:$0xff]  ;;  %1592 = vmatpush1.bf16.msra.mxu0 %v5992_v6  ;;  %1678 = vmatpush1.bf16.msra.mxu1 %v5994_v10  ;;  %v6002_v20 = vcombine.low %v432_v12, %v436_v13  ;;  %s9691_s20 = scalar_lea.vmem [#allocation14], %s5988_s3  ;;  %s9699_s23 = scalar_lea.hbm %s9753_s9, %s6550_s16 }
  0xa8   : > { %1593 = vmatprep.subr.bf16.mxu0 %v6001_v11  ;;  %v6009_v21 = vcombine.high %v439_v14, %v443_v16  ;;  %1679 = vmatprep.subr.bf16.mxu1 %v6003_v15  ;;  %v6011_v22 = vcombine.high %v440_v17, %v444_v18  ;;  %v447_v23 = vld [vmem:[#allocation11 + $0xc0] sm:$0xff]  ;;  %v448_v25 = vld [vmem:[#allocation11 + $0xc8] sm:$0xff]  ;;  %v6008_v27 = vcombine.low %v439_v14, %v443_v16  ;;  %p10347_p13 = scmp.ne.s32.totalorder %s9959_s28, 0  ;;  %s7030_s13 = smov [#allocation14]  }
  0xa9   : > { %v451_v24 = vld [vmem:[#allocation11 + $0xe0] sm:$0xff]  ;;  %v452_v26 = vld [vmem:[#allocation11 + $0xe8] sm:$0xff]  ;;  %v6010_v28 = vcombine.low %v440_v17, %v444_v18 }
  0xaa   : > { %v6017_v29 = vcombine.high %v447_v23, %v451_v24  ;;  %v6019_v30 = vcombine.high %v448_v25, %v452_v26  ;;  %v455_v31 = vld [vmem:[#allocation11 + $0x100] sm:$0xff]  ;;  %v456_v33 = vld [vmem:[#allocation11 + $0x108] sm:$0xff]  ;;  %v6016_v35 = vcombine.low %v447_v23, %v451_v24  ;;  %v6018_v36 = vcombine.low %v448_v25, %v452_v26 }
  0xab   : > { %1594 = vmatpush1.bf16.msra.mxu0 %v6000_v19  ;;  %1680 = vmatpush1.bf16.msra.mxu1 %v6002_v20  ;;  %v459_v32 = vld [vmem:[#allocation11 + $0x120] sm:$0xff]  ;;  %v460_v34 = vld [vmem:[#allocation11 + $0x128] sm:$0xff] }
  0xac   : > { %1595 = vmatprep.subr.bf16.mxu0 %v6009_v21  ;;  %1681 = vmatprep.subr.bf16.mxu1 %v6011_v22  ;;  %v6025_v37 = vcombine.high %v455_v31, %v459_v32  ;;  %v6027_v38 = vcombine.high %v456_v33, %v460_v34  ;;  %v463_v39 = vld [vmem:[#allocation11 + $0x140] sm:$0xff]  ;;  %v464_v41 = vld [vmem:[#allocation11 + $0x148] sm:$0xff]  ;;  %v6024_v43 = vcombine.low %v455_v31, %v459_v32 }
  0xad   : > { %v467_v40 = vld [vmem:[#allocation11 + $0x160] sm:$0xff]  ;;  %v468_v42 = vld [vmem:[#allocation11 + $0x168] sm:$0xff]  ;;  %v6026_v44 = vcombine.low %v456_v33, %v460_v34 }
  0xae   : > { %v6033_v45 = vcombine.high %v463_v39, %v467_v40  ;;  %v6035_v46 = vcombine.high %v464_v41, %v468_v42  ;;  %v471_v47 = vld [vmem:[#allocation11 + $0x180] sm:$0xff]  ;;  %v472_v49 = vld [vmem:[#allocation11 + $0x188] sm:$0xff]  ;;  %v6032_v51 = vcombine.low %v463_v39, %v467_v40  ;;  %v6034_v52 = vcombine.low %v464_v41, %v468_v42 }
  0xaf   : > { %1596 = vmatpush1.bf16.msra.mxu0 %v6008_v27  ;;  %1682 = vmatpush1.bf16.msra.mxu1 %v6010_v28  ;;  %v475_v48 = vld [vmem:[#allocation11 + $0x1a0] sm:$0xff]  ;;  %v476_v50 = vld [vmem:[#allocation11 + $0x1a8] sm:$0xff] }
  0xb0   : > { %1597 = vmatprep.subr.bf16.mxu0 %v6017_v29  ;;  %1683 = vmatprep.subr.bf16.mxu1 %v6019_v30  ;;  %v6041_v53 = vcombine.high %v471_v47, %v475_v48  ;;  %v6043_v54 = vcombine.high %v472_v49, %v476_v50  ;;  %v479_v55 = vld [vmem:[#allocation11 + $0x1c0] sm:$0xff]  ;;  %v480_v58 = vld [vmem:[#allocation11 + $0x1c8] sm:$0xff]  ;;  %v6040_v60 = vcombine.low %v471_v47, %v475_v48 }
  0xb1   : > { %v483_v56 = vld [vmem:[#allocation11 + $0x1e0] sm:$0xff]  ;;  %v484_v59 = vld [vmem:[#allocation11 + $0x1e8] sm:$0xff]  ;;  %v6042_v61 = vcombine.low %v472_v49, %v476_v50 }
  0xb2   : > { %v7323_v57 = vld [vmem:[%s7306_s18 + $0x4] ss:$12 sps:$4 sm:$0xff]   ;;  %v6049_v62 = vcombine.high %v479_v55, %v483_v56  ;;  %v6051_v63 = vcombine.high %v480_v58, %v484_v59  ;;  %v6048_v5 = vcombine.low %v479_v55, %v483_v56  ;;  %v6050_v6 = vcombine.low %v480_v58, %v484_v59 }
  0xb3   : > { %1598 = vmatpush1.bf16.msra.mxu0 %v6016_v35  ;;  %1684 = vmatpush1.bf16.msra.mxu1 %v6018_v36  ;;  %v487_v1 = vld [vmem:[#allocation11 + $0x200] sm:$0xff]  ;;  %v488_v3 = vld [vmem:[#allocation11 + $0x208] sm:$0xff] }
  0xb4   : > { %1599 = vmatprep.subr.bf16.mxu0 %v6025_v37  ;;  %1685 = vmatprep.subr.bf16.mxu1 %v6027_v38  ;;  %v491_v2 = vld [vmem:[#allocation11 + $0x220] sm:$0xff]  ;;  %v492_v4 = vld [vmem:[#allocation11 + $0x228] sm:$0xff] }
  0xb5   : > { %1623 = vmatprep.mubr.bf16.mxu0 %v7323_v57  ;;  %1709 = vmatprep.mubr.bf16.mxu1 %v7323_v57  ;;  %v6057_v7 = vcombine.high %v487_v1, %v491_v2  ;;  %v6059_v8 = vcombine.high %v488_v3, %v492_v4  ;;  %v495_v9 = vld [vmem:[#allocation11 + $0x240] sm:$0xff]  ;;  %v496_v11 = vld [vmem:[#allocation11 + $0x248] sm:$0xff]  ;;  %v6056_v13 = vcombine.low %v487_v1, %v491_v2 }
  0xb6   : > { %v499_v10 = vld [vmem:[#allocation11 + $0x260] sm:$0xff]  ;;  %v500_v12 = vld [vmem:[#allocation11 + $0x268] sm:$0xff]  ;;  %v6058_v14 = vcombine.low %v488_v3, %v492_v4 }
  0xb7   : > { %1600 = vmatpush1.bf16.msra.mxu0 %v6024_v43  ;;  %1686 = vmatpush1.bf16.msra.mxu1 %v6026_v44  ;;  %v6065_v15 = vcombine.high %v495_v9, %v499_v10  ;;  %v6067_v16 = vcombine.high %v496_v11, %v500_v12  ;;  %v503_v17 = vld [vmem:[#allocation11 + $0x280] sm:$0xff]  ;;  %v504_v19 = vld [vmem:[#allocation11 + $0x288] sm:$0xff]  ;;  %v6064_v21 = vcombine.low %v495_v9, %v499_v10 }
  0xb8   : > { %1601 = vmatprep.subr.bf16.mxu0 %v6033_v45  ;;  %1687 = vmatprep.subr.bf16.mxu1 %v6035_v46  ;;  %v507_v18 = vld [vmem:[#allocation11 + $0x2a0] sm:$0xff]  ;;  %v508_v20 = vld [vmem:[#allocation11 + $0x2a8] sm:$0xff]  ;;  %v6066_v22 = vcombine.low %v496_v11, %v500_v12 }
  0xb9   : > { %v6073_v23 = vcombine.high %v503_v17, %v507_v18  ;;  %v6075_v24 = vcombine.high %v504_v19, %v508_v20  ;;  %v511_v25 = vld [vmem:[#allocation11 + $0x2c0] sm:$0xff]  ;;  %v512_v27 = vld [vmem:[#allocation11 + $0x2c8] sm:$0xff]  ;;  %v6072_v29 = vcombine.low %v503_v17, %v507_v18  ;;  %v6074_v30 = vcombine.low %v504_v19, %v508_v20 }
  0xba   : > { %v515_v26 = vld [vmem:[#allocation11 + $0x2e0] sm:$0xff]  ;;  %v516_v28 = vld [vmem:[#allocation11 + $0x2e8] sm:$0xff] }
  0xbb   : > { %1602 = vmatpush1.bf16.msra.mxu0 %v6032_v51  ;;  %1688 = vmatpush1.bf16.msra.mxu1 %v6034_v52  ;;  %v6081_v31 = vcombine.high %v511_v25, %v515_v26  ;;  %v6083_v32 = vcombine.high %v512_v27, %v516_v28  ;;  %v519_v33 = vld [vmem:[#allocation11 + $0x300] sm:$0xff]  ;;  %v520_v35 = vld [vmem:[#allocation11 + $0x308] sm:$0xff]  ;;  %v6080_v37 = vcombine.low %v511_v25, %v515_v26 }
  0xbc   : > { %1603 = vmatprep.subr.bf16.mxu0 %v6041_v53  ;;  %1689 = vmatprep.subr.bf16.mxu1 %v6043_v54  ;;  %v523_v34 = vld [vmem:[#allocation11 + $0x320] sm:$0xff]  ;;  %v524_v36 = vld [vmem:[#allocation11 + $0x328] sm:$0xff]  ;;  %v6082_v38 = vcombine.low %v512_v27, %v516_v28 }
  0xbd   : > { %v6089_v39 = vcombine.high %v519_v33, %v523_v34  ;;  %v6091_v40 = vcombine.high %v520_v35, %v524_v36  ;;  %v527_v41 = vld [vmem:[#allocation11 + $0x340] sm:$0xff]  ;;  %v528_v43 = vld [vmem:[#allocation11 + $0x348] sm:$0xff]  ;;  %v6088_v45 = vcombine.low %v519_v33, %v523_v34  ;;  %v6090_v46 = vcombine.low %v520_v35, %v524_v36 }
  0xbe   : > { %v531_v42 = vld [vmem:[#allocation11 + $0x360] sm:$0xff]  ;;  %v532_v44 = vld [vmem:[#allocation11 + $0x368] sm:$0xff] }
  0xbf   : > { %1604 = vmatpush1.bf16.msra.mxu0 %v6040_v60  ;;  %1690 = vmatpush1.bf16.msra.mxu1 %v6042_v61  ;;  %v6097_v47 = vcombine.high %v527_v41, %v531_v42  ;;  %v6099_v48 = vcombine.high %v528_v43, %v532_v44  ;;  %v535_v49 = vld [vmem:[#allocation11 + $0x380] sm:$0xff]  ;;  %v536_v51 = vld [vmem:[#allocation11 + $0x388] sm:$0xff]  ;;  %v6096_v53 = vcombine.low %v527_v41, %v531_v42 }
  0xc0   : > { %1605 = vmatprep.subr.bf16.mxu0 %v6049_v62  ;;  %1691 = vmatprep.subr.bf16.mxu1 %v6051_v63  ;;  %v539_v50 = vld [vmem:[#allocation11 + $0x3a0] sm:$0xff]  ;;  %v540_v52 = vld [vmem:[#allocation11 + $0x3a8] sm:$0xff]  ;;  %v6098_v54 = vcombine.low %v528_v43, %v532_v44 }
  0xc1   : > { %v6105_v55 = vcombine.high %v535_v49, %v539_v50  ;;  %v6107_v56 = vcombine.high %v536_v51, %v540_v52  ;;  %v543_v58 = vld [vmem:[#allocation11 + $0x3c0] sm:$0xff]  ;;  %v544_v60 = vld [vmem:[#allocation11 + $0x3c8] sm:$0xff]  ;;  %v6104_v62 = vcombine.low %v535_v49, %v539_v50  ;;  %v6106_v63 = vcombine.low %v536_v51, %v540_v52 }
  0xc2   : > { %v547_v59 = vld [vmem:[#allocation11 + $0x3e0] sm:$0xff]  ;;  %v548_v61 = vld [vmem:[#allocation11 + $0x3e8] sm:$0xff] }
  0xc3   : > { %1606 = vmatpush1.bf16.msra.mxu0 %v6048_v5  ;;  %1692 = vmatpush1.bf16.msra.mxu1 %v6050_v6  ;;  %v6113_v1 = vcombine.high %v543_v58, %v547_v59  ;;  %v6115_v2 = vcombine.high %v544_v60, %v548_v61  ;;  %v551_v3 = vld [vmem:[#allocation11 + $0x400] sm:$0xff]  ;;  %v552_v5 = vld [vmem:[#allocation11 + $0x408] sm:$0xff] }
  0xc4   : > { %1607 = vmatprep.subr.bf16.mxu0 %v6057_v7  ;;  %1693 = vmatprep.subr.bf16.mxu1 %v6059_v8  ;;  %v555_v4 = vld [vmem:[#allocation11 + $0x420] sm:$0xff]  ;;  %v556_v6 = vld [vmem:[#allocation11 + $0x428] sm:$0xff]  ;;  %v6112_v7 = vcombine.low %v543_v58, %v547_v59  ;;  %v6114_v8 = vcombine.low %v544_v60, %v548_v61 }
  0xc5   : > { %v6121_v9 = vcombine.high %v551_v3, %v555_v4  ;;  %v6123_v10 = vcombine.high %v552_v5, %v556_v6  ;;  %v559_v11 = vld [vmem:[#allocation11 + $0x440] sm:$0xff]  ;;  %v6122_v19 = vcombine.low %v552_v5, %v556_v6  ;;  %v425_v6 = vld [vmem:[#allocation11 + $0x10] sm:$0xff] }
  0xc6   : > { %v563_v12 = vld [vmem:[#allocation11 + $0x460] sm:$0xff] }
  0xc7   : > { %1608 = vmatpush1.bf16.msra.mxu0 %v6056_v13  ;;  %1694 = vmatpush1.bf16.msra.mxu1 %v6058_v14  ;;  %v7328_v13 = vld [vmem:[%s7306_s18] ss:$12 sps:$4 sm:$0xff]   ;;  %v567_v17 = vld [vmem:[#allocation11 + $0x480] sm:$0xff]  ;;  %v6129_v20 = vcombine.high %v559_v11, %v563_v12 }
  0xc8   : > { %1609 = vmatprep.subr.bf16.mxu0 %v6065_v15  ;;  %1695 = vmatprep.subr.bf16.mxu1 %v6067_v16  ;;  %v560_v14 = vld [vmem:[#allocation11 + $0x448] sm:$0xff]  ;;  %v6120_v16 = vcombine.low %v551_v3, %v555_v4  ;;  %v571_v18 = vld [vmem:[#allocation11 + $0x4a0] sm:$0xff] }
  0xc9   : > { %v564_v15 = vld [vmem:[#allocation11 + $0x468] sm:$0xff]  ;;  %v6137_v26 = vcombine.high %v567_v17, %v571_v18  ;;  %v575_v28 = vld [vmem:[#allocation11 + $0x4c0] sm:$0xff] }
  0xca   : > { %v6130_v25 = vcombine.low %v560_v14, %v564_v15  ;;  %v583_v36 = vld [vmem:[#allocation11 + $0x500] sm:$0xff] }
  0xcb   : > { %1610 = vmatpush1.bf16.msra.mxu0 %v6064_v21  ;;  %1696 = vmatpush1.bf16.msra.mxu1 %v6066_v22  ;;  %v6131_v21 = vcombine.high %v560_v14, %v564_v15  ;;  %v568_v22 = vld [vmem:[#allocation11 + $0x488] sm:$0xff]  ;;  %v591_v44 = vld [vmem:[#allocation11 + $0x540] sm:$0xff]  ;;  %v433_v14 = vld [vmem:[#allocation11 + $0x50] sm:$0xff] }
  0xcc   : > { %1611 = vmatprep.subr.bf16.mxu0 %v6073_v23  ;;  %1697 = vmatprep.subr.bf16.mxu1 %v6075_v24  ;;  %v572_v23 = vld [vmem:[#allocation11 + $0x4a8] sm:$0xff]  ;;  %v6128_v24 = vcombine.low %v559_v11, %v563_v12  ;;  %v599_v52 = vld [vmem:[#allocation11 + $0x580] sm:$0xff]  ;;  %v437_v15 = vld [vmem:[#allocation11 + $0x70] sm:$0xff] }
  0xcd   : > { %v6139_v27 = vcombine.high %v568_v22, %v572_v23  ;;  %v6138_v33 = vcombine.low %v568_v22, %v572_v23  ;;  %v607_v61 = vld [vmem:[#allocation11 + $0x5c0] sm:$0xff]  ;;  %v441_v23 = vld [vmem:[#allocation11 + $0x90] sm:$0xff] }
  0xcf   : > { %1612 = vmatpush1.bf16.msra.mxu0 %v6072_v29  ;;  %1698 = vmatpush1.bf16.msra.mxu1 %v6074_v30  ;;  %v579_v29 = vld [vmem:[#allocation11 + $0x4e0] sm:$0xff]  ;;  %v576_v30 = vld [vmem:[#allocation11 + $0x4c8] sm:$0xff] }
  0xd0   : > { %1613 = vmatprep.subr.bf16.mxu0 %v6081_v31  ;;  %1699 = vmatprep.subr.bf16.mxu1 %v6083_v32  ;;  %v580_v31 = vld [vmem:[#allocation11 + $0x4e8] sm:$0xff]  ;;  %v6136_v32 = vcombine.low %v567_v17, %v571_v18  ;;  %v6145_v34 = vcombine.high %v575_v28, %v579_v29  ;;  %v7335_v17 = vld [vmem:[%s7306_s18 + $0x8] ss:$12 sps:$4 sm:$0xff]   ;;  %s5849_s18 = scalar_lea.sflag [#allocation8], %s7294_s2 }
  0xd1   : > { %v6147_v35 = vcombine.high %v576_v30, %v580_v31  ;;  %v6146_v41 = vcombine.low %v576_v30, %v580_v31  ;;  %v434_v18 = vld [vmem:[#allocation11 + $0x58] sm:$0xff]  ;;  %v449_v31 = vld [vmem:[#allocation11 + $0xd0] sm:$0xff] }
  0xd3   : > { %1614 = vmatpush1.bf16.msra.mxu0 %v6080_v37  ;;  %1700 = vmatpush1.bf16.msra.mxu1 %v6082_v38  ;;  %v587_v37 = vld [vmem:[#allocation11 + $0x520] sm:$0xff]  ;;  %v584_v38 = vld [vmem:[#allocation11 + $0x508] sm:$0xff] }
  0xd4   : > { %1615 = vmatprep.subr.bf16.mxu0 %v6089_v39  ;;  %1701 = vmatprep.subr.bf16.mxu1 %v6091_v40  ;;  %v588_v39 = vld [vmem:[#allocation11 + $0x528] sm:$0xff]  ;;  %v6144_v40 = vcombine.low %v575_v28, %v579_v29  ;;  %v6153_v42 = vcombine.high %v583_v36, %v587_v37  ;;  %v6004_v28 = vcombine.low %v433_v14, %v437_v15 }
  0xd5   : > { %v6155_v43 = vcombine.high %v584_v38, %v588_v39  ;;  %v6154_v49 = vcombine.low %v584_v38, %v588_v39  ;;  %v457_v39 = vld [vmem:[#allocation11 + $0x110] sm:$0xff] }
  0xd7   : > { %1616 = vmatpush1.bf16.msra.mxu0 %v6088_v45  ;;  %1702 = vmatpush1.bf16.msra.mxu1 %v6090_v46  ;;  %v595_v45 = vld [vmem:[#allocation11 + $0x560] sm:$0xff]  ;;  %v592_v46 = vld [vmem:[#allocation11 + $0x548] sm:$0xff] }
  0xd8   : > { %1617 = vmatprep.subr.bf16.mxu0 %v6097_v47  ;;  %1703 = vmatprep.subr.bf16.mxu1 %v6099_v48  ;;  %v596_v47 = vld [vmem:[#allocation11 + $0x568] sm:$0xff]  ;;  %v6152_v48 = vcombine.low %v583_v36, %v587_v37  ;;  %v6161_v50 = vcombine.high %v591_v44, %v595_v45 }
  0xd9   : > { %v6163_v51 = vcombine.high %v592_v46, %v596_v47  ;;  %v6162_v58 = vcombine.low %v592_v46, %v596_v47  ;;  %v465_v47 = vld [vmem:[#allocation11 + $0x150] sm:$0xff] }
  0xdb   : > { %1618 = vmatpush1.bf16.msra.mxu0 %v6096_v53  ;;  %1704 = vmatpush1.bf16.msra.mxu1 %v6098_v54  ;;  %v603_v53 = vld [vmem:[#allocation11 + $0x5a0] sm:$0xff]  ;;  %v600_v54 = vld [vmem:[#allocation11 + $0x588] sm:$0xff] }
  0xdc   : > { %1619 = vmatprep.subr.bf16.mxu0 %v6105_v55  ;;  %1705 = vmatprep.subr.bf16.mxu1 %v6107_v56  ;;  %v604_v55 = vld [vmem:[#allocation11 + $0x5a8] sm:$0xff]  ;;  %v6160_v56 = vcombine.low %v591_v44, %v595_v45  ;;  %v6169_v59 = vcombine.high %v599_v52, %v603_v53 }
  0xdd   : > { %v6171_v60 = vcombine.high %v600_v54, %v604_v55  ;;  %v6170_v3 = vcombine.low %v600_v54, %v604_v55  ;;  %v473_v54 = vld [vmem:[#allocation11 + $0x190] sm:$0xff] }
  0xde   : > { %v477_v55 = vld [vmem:[#allocation11 + $0x1b0] sm:$0xff] }
  0xdf   : > { %1620 = vmatpush1.bf16.msra.mxu0 %v6104_v62  ;;  %1706 = vmatpush1.bf16.msra.mxu1 %v6106_v63  ;;  %v611_v62 = vld [vmem:[#allocation11 + $0x5e0] sm:$0xff]  ;;  %v608_v63 = vld [vmem:[#allocation11 + $0x5c8] sm:$0xff] }
  0xe0   : > { %1621 = vmatprep.subr.bf16.mxu0 %v6113_v1  ;;  %1707 = vmatprep.subr.bf16.mxu1 %v6115_v2  ;;  %v612_v1 = vld [vmem:[#allocation11 + $0x5e8] sm:$0xff]  ;;  %v6168_v2 = vcombine.low %v599_v52, %v603_v53  ;;  %v6177_v4 = vcombine.high %v607_v61, %v611_v62 }
  0xe1   : > { %v6179_v5 = vcombine.high %v608_v63, %v612_v1  ;;  %v6178_v11 = vcombine.low %v608_v63, %v612_v1  ;;  %v481_v63 = vld [vmem:[#allocation11 + $0x1d0] sm:$0xff] }
  0xe2   : > { %v485_v1 = vld [vmem:[#allocation11 + $0x1f0] sm:$0xff] }
  0xe3   : > { %1622 = vmatpush1.bf16.msra.mxu0 %v6112_v7  ;;  %1708 = vmatpush1.bf16.msra.mxu1 %v6114_v8  ;;  %v429_v7 = vld [vmem:[#allocation11 + $0x30] sm:$0xff]  ;;  %v426_v8 = vld [vmem:[#allocation11 + $0x18] sm:$0xff] }
  0xe4   : > { %1634 = vmatprep.subr.bf16.mxu0 %v6121_v9  ;;  %1720 = vmatprep.subr.bf16.mxu1 %v6123_v10  ;;  %v430_v9 = vld [vmem:[#allocation11 + $0x38] sm:$0xff]  ;;  %v6176_v10 = vcombine.low %v607_v61, %v611_v62  ;;  %v5997_v12 = vcombine.high %v425_v6, %v429_v7  ;;  %v6045_v61 = vcombine.high %v473_v54, %v477_v55 }
  0xe5   : > { %v5998_v22 = vcombine.low %v426_v8, %v430_v9 }
  0xe6   : > { %1624 = vmatmul.mubr.bf16.vlgmr.msra.gmra.mrb[0].mxu0 %v7328_v13  ;;  %1710 = vmatmul.mubr.bf16.vlgmr.msra.gmra.mrb[0].mxu1 %v7328_v13 }
  0xe7   : > { %1635 = vmatpush1.bf16.msra.mxu0 %v6120_v16  ;;  %1721 = vmatpush1.bf16.msra.mxu1 %v6122_v19  ;;  %v5999_v16 = vcombine.high %v426_v8, %v430_v9  ;;  %v438_v19 = vld [vmem:[#allocation11 + $0x78] sm:$0xff]  ;;  %v489_v8 = vld [vmem:[#allocation11 + $0x210] sm:$0xff] }
  0xe8   : > { %1636 = vmatprep.subr.bf16.mxu0 %v6129_v20  ;;  %1722 = vmatprep.subr.bf16.mxu1 %v6131_v21  ;;  %v5996_v20 = vcombine.low %v425_v6, %v429_v7  ;;  %v6005_v21 = vcombine.high %v433_v14, %v437_v15  ;;  %v6006_v30 = vcombine.low %v434_v18, %v438_v19  ;;  %v493_v9 = vld [vmem:[#allocation11 + $0x230] sm:$0xff] }
  0xe9   : > { %1666 = vmatprep.mubr.bf16.mxu0 %v9758_v0  ;;  %1752 = vmatprep.mubr.bf16.mxu1 %v9758_v0  ;;  %v6053_v6 = vcombine.high %v481_v63, %v485_v1  ;;  %v6052_v14 = vcombine.low %v481_v63, %v485_v1  ;;  %v6061_v15 = vcombine.high %v489_v8, %v493_v9 }
  0xeb   : > { %1637 = vmatpush1.bf16.msra.mxu0 %v6128_v24  ;;  %1723 = vmatpush1.bf16.msra.mxu1 %v6130_v25  ;;  %v445_v24 = vld [vmem:[#allocation11 + $0xb0] sm:$0xff]  ;;  %v6007_v25 = vcombine.high %v434_v18, %v438_v19 }
  0xec   : > { %1638 = vmatprep.subr.bf16.mxu0 %v6137_v26  ;;  %1724 = vmatprep.subr.bf16.mxu1 %v6139_v27  ;;  %v442_v26 = vld [vmem:[#allocation11 + $0x98] sm:$0xff]  ;;  %v6013_v29 = vcombine.high %v441_v23, %v445_v24  ;;  %v6012_v36 = vcombine.low %v441_v23, %v445_v24  ;;  %v497_v18 = vld [vmem:[#allocation11 + $0x250] sm:$0xff]  ;;  %v6060_v23 = vcombine.low %v489_v8, %v493_v9 }
  0xed   : > { %v446_v27 = vld [vmem:[#allocation11 + $0xb8] sm:$0xff]  ;;  %v501_v19 = vld [vmem:[#allocation11 + $0x270] sm:$0xff] }
  0xee   : > { %v6014_v38 = vcombine.low %v442_v26, %v446_v27  ;;  %v6069_v24 = vcombine.high %v497_v18, %v501_v19 }
  0xef   : > { %1639 = vmatpush1.bf16.msra.mxu0 %v6136_v32  ;;  %1725 = vmatpush1.bf16.msra.mxu1 %v6138_v33  ;;  %v453_v32 = vld [vmem:[#allocation11 + $0xf0] sm:$0xff]  ;;  %v6015_v33 = vcombine.high %v442_v26, %v446_v27 }
  0xf0   : > { %1640 = vmatprep.subr.bf16.mxu0 %v6145_v34  ;;  %1726 = vmatprep.subr.bf16.mxu1 %v6147_v35  ;;  %v450_v34 = vld [vmem:[#allocation11 + $0xd8] sm:$0xff]  ;;  %v6021_v37 = vcombine.high %v449_v31, %v453_v32  ;;  %v6020_v44 = vcombine.low %v449_v31, %v453_v32  ;;  %v505_v26 = vld [vmem:[#allocation11 + $0x290] sm:$0xff]  ;;  %v6068_v31 = vcombine.low %v497_v18, %v501_v19 }
  0xf1   : > { %v454_v35 = vld [vmem:[#allocation11 + $0xf8] sm:$0xff]  ;;  %v509_v27 = vld [vmem:[#allocation11 + $0x2b0] sm:$0xff] }
  0xf2   : > { %v6022_v46 = vcombine.low %v450_v34, %v454_v35  ;;  %v6077_v32 = vcombine.high %v505_v26, %v509_v27 }
  0xf3   : > { %1641 = vmatpush1.bf16.msra.mxu0 %v6144_v40  ;;  %1727 = vmatpush1.bf16.msra.mxu1 %v6146_v41  ;;  %v461_v40 = vld [vmem:[#allocation11 + $0x130] sm:$0xff]  ;;  %v6023_v41 = vcombine.high %v450_v34, %v454_v35 }
  0xf4   : > { %1642 = vmatprep.subr.bf16.mxu0 %v6153_v42  ;;  %1728 = vmatprep.subr.bf16.mxu1 %v6155_v43  ;;  %v458_v42 = vld [vmem:[#allocation11 + $0x118] sm:$0xff]  ;;  %v6029_v45 = vcombine.high %v457_v39, %v461_v40  ;;  %v513_v34 = vld [vmem:[#allocation11 + $0x2d0] sm:$0xff] }
  0xf5   : > { %v462_v43 = vld [vmem:[#allocation11 + $0x138] sm:$0xff]  ;;  %v517_v35 = vld [vmem:[#allocation11 + $0x2f0] sm:$0xff] }
  0xf6   : > { %v6030_v53 = vcombine.low %v458_v42, %v462_v43 }
  0xf7   : > { %1643 = vmatpush1.bf16.msra.mxu0 %v6152_v48  ;;  %1729 = vmatpush1.bf16.msra.mxu1 %v6154_v49  ;;  %v6031_v48 = vcombine.high %v458_v42, %v462_v43  ;;  %v466_v49 = vld [vmem:[#allocation11 + $0x158] sm:$0xff]  ;;  %v521_v42 = vld [vmem:[#allocation11 + $0x310] sm:$0xff] }
  0xf8   : > { %1644 = vmatprep.subr.bf16.mxu0 %v6161_v50  ;;  %1730 = vmatprep.subr.bf16.mxu1 %v6163_v51  ;;  %v470_v50 = vld [vmem:[#allocation11 + $0x178] sm:$0xff]  ;;  %v6028_v51 = vcombine.low %v457_v39, %v461_v40  ;;  %v6076_v39 = vcombine.low %v505_v26, %v509_v27  ;;  %v6085_v40 = vcombine.high %v513_v34, %v517_v35  ;;  %v525_v43 = vld [vmem:[#allocation11 + $0x330] sm:$0xff] }
  0xf9   : > { %v6038_v62 = vcombine.low %v466_v49, %v470_v50 }
  0xfb   : > { %1645 = vmatpush1.bf16.msra.mxu0 %v6160_v56  ;;  %1731 = vmatpush1.bf16.msra.mxu1 %v6162_v58  ;;  %v6039_v56 = vcombine.high %v466_v49, %v470_v50  ;;  %v474_v58 = vld [vmem:[#allocation11 + $0x198] sm:$0xff]  ;;  %v529_v49 = vld [vmem:[#allocation11 + $0x350] sm:$0xff] }
  0xfc   : > { %1646 = vmatprep.subr.bf16.mxu0 %v6169_v59  ;;  %1732 = vmatprep.subr.bf16.mxu1 %v6171_v60  ;;  %v478_v59 = vld [vmem:[#allocation11 + $0x1b8] sm:$0xff]  ;;  %v533_v50 = vld [vmem:[#allocation11 + $0x370] sm:$0xff] }
  0xfd   : > { %v6046_v7 = vcombine.low %v474_v58, %v478_v59  ;;  %v6100_v63 = vcombine.low %v529_v49, %v533_v50 }
  0xff   : > { %1647 = vmatpush1.bf16.msra.mxu0 %v6168_v2  ;;  %1733 = vmatpush1.bf16.msra.mxu1 %v6170_v3  ;;  %v6047_v2 = vcombine.high %v474_v58, %v478_v59  ;;  %v482_v3 = vld [vmem:[#allocation11 + $0x1d8] sm:$0xff]  ;;  %v537_v58 = vld [vmem:[#allocation11 + $0x390] sm:$0xff] }
 0x100   : > { %1648 = vmatprep.subr.bf16.mxu0 %v6177_v4  ;;  %1734 = vmatprep.subr.bf16.mxu1 %v6179_v5  ;;  %v486_v4 = vld [vmem:[#allocation11 + $0x1f8] sm:$0xff]  ;;  %v6044_v5 = vcombine.low %v473_v54, %v477_v55  ;;  %v6092_v54 = vcombine.low %v521_v42, %v525_v43  ;;  %v6101_v55 = vcombine.high %v529_v49, %v533_v50  ;;  %v541_v59 = vld [vmem:[#allocation11 + $0x3b0] sm:$0xff] }
 0x101   : > { %v6109_v1 = vcombine.high %v537_v58, %v541_v59  ;;  %v6108_v8 = vcombine.low %v537_v58, %v541_v59 }
 0x103   : > { %1649 = vmatpush1.bf16.msra.mxu0 %v6176_v10  ;;  %1735 = vmatpush1.bf16.msra.mxu1 %v6178_v11  ;;  %v6055_v10 = vcombine.high %v482_v3, %v486_v4  ;;  %v490_v11 = vld [vmem:[#allocation11 + $0x218] sm:$0xff] }
 0x104   : > { %1763 = vmatprep.subr.bf16.mxu0 %v5997_v12  ;;  %1849 = vmatprep.subr.bf16.mxu1 %v5999_v16  ;;  %v494_v12 = vld [vmem:[#allocation11 + $0x238] sm:$0xff]  ;;  %v6054_v16 = vcombine.low %v482_v3, %v486_v4  ;;  %v545_v3 = vld [vmem:[#allocation11 + $0x3d0] sm:$0xff] }
 0x105   : > { %v549_v4 = vld [vmem:[#allocation11 + $0x3f0] sm:$0xff] }
 0x106   : > { %1667 = vmatmul.mubr.bf16.vlgmr.msra.gmra.mrb[0].mxu0 %v7335_v17  ;;  %1753 = vmatmul.mubr.bf16.vlgmr.msra.gmra.mrb[0].mxu1 %v7335_v17  ;;  %v6117_v9 = vcombine.high %v545_v3, %v549_v4  ;;  %v6116_v18 = vcombine.low %v545_v3, %v549_v4  ;;  %v609_v4 = vld [vmem:[#allocation11 + $0x5d0] sm:$0xff] }
 0x107   : > { %1764 = vmatpush1.bf16.msra.mxu0 %v5996_v20  ;;  %1850 = vmatpush1.bf16.msra.mxu1 %v5998_v22  ;;  %v6063_v20 = vcombine.high %v490_v11, %v494_v12  ;;  %v502_v22 = vld [vmem:[#allocation11 + $0x278] sm:$0xff] }
 0x108   : > { %1765 = vmatprep.subr.bf16.mxu0 %v6005_v21  ;;  %1851 = vmatprep.subr.bf16.mxu1 %v6007_v25  ;;  %v498_v21 = vld [vmem:[#allocation11 + $0x258] sm:$0xff]  ;;  %v6062_v25 = vcombine.low %v490_v11, %v494_v12  ;;  %v553_v11 = vld [vmem:[#allocation11 + $0x410] sm:$0xff] }
 0x109   : > { %1795 = vmatprep.mubr.bf16.mxu0 %v7323_v57  ;;  %1881 = vmatprep.mubr.bf16.mxu1 %v7323_v57  ;;  %v469_v57 = vld [vmem:[#allocation11 + $0x170] sm:$0xff] }
 0x10a   : > { %v6037_v52 = vcombine.high %v465_v47, %v469_v57  ;;  %v6036_v60 = vcombine.low %v465_v47, %v469_v57  ;;  %v6084_v47 = vcombine.low %v513_v34, %v517_v35  ;;  %v6093_v57 = vcombine.high %v521_v42, %v525_v43  ;;  %v557_v12 = vld [vmem:[#allocation11 + $0x430] sm:$0xff] }
 0x10b   : > { %1766 = vmatpush1.bf16.msra.mxu0 %v6004_v28  ;;  %1852 = vmatpush1.bf16.msra.mxu1 %v6006_v30  ;;  %v6071_v28 = vcombine.high %v498_v21, %v502_v22  ;;  %v510_v30 = vld [vmem:[#allocation11 + $0x2b8] sm:$0xff]  ;;  %v6125_v19 = vcombine.high %v553_v11, %v557_v12  ;;  %v6124_v26 = vcombine.low %v553_v11, %v557_v12 }
 0x10c   : > { %1767 = vmatprep.subr.bf16.mxu0 %v6013_v29  ;;  %1853 = vmatprep.subr.bf16.mxu1 %v6015_v33  ;;  %v506_v29 = vld [vmem:[#allocation11 + $0x298] sm:$0xff]  ;;  %v6070_v33 = vcombine.low %v498_v21, %v502_v22  ;;  %v561_v21 = vld [vmem:[#allocation11 + $0x450] sm:$0xff] }
 0x10d   : > { %v565_v22 = vld [vmem:[#allocation11 + $0x470] sm:$0xff]  ;;  %v1936_v12 = vld [vmem:[%s7298_s21 + $0x8] sm:$0xff] }
 0x10e   : > { %v6133_v27 = vcombine.high %v561_v21, %v565_v22  ;;  %v6132_v34 = vcombine.low %v561_v21, %v565_v22  ;;  %1953 = vst [vmem:[#allocation2 + $0x10] sm:$0xf] %v1936_v12  ;;  %v7020_v21 = vmov 0.0  }
 0x10f   : > { %1768 = vmatpush1.bf16.msra.mxu0 %v6012_v36  ;;  %1854 = vmatpush1.bf16.msra.mxu1 %v6014_v38  ;;  %v6079_v36 = vcombine.high %v506_v29, %v510_v30  ;;  %v518_v38 = vld [vmem:[#allocation11 + $0x2f8] sm:$0xff]  ;;  %2048 = vst [vmem:[#allocation2 + $0x80] sm:$0xf0] %v7020_v21  ;;  %2049 = vst [vmem:[#allocation2 + $0x88] sm:$0xf0] %v7020_v21 }
 0x110   : > { %1769 = vmatprep.subr.bf16.mxu0 %v6021_v37  ;;  %1855 = vmatprep.subr.bf16.mxu1 %v6023_v41  ;;  %v514_v37 = vld [vmem:[#allocation11 + $0x2d8] sm:$0xff]  ;;  %v6078_v41 = vcombine.low %v506_v29, %v510_v30  ;;  %v569_v29 = vld [vmem:[#allocation11 + $0x490] sm:$0xff]  ;;  %2050 = vst [vmem:[#allocation2 + $0x90] sm:$0xf0] %v7020_v21  ;;  %2051 = vst [vmem:[#allocation2 + $0x98] sm:$0xf0] %v7020_v21 }
 0x111   : > { %v573_v30 = vld [vmem:[#allocation11 + $0x4b0] sm:$0xff]  ;;  %2052 = vst [vmem:[#allocation2 + $0xa0] sm:$0xf0] %v7020_v21  ;;  %2053 = vst [vmem:[#allocation2 + $0xa8] sm:$0xf0] %v7020_v21 }
 0x112   : > { %v6141_v35 = vcombine.high %v569_v29, %v573_v30  ;;  %v6140_v42 = vcombine.low %v569_v29, %v573_v30  ;;  %2054 = vst [vmem:[#allocation2 + $0xb0] sm:$0xf0] %v7020_v21  ;;  %2055 = vst [vmem:[#allocation2 + $0xb8] sm:$0xf0] %v7020_v21 }
 0x113   : > { %1770 = vmatpush1.bf16.msra.mxu0 %v6020_v44  ;;  %1856 = vmatpush1.bf16.msra.mxu1 %v6022_v46  ;;  %v6087_v44 = vcombine.high %v514_v37, %v518_v38  ;;  %v526_v46 = vld [vmem:[#allocation11 + $0x338] sm:$0xff] }
 0x114   : > { %1771 = vmatprep.subr.bf16.mxu0 %v6029_v45  ;;  %1857 = vmatprep.subr.bf16.mxu1 %v6031_v48  ;;  %v522_v45 = vld [vmem:[#allocation11 + $0x318] sm:$0xff]  ;;  %v6086_v48 = vcombine.low %v514_v37, %v518_v38  ;;  %v577_v37 = vld [vmem:[#allocation11 + $0x4d0] sm:$0xff] }
 0x115   : > { %v581_v38 = vld [vmem:[#allocation11 + $0x4f0] sm:$0xff] }
 0x116   : > { %v6149_v43 = vcombine.high %v577_v37, %v581_v38 }
 0x117   : > { %1772 = vmatpush1.bf16.msra.mxu0 %v6028_v51  ;;  %1858 = vmatpush1.bf16.msra.mxu1 %v6030_v53  ;;  %v6095_v51 = vcombine.high %v522_v45, %v526_v46  ;;  %v534_v53 = vld [vmem:[#allocation11 + $0x378] sm:$0xff] }
 0x118   : > { %1773 = vmatprep.subr.bf16.mxu0 %v6037_v52  ;;  %1859 = vmatprep.subr.bf16.mxu1 %v6039_v56  ;;  %v530_v52 = vld [vmem:[#allocation11 + $0x358] sm:$0xff]  ;;  %v6094_v56 = vcombine.low %v522_v45, %v526_v46  ;;  %v589_v45 = vld [vmem:[#allocation11 + $0x530] sm:$0xff] }
 0x11b   : > { %1774 = vmatpush1.bf16.msra.mxu0 %v6036_v60  ;;  %1860 = vmatpush1.bf16.msra.mxu1 %v6038_v62  ;;  %v6103_v60 = vcombine.high %v530_v52, %v534_v53  ;;  %v542_v62 = vld [vmem:[#allocation11 + $0x3b8] sm:$0xff] }
 0x11c   : > { %1775 = vmatprep.subr.bf16.mxu0 %v6045_v61  ;;  %1861 = vmatprep.subr.bf16.mxu1 %v6047_v2  ;;  %v538_v61 = vld [vmem:[#allocation11 + $0x398] sm:$0xff]  ;;  %v6102_v2 = vcombine.low %v530_v52, %v534_v53  ;;  %v597_v52 = vld [vmem:[#allocation11 + $0x570] sm:$0xff] }
 0x11f   : > { %1776 = vmatpush1.bf16.msra.mxu0 %v6044_v5  ;;  %1862 = vmatpush1.bf16.msra.mxu1 %v6046_v7  ;;  %v6111_v5 = vcombine.high %v538_v61, %v542_v62  ;;  %v550_v7 = vld [vmem:[#allocation11 + $0x3f8] sm:$0xff] }
 0x120   : > { %1777 = vmatprep.subr.bf16.mxu0 %v6053_v6  ;;  %1863 = vmatprep.subr.bf16.mxu1 %v6055_v10  ;;  %v546_v6 = vld [vmem:[#allocation11 + $0x3d8] sm:$0xff]  ;;  %v6110_v10 = vcombine.low %v538_v61, %v542_v62  ;;  %v605_v61 = vld [vmem:[#allocation11 + $0x5b0] sm:$0xff] }
 0x123   : > { %1778 = vmatpush1.bf16.msra.mxu0 %v6052_v14  ;;  %1864 = vmatpush1.bf16.msra.mxu1 %v6054_v16  ;;  %v6119_v14 = vcombine.high %v546_v6, %v550_v7  ;;  %v558_v16 = vld [vmem:[#allocation11 + $0x438] sm:$0xff] }
 0x124   : > { %1779 = vmatprep.subr.bf16.mxu0 %v6061_v15  ;;  %1865 = vmatprep.subr.bf16.mxu1 %v6063_v20  ;;  %v554_v15 = vld [vmem:[#allocation11 + $0x418] sm:$0xff]  ;;  %v6118_v20 = vcombine.low %v546_v6, %v550_v7 }
 0x127   : > { %1780 = vmatpush1.bf16.msra.mxu0 %v6060_v23  ;;  %1866 = vmatpush1.bf16.msra.mxu1 %v6062_v25  ;;  %v6127_v23 = vcombine.high %v554_v15, %v558_v16  ;;  %v566_v25 = vld [vmem:[#allocation11 + $0x478] sm:$0xff] }
 0x128   : > { %1781 = vmatprep.subr.bf16.mxu0 %v6069_v24  ;;  %1867 = vmatprep.subr.bf16.mxu1 %v6071_v28  ;;  %v562_v24 = vld [vmem:[#allocation11 + $0x458] sm:$0xff]  ;;  %v6126_v28 = vcombine.low %v554_v15, %v558_v16 }
 0x12b   : > { %1782 = vmatpush1.bf16.msra.mxu0 %v6068_v31  ;;  %1868 = vmatpush1.bf16.msra.mxu1 %v6070_v33  ;;  %v6135_v31 = vcombine.high %v562_v24, %v566_v25  ;;  %v574_v33 = vld [vmem:[#allocation11 + $0x4b8] sm:$0xff] }
 0x12c   : > { %1783 = vmatprep.subr.bf16.mxu0 %v6077_v32  ;;  %1869 = vmatprep.subr.bf16.mxu1 %v6079_v36  ;;  %v570_v32 = vld [vmem:[#allocation11 + $0x498] sm:$0xff]  ;;  %v6134_v36 = vcombine.low %v562_v24, %v566_v25 }
 0x12f   : > { %1784 = vmatpush1.bf16.msra.mxu0 %v6076_v39  ;;  %1870 = vmatpush1.bf16.msra.mxu1 %v6078_v41  ;;  %v6143_v39 = vcombine.high %v570_v32, %v574_v33  ;;  %v582_v41 = vld [vmem:[#allocation11 + $0x4f8] sm:$0xff] }
 0x130   : > { %1785 = vmatprep.subr.bf16.mxu0 %v6085_v40  ;;  %1871 = vmatprep.subr.bf16.mxu1 %v6087_v44  ;;  %v578_v40 = vld [vmem:[#allocation11 + $0x4d8] sm:$0xff]  ;;  %v585_v44 = vld [vmem:[#allocation11 + $0x510] sm:$0xff] }
 0x131   : > { %v6151_v46 = vcombine.high %v578_v40, %v582_v41  ;;  %v6157_v49 = vcombine.high %v585_v44, %v589_v45  ;;  %v6150_v50 = vcombine.low %v578_v40, %v582_v41 }
 0x133   : > { %1786 = vmatpush1.bf16.msra.mxu0 %v6084_v47  ;;  %1872 = vmatpush1.bf16.msra.mxu1 %v6086_v48  ;;  %v586_v47 = vld [vmem:[#allocation11 + $0x518] sm:$0xff]  ;;  %v6148_v48 = vcombine.low %v577_v37, %v581_v38 }
 0x134   : > { %1787 = vmatprep.subr.bf16.mxu0 %v6093_v57  ;;  %1873 = vmatprep.subr.bf16.mxu1 %v6095_v51  ;;  %v590_v57 = vld [vmem:[#allocation11 + $0x538] sm:$0xff]  ;;  %v593_v51 = vld [vmem:[#allocation11 + $0x550] sm:$0xff] }
 0x135   : > { %v6159_v53 = vcombine.high %v586_v47, %v590_v57  ;;  %v6165_v58 = vcombine.high %v593_v51, %v597_v52  ;;  %v6158_v59 = vcombine.low %v586_v47, %v590_v57 }
 0x137   : > { %1788 = vmatpush1.bf16.msra.mxu0 %v6092_v54  ;;  %1874 = vmatpush1.bf16.msra.mxu1 %v6094_v56  ;;  %v594_v54 = vld [vmem:[#allocation11 + $0x558] sm:$0xff]  ;;  %v6156_v56 = vcombine.low %v585_v44, %v589_v45 }
 0x138   : > { %1789 = vmatprep.subr.bf16.mxu0 %v6101_v55  ;;  %1875 = vmatprep.subr.bf16.mxu1 %v6103_v60  ;;  %v598_v55 = vld [vmem:[#allocation11 + $0x578] sm:$0xff]  ;;  %v601_v60 = vld [vmem:[#allocation11 + $0x590] sm:$0xff] }
 0x139   : > { %v6167_v62 = vcombine.high %v594_v54, %v598_v55  ;;  %v6173_v3 = vcombine.high %v601_v60, %v605_v61  ;;  %v6166_v6 = vcombine.low %v594_v54, %v598_v55 }
 0x13b   : > { %1790 = vmatpush1.bf16.msra.mxu0 %v6100_v63  ;;  %1876 = vmatpush1.bf16.msra.mxu1 %v6102_v2  ;;  %v602_v63 = vld [vmem:[#allocation11 + $0x598] sm:$0xff]  ;;  %v6164_v2 = vcombine.low %v593_v51, %v597_v52 }
 0x13c   : > { %1791 = vmatprep.subr.bf16.mxu0 %v6109_v1  ;;  %1877 = vmatprep.subr.bf16.mxu1 %v6111_v5  ;;  %v606_v1 = vld [vmem:[#allocation11 + $0x5b8] sm:$0xff]  ;;  %v613_v5 = vld [vmem:[#allocation11 + $0x5f0] sm:$0xff] }
 0x13d   : > { %v6175_v7 = vcombine.high %v602_v63, %v606_v1  ;;  %v6181_v11 = vcombine.high %v609_v4, %v613_v5  ;;  %v6174_v15 = vcombine.low %v602_v63, %v606_v1 }
 0x13f   : > { %1792 = vmatpush1.bf16.msra.mxu0 %v6108_v8  ;;  %1878 = vmatpush1.bf16.msra.mxu1 %v6110_v10  ;;  %v610_v8 = vld [vmem:[#allocation11 + $0x5d8] sm:$0xff]  ;;  %v6172_v10 = vcombine.low %v601_v60, %v605_v61 }
 0x140   : > { %1793 = vmatprep.subr.bf16.mxu0 %v6117_v9  ;;  %1879 = vmatprep.subr.bf16.mxu1 %v6119_v14  ;;  %v614_v9 = vld [vmem:[#allocation11 + $0x5f8] sm:$0xff]  ;;  %v1935_v14 = vld [vmem:[%s7298_s21] sm:$0xff] }
 0x141   : > { %1951 = vst [vmem:[#allocation2] sm:$0xf] %v1935_v14  ;;  %v1943_v16 = vcombine.high %v1935_v14, %v1935_v14  ;;  %v6182_v22 = vcombine.low %v610_v8, %v614_v9 }
 0x143   : > { %1794 = vmatpush1.bf16.msra.mxu0 %v6116_v18  ;;  %1880 = vmatpush1.bf16.msra.mxu1 %v6118_v20  ;;  %v1944_v18 = vcombine.high %v1936_v12, %v1936_v12  ;;  %1952 = vst [vmem:[#allocation2 + $0x8] sm:$0xf] %v1943_v16  ;;  %v6180_v20 = vcombine.low %v609_v4, %v613_v5 }
 0x144   : > { %1806 = vmatprep.subr.bf16.mxu0 %v6125_v19  ;;  %1892 = vmatprep.subr.bf16.mxu1 %v6127_v23  ;;  %v6183_v19 = vcombine.high %v610_v8, %v614_v9 }
 0x145   : > { %1954 = vst [vmem:[#allocation2 + $0x18] sm:$0xf] %v1944_v18 }
 0x146   : > { %1796 = vmatmul.mubr.bf16.vlgmr.msra.gmra.mrb[4].mxu0 %v7328_v13  ;;  %1882 = vmatmul.mubr.bf16.vlgmr.msra.gmra.mrb[4].mxu1 %v7328_v13  ;;  %v6142_v13 = vcombine.low %v570_v32, %v574_v33 }
 0x147   : > { %1807 = vmatpush1.bf16.msra.mxu0 %v6124_v26  ;;  %1893 = vmatpush1.bf16.msra.mxu1 %v6126_v28 }
 0x148   : > { %1808 = vmatprep.subr.bf16.mxu0 %v6133_v27  ;;  %1894 = vmatprep.subr.bf16.mxu1 %v6135_v31 }
 0x149   : > { %1838 = vmatprep.mubr.bf16.mxu0 %v9758_v0  ;;  %1924 = vmatprep.mubr.bf16.mxu1 %v9758_v0 }
 0x14b   : > { %1809 = vmatpush1.bf16.msra.mxu0 %v6132_v34  ;;  %1895 = vmatpush1.bf16.msra.mxu1 %v6134_v36 }
 0x14c   : > { %1810 = vmatprep.subr.bf16.mxu0 %v6141_v35  ;;  %1896 = vmatprep.subr.bf16.mxu1 %v6143_v39 }
 0x14f   : > { %1811 = vmatpush1.bf16.msra.mxu0 %v6140_v42  ;;  %1897 = vmatpush1.bf16.msra.mxu1 %v6142_v13  ;;  %v1937_v13 = vld [vmem:[%s7298_s21 + $0x10] sm:$0xff] }
 0x150   : > { %1812 = vmatprep.subr.bf16.mxu0 %v6149_v43  ;;  %1898 = vmatprep.subr.bf16.mxu1 %v6151_v46  ;;  %1955 = vst [vmem:[#allocation2 + $0x20] sm:$0xf] %v1937_v13  ;;  %v1945_v44 = vcombine.high %v1937_v13, %v1937_v13  ;;  %v1938_v46 = vld [vmem:[%s7298_s21 + $0x18] sm:$0xff]  ;;  %s5863_s21 = sshll.u32 %s9691_s20, 4  ;;  %s9701_s21 = int_to_ptr.vmem [resolvable:$true] %s5863_s21 }
 0x151   : > { %1957 = vst [vmem:[#allocation2 + $0x30] sm:$0xf] %v1938_v46  ;;  %v1946_v47 = vcombine.high %v1938_v46, %v1938_v46 }
 0x152   : > { %1956 = vst [vmem:[#allocation2 + $0x28] sm:$0xf] %v1945_v44 }
 0x153   : > { %1813 = vmatpush1.bf16.msra.mxu0 %v6148_v48  ;;  %1899 = vmatpush1.bf16.msra.mxu1 %v6150_v50  ;;  %1958 = vst [vmem:[#allocation2 + $0x38] sm:$0xf] %v1946_v47 }
 0x154   : > { %1814 = vmatprep.subr.bf16.mxu0 %v6157_v49  ;;  %1900 = vmatprep.subr.bf16.mxu1 %v6159_v53 }
 0x157   : > { %1815 = vmatpush1.bf16.msra.mxu0 %v6156_v56  ;;  %1901 = vmatpush1.bf16.msra.mxu1 %v6158_v59 }
 0x158   : > { %1816 = vmatprep.subr.bf16.mxu0 %v6165_v58  ;;  %1902 = vmatprep.subr.bf16.mxu1 %v6167_v62 }
 0x15b   : > { %1817 = vmatpush1.bf16.msra.mxu0 %v6164_v2  ;;  %1903 = vmatpush1.bf16.msra.mxu1 %v6166_v6 }
 0x15c   : > { %1818 = vmatprep.subr.bf16.mxu0 %v6173_v3  ;;  %1904 = vmatprep.subr.bf16.mxu1 %v6175_v7 }
 0x15f   : > { %1819 = vmatpush1.bf16.msra.mxu0 %v6172_v10  ;;  %1905 = vmatpush1.bf16.msra.mxu1 %v6174_v15 }
 0x160   : > { %1820 = vmatprep.subr.bf16.mxu0 %v6181_v11  ;;  %1906 = vmatprep.subr.bf16.mxu1 %v6183_v19 }
 0x163   : > { %1821 = vmatpush1.bf16.msra.mxu0 %v6180_v20  ;;  %1907 = vmatpush1.bf16.msra.mxu1 %v6182_v22 }
 0x166   : > { %1839 = vmatmul.mubr.bf16.vlgmr.msra.gmra.mrb[4].mxu0 %v7335_v17  ;;  %1925 = vmatmul.mubr.bf16.vlgmr.msra.gmra.mrb[4].mxu1 %v7335_v17 }
 0x1d9   : > { %v1668_v23 = vpop.f32.mrb[0].mxu0  ;;  %v1754_v25 = vpop.f32.mrb[0].mxu1 }
 0x1da   : > { %v1976_v24 = vrot.slane %v1668_v23, 4  ;;  %v1670_v26 = vpop.f32.mrb[1].mxu0  ;;  %v1978_v27 = vrot.slane %v1754_v25, 4  ;;  %v1756_v29 = vpop.f32.mrb[1].mxu1 }
 0x1db   : > { %v1977_v28 = vrot.slane %v1670_v26, 4  ;;  %v1672_v30 = vpop.f32.mrb[2].mxu0  ;;  %v1979_v31 = vrot.slane %v1756_v29, 4  ;;  %v1758_v33 = vpop.f32.mrb[2].mxu1 }
 0x1dc   : > { %2024 = vst [vmem:[#allocation2] sm:$0xf0] %v1976_v24  ;;  %v1984_v32 = vrot.slane %v1672_v30, 4  ;;  %v1674_v34 = vpop.f32.mrb[3].mxu0  ;;  %2026 = vst [vmem:[#allocation2 + $0x10] sm:$0xf0] %v1978_v27 }
 0x1dd   : > { %2025 = vst [vmem:[#allocation2 + $0x8] sm:$0xf0] %v1977_v28  ;;  %v1988_v35 = vrot.slane %v1758_v33, 4  ;;  %v1986_v36 = vrot.slane %v1674_v34, 4  ;;  %v1760_v37 = vpop.f32.mrb[3].mxu1 }
 0x1de   : > { %2027 = vst [vmem:[#allocation2 + $0x18] sm:$0xf0] %v1979_v31  ;;  %v7350_v17 = vsel %vm1975_vm0, %v1976_v24, %v1984_v32  ;;  %2040 = vst [vmem:[#allocation2 + $0x80] sm:$0xf] %v1984_v32  ;;  %v1990_v38 = vrot.slane %v1760_v37, 4 }
 0x1df   : > { %2032 = vst [vmem:[#allocation2 + $0x40] sm:$0xff] %v7350_v17  ;;  %v7354_v39 = vsel %vm1975_vm0, %v1978_v27, %v1988_v35  ;;  %2042 = vst [vmem:[#allocation2 + $0x90] sm:$0xf] %v1988_v35  ;;  %v7357_v40 = vsel %vm1975_vm0, %v1977_v28, %v1986_v36 }
 0x1e0   : > { %2041 = vst [vmem:[#allocation2 + $0x88] sm:$0xf] %v1986_v36  ;;  %2033 = vst [vmem:[#allocation2 + $0x48] sm:$0xff] %v7357_v40  ;;  %v7361_v41 = vsel %vm1975_vm0, %v1979_v31, %v1990_v38 }
 0x1e1   : > { %2043 = vst [vmem:[#allocation2 + $0x98] sm:$0xf] %v1990_v38 }
 0x1e3   : > { %v2056_v42 = vld [vmem:[#allocation2] sm:$0xff]  ;;  %v7363_v43 = vld [vmem:[#allocation2 + $0x10] sm:$0xff] }
 0x1e4   : > { %2080 = vrot.lane.b32.xlu0 %v2056_v42, %s7021_s15  ;;  %3113 = vrot.lane.b32.xlu1 %v7363_v43, %s7022_s29  ;;  %v2057_v45 = vld [vmem:[#allocation2 + $0x8] sm:$0xff] }
 0x1e5   : > { %v7389_v57 = vld [vmem:[#allocation2 + $0x18] sm:$0xff]  ;;  %v2072_v48 = vld [vmem:[#allocation2 + $0x80] sm:$0xff] }
 0x1e6   : > { %v7419_v49 = vld [vmem:[#allocation2 + $0x90] sm:$0xff] }
 0x1e7   : > { %9968 = vst [vmem:[#allocation22_spill] sm:$0xff] %v7419_v49  ;;  %v2073_v8 = vld [vmem:[#allocation2 + $0x88] sm:$0xff] }
 0x1e8   : > { %2092 = vrot.lane.b32.xlu0 %v7363_v43, %s7021_s15  ;;  %3345 = vrot.lane.b32.xlu1 %v7363_v43, %s7023_s25  ;;  %v7464_v9 = vld [vmem:[#allocation2 + $0x98] sm:$0xff] }
 0x1ec   : > { %2313 = vrot.lane.b32.xlu0 %v2056_v42, %s7024_s14  ;;  %3333 = vrot.lane.b32.xlu1 %v2056_v42, %s7023_s25 }
 0x1f0   : > { %2325 = vrot.lane.b32.xlu0 %v7363_v43, %s7024_s14  ;;  %3809 = vrot.lane.b32.xlu1 %v7363_v43, %s7025_s19 }
 0x1f4   : > { %2545 = vrot.lane.b32.xlu0 %v2056_v42, %s7026_s22  ;;  %3797 = vrot.lane.b32.xlu1 %v2056_v42, %s7025_s19 }
 0x1f8   : > { %2557 = vrot.lane.b32.xlu0 %v7363_v43, %s7026_s22  ;;  %2086 = vrot.lane.b32.xlu1 %v2057_v45, %s7021_s15 }
 0x1fc   : > { %2777 = vrot.lane.b32.xlu0 %v2056_v42, %s7027_s26  ;;  %2319 = vrot.lane.b32.xlu1 %v2057_v45, %s7024_s14 }
 0x200   : > { %2789 = vrot.lane.b32.xlu0 %v7363_v43, %s7027_s26  ;;  %2331 = vrot.lane.b32.xlu1 %v7389_v57, %s7024_s14 }
 0x204   : > { %3101 = vrot.lane.b32.xlu0 %v2056_v42, %s7022_s29  ;;  %2783 = vrot.lane.b32.xlu1 %v2057_v45, %s7027_s26 }
 0x208   : > { %3577 = vrot.lane.b32.xlu0 %v7363_v43, %s7028_s27  ;;  %2795 = vrot.lane.b32.xlu1 %v7389_v57, %s7027_s26 }
 0x20c   : > { %3565 = vrot.lane.b32.xlu0 %v2056_v42, %s7028_s27  ;;  %3339 = vrot.lane.b32.xlu1 %v2057_v45, %s7023_s25 }
 0x210   : > { %2098 = vrot.lane.b32.xlu0 %v7389_v57, %s7021_s15  ;;  %3351 = vrot.lane.b32.xlu1 %v7389_v57, %s7023_s25 }
 0x214   : > { %2551 = vrot.lane.b32.xlu0 %v2057_v45, %s7026_s22  ;;  %3571 = vrot.lane.b32.xlu1 %v2057_v45, %s7028_s27 }
 0x218   : > { %2563 = vrot.lane.b32.xlu0 %v7389_v57, %s7026_s22  ;;  %3583 = vrot.lane.b32.xlu1 %v7389_v57, %s7028_s27 }
 0x21c   : > { %3107 = vrot.lane.b32.xlu0 %v2057_v45, %s7022_s29  ;;  %3803 = vrot.lane.b32.xlu1 %v2057_v45, %s7025_s19 }
 0x220   : > { %3119 = vrot.lane.b32.xlu0 %v7389_v57, %s7022_s29  ;;  %3815 = vrot.lane.b32.xlu1 %v7389_v57, %s7025_s19 }
 0x224   : > { %2084 = vrot.lane.b32.xlu0 %v2072_v48, %s7021_s15  ;;  %2317 = vrot.lane.b32.xlu1 %v2072_v48, %s7024_s14 }
 0x228   : > { %2096 = vrot.lane.b32.xlu0 %v7419_v49, %s7021_s15  ;;  %2329 = vrot.lane.b32.xlu1 %v7419_v49, %s7024_s14 }
 0x22c   : > { %2549 = vrot.lane.b32.xlu0 %v2072_v48, %s7026_s22  ;;  %2781 = vrot.lane.b32.xlu1 %v2072_v48, %s7027_s26 }
 0x230   : > { %2561 = vrot.lane.b32.xlu0 %v7419_v49, %s7026_s22  ;;  %2793 = vrot.lane.b32.xlu1 %v7419_v49, %s7027_s26 }
 0x234   : > { %3117 = vrot.lane.b32.xlu0 %v7419_v49, %s7022_s29  ;;  %3337 = vrot.lane.b32.xlu1 %v2072_v48, %s7023_s25 }
 0x238   : > { %3105 = vrot.lane.b32.xlu0 %v2072_v48, %s7022_s29  ;;  %3801 = vrot.lane.b32.xlu1 %v2072_v48, %s7025_s19 }
 0x239   : > { %v1840_v50 = vpop.f32.mrb[4].mxu0  ;;  %v1926_v53 = vpop.f32.mrb[4].mxu1 }
 0x23a   : > { %v1980_v51 = vrot.slane %v1840_v50, 4  ;;  %v1842_v52 = vpop.f32.mrb[5].mxu0  ;;  %v1982_v56 = vrot.slane %v1926_v53, 4  ;;  %v1928_v58 = vpop.f32.mrb[5].mxu1 }
 0x23b   : > { %v1981_v54 = vrot.slane %v1842_v52, 4  ;;  %v1844_v55 = vpop.f32.mrb[6].mxu0  ;;  %v1983_v61 = vrot.slane %v1928_v58, 4  ;;  %v1930_v62 = vpop.f32.mrb[6].mxu1 }
 0x23c   : > { %3349 = vrot.lane.b32.xlu0 %v7419_v49, %s7023_s25  ;;  %2028 = vst [vmem:[#allocation2 + $0x20] sm:$0xf0] %v1980_v51  ;;  %v1992_v59 = vrot.slane %v1844_v55, 4  ;;  %v1846_v60 = vpop.f32.mrb[7].mxu0  ;;  %3813 = vrot.lane.b32.xlu1 %v7419_v49, %s7025_s19  ;;  %2030 = vst [vmem:[#allocation2 + $0x30] sm:$0xf0] %v1982_v56 }
 0x23d   : > { %2029 = vst [vmem:[#allocation2 + $0x28] sm:$0xf0] %v1981_v54  ;;  %v1994_v63 = vrot.slane %v1846_v60, 4  ;;  %v1996_v1 = vrot.slane %v1930_v62, 4  ;;  %v1932_v2 = vpop.f32.mrb[7].mxu1 }
 0x23e   : > { %v7441_v3 = vsel %vm1975_vm0, %v1980_v51, %v1992_v59  ;;  %2044 = vst [vmem:[#allocation2 + $0xa0] sm:$0xf] %v1992_v59  ;;  %2031 = vst [vmem:[#allocation2 + $0x38] sm:$0xf0] %v1983_v61  ;;  %v1998_v4 = vrot.slane %v1932_v2, 4 }
 0x23f   : > { %2036 = vst [vmem:[#allocation2 + $0x60] sm:$0xff] %v7441_v3  ;;  %v7445_v5 = vsel %vm1975_vm0, %v1981_v54, %v1994_v63  ;;  %2045 = vst [vmem:[#allocation2 + $0xa8] sm:$0xf] %v1994_v63  ;;  %v7448_v6 = vsel %vm1975_vm0, %v1982_v56, %v1996_v1 }
 0x240   : > { %9969 = vst [vmem:[#allocation23_spill] sm:$0xff] %v7445_v5  ;;  %2046 = vst [vmem:[#allocation2 + $0xb0] sm:$0xf] %v1996_v1  ;;  %3581 = vrot.lane.b32.xlu0 %v7419_v49, %s7028_s27  ;;  %v7455_v7 = vsel %vm1975_vm0, %v1983_v61, %v1998_v4  ;;  %2094 = vrot.lane.b32.xlu1 %v7354_v39, %s7021_s15 }
 0x241   : > { %2037 = vst [vmem:[#allocation2 + $0x68] sm:$0xff] %v7445_v5  ;;  %2038 = vst [vmem:[#allocation2 + $0x70] sm:$0xff] %v7448_v6  ;;  %v7858_v5 = vld [vmem:[#allocation12 + $0x8] sm:$0xff] }
 0x242   : > { %2047 = vst [vmem:[#allocation2 + $0xb8] sm:$0xf] %v1998_v4  ;;  %2039 = vst [vmem:[#allocation2 + $0x78] sm:$0xff] %v7455_v7 }
 0x243   : > { %v7629_v55 = vld [vmem:[#allocation2 + $0x20] sm:$0xff]  ;;  %v7647_v60 = vld [vmem:[#allocation2 + $0x30] sm:$0xff] }
 0x244   : > { %3569 = vrot.lane.b32.xlu0 %v2072_v48, %s7028_s27  ;;  %2090 = vrot.lane.b32.xlu1 %v2073_v8, %s7021_s15 }
 0x248   : > { %2082 = vrot.lane.b32.xlu0 %v7350_v17, %s7021_s15  ;;  %2102 = vrot.lane.b32.xlu1 %v7464_v9, %s7021_s15 }
 0x24c   : > { %2315 = vrot.lane.b32.xlu0 %v7350_v17, %s7024_s14  ;;  %2323 = vrot.lane.b32.xlu1 %v2073_v8, %s7024_s14 }
 0x250   : > { %2327 = vrot.lane.b32.xlu0 %v7354_v39, %s7024_s14  ;;  %2335 = vrot.lane.b32.xlu1 %v7464_v9, %s7024_s14 }
 0x254   : > { %2779 = vrot.lane.b32.xlu0 %v7350_v17, %s7027_s26  ;;  %2547 = vrot.lane.b32.xlu1 %v7350_v17, %s7026_s22 }
 0x256   : > { %v7479_v10 = vpop.permute.xlu0 %2080  ;;  %v7481_v11 = vpop.permute.xlu1 %3113 }
 0x257   : > { %9970 = vst [vmem:[#allocation24_spill] sm:$0xff] %v7479_v10  ;;  %9971 = vst [vmem:[#allocation25_spill] sm:$0xff] %v7481_v11 }
 0x258   : > { %2791 = vrot.lane.b32.xlu0 %v7354_v39, %s7027_s26  ;;  %2559 = vrot.lane.b32.xlu1 %v7354_v39, %s7026_s22 }
 0x25a   : > { %v7487_v12 = vpop.permute.xlu0 %2092  ;;  %v7489_v14 = vpop.permute.xlu1 %3345 }
 0x25b   : > { %9972 = vst [vmem:[#allocation26_spill] sm:$0xff] %v7489_v14 }
 0x25c   : > { %3111 = vrot.lane.b32.xlu0 %v2073_v8, %s7022_s29  ;;  %2555 = vrot.lane.b32.xlu1 %v2073_v8, %s7026_s22 }
 0x25e   : > { %v7493_v15 = vpop.permute.xlu0 %2313  ;;  %v7495_v16 = vpop.permute.xlu1 %3333 }
 0x25f   : > { %9973 = vst [vmem:[#allocation27_spill] sm:$0xff] %v7493_v15  ;;  %9974 = vst [vmem:[#allocation28_spill] sm:$0xff] %v7495_v16  ;;  %v6781_v15 = vld [vmem:[%s9748_s4 + $0x4] ss:$8 sps:$4 sm:$0xff]  }
 0x260   : > { %3123 = vrot.lane.b32.xlu0 %v7464_v9, %s7022_s29  ;;  %2567 = vrot.lane.b32.xlu1 %v7464_v9, %s7026_s22 }
 0x261   : > { %6418 = vmatprep.mubr.msk.bf16.mxu1 %vm4717_vm2, %v6781_v15  ;;  %6413 = vmatprep.mubr.msk.bf16.mxu0 %vm4717_vm2, %v6781_v15 }
 0x262   : > { %v7501_v18 = vpop.permute.xlu0 %2325  ;;  %v7503_v19 = vpop.permute.xlu1 %3809 }
 0x263   : > { %9975 = vst [vmem:[#allocation29_spill] sm:$0xff] %v7503_v19  ;;  %v7773_v19 = vld [vmem:[#allocation2 + $0xa8] sm:$0xff] }
 0x264   : > { %3347 = vrot.lane.b32.xlu0 %v7354_v39, %s7023_s25  ;;  %2787 = vrot.lane.b32.xlu1 %v2073_v8, %s7027_s26 }
 0x266   : > { %v7508_v20 = vpop.permute.xlu0 %2545  ;;  %v7510_v21 = vpop.permute.xlu1 %3797 }
 0x267   : > { %9976 = vst [vmem:[#allocation30_spill] sm:$0xff] %v7508_v20  ;;  %9977 = vst [vmem:[#allocation31_spill] sm:$0xff] %v7510_v21 }
 0x268   : > { %3335 = vrot.lane.b32.xlu0 %v7350_v17, %s7023_s25  ;;  %2799 = vrot.lane.b32.xlu1 %v7464_v9, %s7027_s26 }
 0x26a   : > { %v7516_v22 = vpop.permute.xlu0 %2557  ;;  %v7518_v23 = vpop.permute.xlu1 %2086 }
 0x26c   : > { %3575 = vrot.lane.b32.xlu0 %v2073_v8, %s7028_s27  ;;  %3115 = vrot.lane.b32.xlu1 %v7354_v39, %s7022_s29 }
 0x26e   : > { %v7523_v24 = vpop.permute.xlu0 %2777  ;;  %v7525_v25 = vpop.permute.xlu1 %2319 }
 0x26f   : > { %9978 = vst [vmem:[#allocation32_spill] sm:$0xff] %v7523_v24  ;;  %v2128_v24 = vlaneseq }
 0x270   : > { %3587 = vrot.lane.b32.xlu0 %v7464_v9, %s7028_s27  ;;  %3103 = vrot.lane.b32.xlu1 %v7350_v17, %s7022_s29 }
 0x272   : > { %v7531_v26 = vpop.permute.xlu0 %2789  ;;  %v7533_v27 = vpop.permute.xlu1 %2331 }
 0x274   : > { %3811 = vrot.lane.b32.xlu0 %v7354_v39, %s7025_s19  ;;  %3343 = vrot.lane.b32.xlu1 %v2073_v8, %s7023_s25 }
 0x276   : > { %v7538_v28 = vpop.permute.xlu0 %3101  ;;  %v7540_v29 = vpop.permute.xlu1 %2783 }
 0x277   : > { %9979 = vst [vmem:[#allocation33_spill] sm:$0xff] %v7538_v28 }
 0x278   : > { %3799 = vrot.lane.b32.xlu0 %v7350_v17, %s7025_s19  ;;  %3355 = vrot.lane.b32.xlu1 %v7464_v9, %s7023_s25 }
 0x27a   : > { %v7546_v30 = vpop.permute.xlu0 %3577  ;;  %v7548_v31 = vpop.permute.xlu1 %2795 }
 0x27b   : > { %9980 = vst [vmem:[#allocation34_spill] sm:$0xff] %v7546_v30  ;;  %9981 = vst [vmem:[#allocation35_spill] sm:$0xff] %v7548_v31  ;;  %v7791_v30 = vshrl.u32 %v2128_v24, 7 }
 0x27c   : > { %3807 = vrot.lane.b32.xlu0 %v2073_v8, %s7025_s19  ;;  %3579 = vrot.lane.b32.xlu1 %v7354_v39, %s7028_s27  ;;  %v7673_v8 = vld [vmem:[#allocation2 + $0x38] sm:$0xff] }
 0x27d   : > { %10025 = vst [vmem:[#allocation79_spill] sm:$0xff] %v7791_v30 }
 0x27e   : > { %v7553_v32 = vpop.permute.xlu0 %3565  ;;  %v7555_v33 = vpop.permute.xlu1 %3339 }
 0x27f   : > { %9982 = vst [vmem:[#allocation36_spill] sm:$0xff] %v7553_v32  ;;  %9983 = vst [vmem:[#allocation37_spill] sm:$0xff] %v7555_v33  ;;  %v7695_v32 = vld [vmem:[#allocation2 + $0xa0] sm:$0xff] }
 0x280   : > { %3819 = vrot.lane.b32.xlu0 %v7464_v9, %s7025_s19  ;;  %3567 = vrot.lane.b32.xlu1 %v7350_v17, %s7028_s27 }
 0x282   : > { %v7561_v34 = vpop.permute.xlu0 %2098  ;;  %v7563_v35 = vpop.permute.xlu1 %3351 }
 0x283   : > { %9984 = vst [vmem:[#allocation38_spill] sm:$0xff] %v7561_v34  ;;  %9985 = vst [vmem:[#allocation39_spill] sm:$0xff] %v7563_v35 }
 0x284   : > { %2321 = vrot.lane.b32.xlu0 %v7357_v40, %s7024_s14  ;;  %2088 = vrot.lane.b32.xlu1 %v7357_v40, %s7021_s15 }
 0x286   : > { %v7569_v36 = vpop.permute.xlu0 %2551  ;;  %v7571_v37 = vpop.permute.xlu1 %3571 }
 0x287   : > { %9986 = vst [vmem:[#allocation40_spill] sm:$0xff] %v7571_v37 }
 0x288   : > { %2333 = vrot.lane.b32.xlu0 %v7361_v41, %s7024_s14  ;;  %2100 = vrot.lane.b32.xlu1 %v7361_v41, %s7021_s15 }
 0x28a   : > { %v7577_v17 = vpop.permute.xlu0 %2563  ;;  %v7579_v38 = vpop.permute.xlu1 %3583 }
 0x28b   : > { %9987 = vst [vmem:[#allocation41_spill] sm:$0xff] %v7577_v17  ;;  %9988 = vst [vmem:[#allocation42_spill] sm:$0xff] %v7579_v38 }
 0x28c   : > { %2785 = vrot.lane.b32.xlu0 %v7357_v40, %s7027_s26  ;;  %2553 = vrot.lane.b32.xlu1 %v7357_v40, %s7026_s22 }
 0x28e   : > { %v7585_v42 = vpop.permute.xlu0 %3107  ;;  %v7587_v13 = vpop.permute.xlu1 %3803 }
 0x28f   : > { %9989 = vst [vmem:[#allocation43_spill] sm:$0xff] %v7585_v42  ;;  %9990 = vst [vmem:[#allocation44_spill] sm:$0xff] %v7587_v13 }
 0x290   : > { %2797 = vrot.lane.b32.xlu0 %v7361_v41, %s7027_s26  ;;  %2565 = vrot.lane.b32.xlu1 %v7361_v41, %s7026_s22 }
 0x292   : > { %v7593_v44 = vpop.permute.xlu0 %3119  ;;  %v7595_v45 = vpop.permute.xlu1 %3815 }
 0x293   : > { %9991 = vst [vmem:[#allocation45_spill] sm:$0xff] %v7595_v45 }
 0x294   : > { %3341 = vrot.lane.b32.xlu0 %v7357_v40, %s7023_s25  ;;  %3109 = vrot.lane.b32.xlu1 %v7357_v40, %s7022_s29 }
 0x296   : > { %v7601_v46 = vpop.permute.xlu0 %2084  ;;  %v7603_v47 = vpop.permute.xlu1 %2317 }
 0x297   : > { %9992 = vst [vmem:[#allocation46_spill] sm:$0xff] %v7601_v46  ;;  %9993 = vst [vmem:[#allocation47_spill] sm:$0xff] %v7603_v47 }
 0x298   : > { %3353 = vrot.lane.b32.xlu0 %v7361_v41, %s7023_s25  ;;  %3121 = vrot.lane.b32.xlu1 %v7361_v41, %s7022_s29 }
 0x29a   : > { %v7609_v48 = vpop.permute.xlu0 %2096  ;;  %v7611_v50 = vpop.permute.xlu1 %2329 }
 0x29c   : > { %3805 = vrot.lane.b32.xlu0 %v7357_v40, %s7025_s19  ;;  %3573 = vrot.lane.b32.xlu1 %v7357_v40, %s7028_s27 }
 0x29e   : > { %v7617_v51 = vpop.permute.xlu0 %2549  ;;  %v7619_v52 = vpop.permute.xlu1 %2781 }
 0x29f   : > { %9994 = vst [vmem:[#allocation48_spill] sm:$0xff] %v7617_v51  ;;  %9995 = vst [vmem:[#allocation49_spill] sm:$0xff] %v7619_v52  ;;  %v7721_v52 = vld [vmem:[#allocation2 + $0xb8] sm:$0xff] }
 0x2a0   : > { %3817 = vrot.lane.b32.xlu0 %v7361_v41, %s7025_s19  ;;  %3585 = vrot.lane.b32.xlu1 %v7361_v41, %s7028_s27  ;;  %10009 = vst [vmem:[#allocation63_spill] sm:$0xff] %v7721_v52 }
 0x2a2   : > { %v7625_v53 = vpop.permute.xlu0 %2561  ;;  %v7627_v54 = vpop.permute.xlu1 %2793 }
 0x2a4   : > { %3589 = vrot.lane.b32.xlu0 %v7629_v55, %s7028_s27  ;;  %3125 = vrot.lane.b32.xlu1 %v7629_v55, %s7022_s29 }
 0x2a6   : > { %v7635_v40 = vpop.permute.xlu0 %3117  ;;  %v7637_v56 = vpop.permute.xlu1 %3337 }
 0x2a7   : > { %9996 = vst [vmem:[#allocation50_spill] sm:$0xff] %v7635_v40  ;;  %9997 = vst [vmem:[#allocation51_spill] sm:$0xff] %v7637_v56 }
 0x2a8   : > { %2104 = vrot.lane.b32.xlu0 %v7629_v55, %s7021_s15  ;;  %3357 = vrot.lane.b32.xlu1 %v7629_v55, %s7023_s25 }
 0x2aa   : > { %v7643_v58 = vpop.permute.xlu0 %3105  ;;  %v7645_v59 = vpop.permute.xlu1 %3801 }
 0x2ab   : > { %9998 = vst [vmem:[#allocation52_spill] sm:$0xff] %v7643_v58  ;;  %9999 = vst [vmem:[#allocation53_spill] sm:$0xff] %v7645_v59  ;;  %v7691_v59 = vld [vmem:[#allocation2 + $0x28] sm:$0xff]  ;;  %v7713_v58 = vld [vmem:[#allocation2 + $0xb0] sm:$0xff] }
 0x2ac   : > { %2116 = vrot.lane.b32.xlu0 %v7647_v60, %s7021_s15  ;;  %3821 = vrot.lane.b32.xlu1 %v7629_v55, %s7025_s19 }
 0x2ae   : > { %v7653_v61 = vpop.permute.xlu0 %3349  ;;  %v7655_v62 = vpop.permute.xlu1 %3813 }
 0x2af   : > { %10000 = vst [vmem:[#allocation54_spill] sm:$0xff] %v7653_v61  ;;  %10001 = vst [vmem:[#allocation55_spill] sm:$0xff] %v7655_v62 }
 0x2b0   : > { %2569 = vrot.lane.b32.xlu0 %v7629_v55, %s7026_s22  ;;  %2337 = vrot.lane.b32.xlu1 %v7629_v55, %s7024_s14 }
 0x2b2   : > { %v7661_v63 = vpop.permute.xlu0 %3581  ;;  %v7663_v1 = vpop.permute.xlu1 %2094 }
 0x2b3   : > { %10002 = vst [vmem:[#allocation56_spill] sm:$0xff] %v7661_v63 }
 0x2b4   : > { %2581 = vrot.lane.b32.xlu0 %v7647_v60, %s7026_s22  ;;  %2349 = vrot.lane.b32.xlu1 %v7647_v60, %s7024_s14 }
 0x2b6   : > { %v7669_v2 = vpop.permute.xlu0 %3569  ;;  %v7671_v4 = vpop.permute.xlu1 %2090 }
 0x2b7   : > { %10003 = vst [vmem:[#allocation57_spill] sm:$0xff] %v7669_v2 }
 0x2b8   : > { %2122 = vrot.lane.b32.xlu0 %v7673_v8, %s7021_s15  ;;  %2355 = vrot.lane.b32.xlu1 %v7673_v8, %s7024_s14 }
 0x2ba   : > { %v7679_v0 = vpop.permute.xlu0 %2082  ;;  %v7681_v21 = vpop.permute.xlu1 %2102 }
 0x2bb   : > { %10004 = vst [vmem:[#allocation58_spill] sm:$0xff] %v7679_v0  ;;  %10005 = vst [vmem:[#allocation59_spill] sm:$0xff] %v7681_v21 }
 0x2bc   : > { %2587 = vrot.lane.b32.xlu0 %v7673_v8, %s7026_s22  ;;  %2819 = vrot.lane.b32.xlu1 %v7673_v8, %s7027_s26 }
 0x2be   : > { %v7687_v13 = vpop.permute.xlu0 %2315  ;;  %v7689_v2 = vpop.permute.xlu1 %2323 }
 0x2bf   : > { %10006 = vst [vmem:[#allocation60_spill] sm:$0xff] %v7687_v13 }
 0x2c0   : > { %2110 = vrot.lane.b32.xlu0 %v7691_v59, %s7021_s15  ;;  %3825 = vrot.lane.b32.xlu1 %v7695_v32, %s7025_s19 }
 0x2c2   : > { %v7699_v56 = vpop.permute.xlu0 %2327  ;;  %v7701_v37 = vpop.permute.xlu1 %2335 }
 0x2c4   : > { %2343 = vrot.lane.b32.xlu0 %v7691_v59, %s7024_s14  ;;  %2341 = vrot.lane.b32.xlu1 %v7695_v32, %s7024_s14 }
 0x2c6   : > { %v7707_v16 = vpop.permute.xlu0 %2779  ;;  %v7709_v33 = vpop.permute.xlu1 %2547 }
 0x2c7   : > { %10007 = vst [vmem:[#allocation61_spill] sm:$0xff] %v7707_v16  ;;  %10008 = vst [vmem:[#allocation62_spill] sm:$0xff] %v7709_v33 }
 0x2c8   : > { %2575 = vrot.lane.b32.xlu0 %v7691_v59, %s7026_s22  ;;  %2353 = vrot.lane.b32.xlu1 %v7713_v58, %s7024_s14 }
 0x2ca   : > { %v7717_v28 = vpop.permute.xlu0 %2791  ;;  %v7719_v42 = vpop.permute.xlu1 %2559 }
 0x2cc   : > { %3129 = vrot.lane.b32.xlu0 %v7695_v32, %s7022_s29  ;;  %2359 = vrot.lane.b32.xlu1 %v7721_v52, %s7024_s14 }
 0x2ce   : > { %v7727_v16 = vpop.permute.xlu0 %3111  ;;  %v7729_v33 = vpop.permute.xlu1 %2555 }
 0x2cf   : > { %10010 = vst [vmem:[#allocation64_spill] sm:$0xff] %v7727_v16 }
 0x2d0   : > { %3361 = vrot.lane.b32.xlu0 %v7695_v32, %s7023_s25  ;;  %2823 = vrot.lane.b32.xlu1 %v7721_v52, %s7027_s26 }
 0x2d2   : > { %v7735_v13 = vpop.permute.xlu0 %3123  ;;  %v7737_v62 = vpop.permute.xlu1 %2567 }
 0x2d3   : > { %10011 = vst [vmem:[#allocation65_spill] sm:$0xff] %v7735_v13  ;;  %10012 = vst [vmem:[#allocation66_spill] sm:$0xff] %v7737_v62 }
 0x2d4   : > { %3593 = vrot.lane.b32.xlu0 %v7695_v32, %s7028_s27  ;;  %3127 = vrot.lane.b32.xlu1 %v7441_v3, %s7022_s29 }
 0x2d6   : > { %v7743_v51 = vpop.permute.xlu0 %3347  ;;  %v7745_v16 = vpop.permute.xlu1 %2787 }
 0x2d7   : > { %10013 = vst [vmem:[#allocation67_spill] sm:$0xff] %v7743_v51  ;;  %10014 = vst [vmem:[#allocation68_spill] sm:$0xff] %v7745_v16 }
 0x2d8   : > { %2108 = vrot.lane.b32.xlu0 %v7695_v32, %s7021_s15  ;;  %3591 = vrot.lane.b32.xlu1 %v7441_v3, %s7028_s27 }
 0x2da   : > { %v7751_v63 = vpop.permute.xlu0 %3335  ;;  %v7753_v47 = vpop.permute.xlu1 %2799 }
 0x2db   : > { %10015 = vst [vmem:[#allocation69_spill] sm:$0xff] %v7751_v63  ;;  %10016 = vst [vmem:[#allocation70_spill] sm:$0xff] %v7753_v47 }
 0x2dc   : > { %2120 = vrot.lane.b32.xlu0 %v7713_v58, %s7021_s15  ;;  %2106 = vrot.lane.b32.xlu1 %v7441_v3, %s7021_s15 }
 0x2de   : > { %v7759_v61 = vpop.permute.xlu0 %3575  ;;  %v7761_v51 = vpop.permute.xlu1 %3115 }
 0x2df   : > { %10017 = vst [vmem:[#allocation71_spill] sm:$0xff] %v7759_v61  ;;  %10018 = vst [vmem:[#allocation72_spill] sm:$0xff] %v7761_v51 }
 0x2e0   : > { %2573 = vrot.lane.b32.xlu0 %v7695_v32, %s7026_s22  ;;  %2118 = vrot.lane.b32.xlu1 %v7448_v6, %s7021_s15 }
 0x2e2   : > { %v7767_v46 = vpop.permute.xlu0 %3587  ;;  %v7769_v63 = vpop.permute.xlu1 %3103 }
 0x2e3   : > { %10019 = vst [vmem:[#allocation73_spill] sm:$0xff] %v7767_v46  ;;  %10020 = vst [vmem:[#allocation74_spill] sm:$0xff] %v7769_v63 }
 0x2e4   : > { %2126 = vrot.lane.b32.xlu0 %v7721_v52, %s7021_s15  ;;  %2114 = vrot.lane.b32.xlu1 %v7773_v19, %s7021_s15 }
 0x2e6   : > { %v7777_v61 = vpop.permute.xlu0 %3811  ;;  %v7779_v45 = vpop.permute.xlu1 %3343 }
 0x2e7   : > { %10021 = vst [vmem:[#allocation75_spill] sm:$0xff] %v7777_v61  ;;  %10022 = vst [vmem:[#allocation76_spill] sm:$0xff] %v7779_v45  ;;  %v7797_v61 = vand.u32 127, %v2128_v24 }
 0x2e8   : > { %2591 = vrot.lane.b32.xlu0 %v7721_v52, %s7026_s22  ;;  %2347 = vrot.lane.b32.xlu1 %v7773_v19, %s7024_s14 }
 0x2e9   : > { %vm2130_vm1 = vcmp.lt.s32.totalorder %v7797_v61, 33  ;;  %vm2361_vm3 = vcmp.lt.s32.totalorder %v7797_v61, 32  ;;  %vm2593_vm4 = vcmp.lt.s32.totalorder %v7797_v61, 31  ;;  %vm2825_vm5 = vcmp.lt.s32.totalorder %v7797_v61, 1 }
 0x2ea   : > { %v7785_v63 = vpop.permute.xlu0 %3799  ;;  %v7787_v46 = vpop.permute.xlu1 %3355  ;;  %v2143_v13 = vsel %vm2130_vm1, %v7487_v12, %v7561_v34  ;;  %vm3149_vm6 = vcmp.lt.s32.totalorder %v7797_v61, 127  ;;  %vm3381_vm7 = vcmp.lt.s32.totalorder %v7797_v61, 97  ;;  %vm3613_vm8 = vcmp.lt.s32.totalorder %v7797_v61, 96 }
 0x2eb   : > { %10023 = vst [vmem:[#allocation77_spill] sm:$0xff] %v7785_v63  ;;  %10024 = vst [vmem:[#allocation78_spill] sm:$0xff] %v7787_v46  ;;  %v7804_v63 = vsub.s32 1, %v7791_v30  ;;  %v7808_v46 = vld [vmem:[#allocation12] sm:$0xff]  ;;  %vm3845_vm9 = vcmp.lt.s32.totalorder %v7797_v61, 95 }
 0x2ec   : > { %3359 = vrot.lane.b32.xlu0 %v7441_v3, %s7023_s25  ;;  %2571 = vrot.lane.b32.xlu1 %v7441_v3, %s7026_s22  ;;  %10029 = vst [vmem:[#allocation83_spill] sm:$0xff] %v7808_v46 }
 0x2ed   : > { %10028 = vst [vmem:[#allocation82_spill] sm:$0xff] %v7804_v63  ;;  %v7819_v24 = vrot.slane %v7808_v46, %v7804_v63 }
 0x2ee   : > { %v7795_v45 = vpop.permute.xlu0 %3807  ;;  %v7799_v38 = vpop.permute.xlu1 %3579 }
 0x2ef   : > { %10026 = vst [vmem:[#allocation80_spill] sm:$0xff] %v7795_v45  ;;  %10027 = vst [vmem:[#allocation81_spill] sm:$0xff] %v7799_v38  ;;  %v7824_v38 = vsub.s32 2, %v7791_v30 }
 0x2f0   : > { %3823 = vrot.lane.b32.xlu0 %v7441_v3, %s7025_s19  ;;  %2583 = vrot.lane.b32.xlu1 %v7448_v6, %s7026_s22  ;;  %10032 = vst [vmem:[#allocation86_spill] sm:$0xff] %v7819_v24 }
 0x2f2   : > { %v7810_v20 = vpop.permute.xlu0 %3819  ;;  %v7813_v45 = vpop.permute.xlu1 %3567 }
 0x2f3   : > { %10030 = vst [vmem:[#allocation84_spill] sm:$0xff] %v7810_v20  ;;  %10031 = vst [vmem:[#allocation85_spill] sm:$0xff] %v7813_v45  ;;  %v2149_v20 = vsel %vm2130_vm1, %v7479_v10, %v7518_v23  ;;  %v7831_v45 = vsub.s32 3, %v7791_v30 }
 0x2f4   : > { %2339 = vrot.lane.b32.xlu0 %v7441_v3, %s7024_s14  ;;  %2124 = vrot.lane.b32.xlu1 %v7455_v7, %s7021_s15  ;;  %v2198_v10 = vmul.f32 %v7819_v24, %v2149_v20  ;;  %v2145_v20 = vsel %vm2130_vm1, %v7609_v48, %v7681_v21  ;;  %v2374_v21 = vsel %vm2361_vm3, %v7501_v18, %v7533_v27 }
 0x2f5   : > { %v2172_v63 = vrot.slane %v7808_v46, %v7831_v45 }
 0x2f6   : > { %v7833_v14 = vpop.permute.xlu0 %2321  ;;  %v2089_v35 = vpop.permute.xlu1 %2088 }
 0x2f7   : > { %v2150_v40 = vsel %vm2130_vm1, %v7679_v0, %v2089_v35  ;;  %v2147_v30 = vsel %vm2130_vm1, %v2089_v35, %v7663_v1  ;;  %v2168_v0 = vrot.slane %v7808_v46, %v7824_v38  ;;  %v2146_v35 = vsel %vm2130_vm1, %v7518_v23, %v7487_v12 }
 0x2f8   : > { %2351 = vrot.lane.b32.xlu0 %v7448_v6, %s7024_s14  ;;  %v2206_v51 = vmul.f32 %v7819_v24, %v2150_v40  ;;  %2579 = vrot.lane.b32.xlu1 %v7773_v19, %s7026_s22  ;;  %v2404_v40 = vrot.slane %v7858_v5, %v7831_v45  ;;  %v2200_v52 = vmul.f32 %v2172_v63, %v2143_v13 }
 0x2f9   : > { %v2207_v49 = vmul.f32 %v2168_v0, %v2147_v30  ;;  %v2216_v15 = vmul.f32 %v2172_v63, %v2145_v20  ;;  %v2199_v30 = vmul.f32 %v2168_v0, %v2146_v35  ;;  %v2400_v13 = vrot.slane %v7858_v5, %v7824_v38 }
 0x2fa   : > { %v7864_v34 = vpop.permute.xlu0 %2333  ;;  %v7873_v24 = vpop.permute.xlu1 %2100  ;;  %v6552_v46 = vpack.c.bf16 %v2206_v51, %v2198_v10  ;;  %v2148_v10 = vsel %vm2130_vm1, %v7671_v4, %v7609_v48  ;;  %v2377_v48 = vsel %vm2361_vm3, %v7525_v25, %v7501_v18  ;;  %v2376_v35 = vsel %vm2361_vm3, %v7611_v50, %v7701_v37 }
 0x2fb   : > { %10033 = vst [vmem:[#allocation87_spill] sm:$0xff] %v7864_v34  ;;  %10034 = vst [vmem:[#allocation88_spill] sm:$0xff] %v7873_v24  ;;  %v2144_v12 = vsel %vm2130_vm1, %v7663_v1, %v7873_v24  ;;  %v2375_v51 = vsel %vm2361_vm3, %v7699_v56, %v7864_v34  ;;  %v2215_v20 = vmul.f32 %v2168_v0, %v2148_v10  ;;  %v10105_v34 = vld [vmem:[#allocation46_spill] sm:$0xff] }
 0x2fc   : > { %2357 = vrot.lane.b32.xlu0 %v7455_v7, %s7024_s14  ;;  %v2208_v23 = vmul.f32 %v2172_v63, %v2144_v12  ;;  %4754 = vmatprep.subr.bf16.mxu0 %v6552_v46  ;;  %v2432_v46 = vmul.f32 %v2404_v40, %v2374_v21  ;;  %v6553_v12 = vpack.c.bf16 %v2207_v49, %v2199_v30 }
 0x2fd   : > { %2801 = vrot.lane.b32.xlu1 %v7629_v55, %s7027_s26  ;;  %v2378_v24 = vsel %vm2361_vm3, %v7833_v14, %v7699_v56  ;;  %v2440_v18 = vmul.f32 %v2404_v40, %v2375_v51  ;;  %v2431_v21 = vmul.f32 %v2400_v13, %v2377_v48  ;;  %v2379_v56 = vsel %vm2361_vm3, %v7689_v2, %v7611_v50 }
 0x2fe   : > { %v7899_v1 = vpop.permute.xlu0 %2785  ;;  %v7905_v63 = vpop.permute.xlu1 %2553  ;;  %v6554_v55 = vpack.c.bf16 %v2208_v23, %v2200_v52  ;;  %v6562_v0 = vpack.c.bf16 %v2432_v46, %v2216_v15  ;;  %v7919_v52 = vld [vmem:[#allocation12 + $0x10] sm:$0xff]  ;;  %v2448_v23 = vmul.f32 %v2404_v40, %v2376_v35  ;;  %v2606_v15 = vsel %vm2593_vm4, %v7516_v22, %v7577_v17 }
 0x2ff   : > { %10035 = vst [vmem:[#allocation89_spill] sm:$0xff] %v7899_v1  ;;  %10036 = vst [vmem:[#allocation90_spill] sm:$0xff] %v7905_v63  ;;  %v2636_v49 = vrot.slane %v7919_v52, %v7831_v45  ;;  %v6561_v51 = vpack.c.bf16 %v2431_v21, %v2215_v20  ;;  %v2439_v48 = vmul.f32 %v2400_v13, %v2378_v24  ;;  %v7948_v20 = vld [vmem:[#allocation12 + $0x18] sm:$0xff] }
 0x300   : > { %2585 = vrot.lane.b32.xlu0 %v7713_v58, %s7026_s22  ;;  %4825 = vmatprep.subr.bf16.mxu1 %v6554_v55  ;;  %v2610_v50 = vsel %vm2593_vm4, %v7905_v63, %v7719_v42  ;;  %v6570_v55 = vpack.c.bf16 %v2448_v23, %v2440_v18  ;;  %10039 = vst [vmem:[#allocation93_spill] sm:$0xff] %v7948_v20 }
 0x301   : > { %2589 = vrot.lane.b32.xlu1 %v7455_v7, %s7026_s22  ;;  %4826 = vmatpush1.bf16.msra.mxu1 %v6553_v12  ;;  %v2632_v24 = vrot.slane %v7919_v52, %v7824_v38  ;;  %v2447_v35 = vmul.f32 %v2400_v13, %v2379_v56  ;;  %v2608_v12 = vsel %vm2593_vm4, %v7625_v53, %v7737_v62  ;;  %v10093_v62 = vld [vmem:[#allocation34_spill] sm:$0xff] }
 0x302   : > { %v7921_v10 = vpop.permute.xlu0 %2797  ;;  %4827 = vmatprep.subr.bf16.mxu1 %v6562_v0  ;;  %v7930_v30 = vpop.permute.xlu1 %2565  ;;  %v2609_v18 = vsel %vm2593_vm4, %v7569_v36, %v7516_v22  ;;  %v2664_v21 = vmul.f32 %v2636_v49, %v2606_v15  ;;  %v2838_v56 = vsel %vm2825_vm5, %v7531_v26, %v7548_v31  ;;  %v2680_v22 = vmul.f32 %v2636_v49, %v2608_v12  ;;  %v10092_v31 = vld [vmem:[#allocation42_spill] sm:$0xff] }
 0x303   : > { %10037 = vst [vmem:[#allocation91_spill] sm:$0xff] %v7921_v10  ;;  %10038 = vst [vmem:[#allocation92_spill] sm:$0xff] %v7930_v30  ;;  %v2607_v46 = vsel %vm2593_vm4, %v7719_v42, %v7930_v30  ;;  %v2868_v42 = vrot.slane %v7948_v20, %v7831_v45  ;;  %v6569_v23 = vpack.c.bf16 %v2447_v35, %v2439_v48 }
 0x304   : > { %2807 = vrot.lane.b32.xlu0 %v7691_v59, %s7027_s26  ;;  %v2672_v40 = vmul.f32 %v2636_v49, %v2607_v46  ;;  %v2611_v46 = vsel %vm2593_vm4, %v7729_v33, %v7625_v53  ;;  %v2663_v30 = vmul.f32 %v2632_v24, %v2609_v18  ;;  %v2839_v48 = vsel %vm2825_vm5, %v7717_v28, %v7921_v10 }
 0x305   : > { %2813 = vrot.lane.b32.xlu1 %v7647_v60, %s7027_s26  ;;  %4828 = vmatpush1.bf16.msra.mxu1 %v6561_v51  ;;  %v2671_v51 = vmul.f32 %v2632_v24, %v2610_v50  ;;  %v2841_v53 = vsel %vm2825_vm5, %v7540_v29, %v7531_v26  ;;  %v2896_v49 = vmul.f32 %v2868_v42, %v2838_v56 }
 0x306   : > { %v7956_v0 = vpop.permute.xlu0 %3341  ;;  %4829 = vmatprep.subr.bf16.mxu1 %v6570_v55  ;;  %v7965_v13 = vpop.permute.xlu1 %3109  ;;  %v6578_v15 = vpack.c.bf16 %v2672_v40, %v2664_v21  ;;  %v2864_v55 = vrot.slane %v7948_v20, %v7824_v38  ;;  %v2679_v40 = vmul.f32 %v2632_v24, %v2611_v46  ;;  %v2840_v35 = vsel %vm2825_vm5, %v7627_v54, %v7753_v47 }
 0x307   : > { %10040 = vst [vmem:[#allocation94_spill] sm:$0xff] %v7956_v0  ;;  %10041 = vst [vmem:[#allocation95_spill] sm:$0xff] %v7965_v13  ;;  %v6577_v12 = vpack.c.bf16 %v2671_v51, %v2663_v30  ;;  %v2842_v18 = vsel %vm2825_vm5, %v7899_v1, %v7717_v28  ;;  %v2904_v26 = vmul.f32 %v2868_v42, %v2839_v48  ;;  %v8019_v48 = vld [vmem:[#allocation12 + $0x28] sm:$0xff] }
 0x308   : > { %2821 = vrot.lane.b32.xlu0 %v7455_v7, %s7027_s26  ;;  %v6586_v21 = vpack.c.bf16 %v2896_v49, %v2680_v22  ;;  %v2895_v24 = vmul.f32 %v2864_v55, %v2841_v53  ;;  %v2843_v30 = vsel %vm2825_vm5, %v7745_v16, %v7627_v54  ;;  %v2903_v28 = vmul.f32 %v2864_v55, %v2842_v18  ;;  %v10073_v13 = vld [vmem:[#allocation50_spill] sm:$0xff]  ;;  %v10076_v16 = vld [vmem:[#allocation83_spill] sm:$0xff] }
 0x309   : > { %2805 = vrot.lane.b32.xlu1 %v7695_v32, %s7027_s26  ;;  %4830 = vmatpush1.bf16.msra.mxu1 %v6569_v23  ;;  %v2911_v22 = vmul.f32 %v2864_v55, %v2843_v30  ;;  %10044 = vst [vmem:[#allocation98_spill] sm:$0xff] %v8019_v48  ;;  %v3162_v55 = vsel %vm3149_vm6, %v7481_v11, %v7593_v44 }
 0x30a   : > { %v7985_v50 = vpop.permute.xlu0 %3353  ;;  %4831 = vmatprep.subr.bf16.mxu1 %v6578_v15  ;;  %v7991_v32 = vpop.permute.xlu1 %3121  ;;  %v6585_v51 = vpack.c.bf16 %v2895_v24, %v2679_v40  ;;  %v6602_v49 = vpack.c.bf16 %v7361_v41, %v7389_v57  ;;  %v8040_v40 = vrot.slane %v8019_v48, %v7831_v45  ;;  %v6601_v41 = vpack.c.bf16 %v7354_v39, %v7363_v43 }
 0x30b   : > { %v6593_v53 = vpack.c.bf16 %v2911_v22, %v2903_v28  ;;  %v10052_v28 = vld [vmem:[#allocation63_spill] sm:$0xff] }
 0x30c   : > { %2803 = vrot.lane.b32.xlu0 %v7441_v3, %s7027_s26  ;;  %v2912_v3 = vmul.f32 %v2868_v42, %v2840_v35  ;;  %v8026_v42 = vrot.slane %v8019_v48, %v7824_v38 }
 0x30d   : > { %2811 = vrot.lane.b32.xlu1 %v7773_v19, %s7027_s26  ;;  %4832 = vmatpush1.bf16.msra.mxu1 %v6577_v12 }
 0x30e   : > { %v8005_v56 = vpop.permute.xlu0 %3805  ;;  %4833 = vmatprep.subr.bf16.mxu1 %v6586_v21  ;;  %v8011_v23 = vpop.permute.xlu1 %3573  ;;  %v6594_v46 = vpack.c.bf16 %v2912_v3, %v2904_v26  ;;  %v3219_v18 = vmul.f32 %v8026_v42, %v3162_v55  ;;  %v10049_v3 = vld [vmem:[#allocation22_spill] sm:$0xff] }
 0x30f   : > { %10042 = vst [vmem:[#allocation96_spill] sm:$0xff] %v8005_v56  ;;  %10043 = vst [vmem:[#allocation97_spill] sm:$0xff] %v8011_v23 }
 0x310   : > { %2815 = vrot.lane.b32.xlu0 %v7448_v6, %s7027_s26 }
 0x311   : > { %2817 = vrot.lane.b32.xlu1 %v7713_v58, %s7027_s26  ;;  %4834 = vmatpush1.bf16.msra.mxu1 %v6585_v51 }
 0x312   : > { %v8017_v15 = vpop.permute.xlu0 %3817  ;;  %4835 = vmatprep.subr.bf16.mxu1 %v6594_v46  ;;  %v8021_v54 = vpop.permute.xlu1 %3585 }
 0x314   : > { %3131 = vrot.lane.b32.xlu0 %v7691_v59, %s7022_s29 }
 0x315   : > { %3137 = vrot.lane.b32.xlu1 %v7647_v60, %s7022_s29  ;;  %4836 = vmatpush1.bf16.msra.mxu1 %v6593_v53 }
 0x316   : > { %v8042_v35 = vpop.permute.xlu0 %3589  ;;  %4837 = vmatprep.subr.bf16.mxu1 %v6602_v49  ;;  %v8044_v12 = vpop.permute.xlu1 %3125 }
 0x317   : > { %10045 = vst [vmem:[#allocation99_spill] sm:$0xff] %v8042_v35  ;;  %10046 = vst [vmem:[#allocation100_spill] sm:$0xff] %v8044_v12  ;;  %v3159_v26 = vsel %vm3149_vm6, %v7593_v44, %v8044_v12  ;;  %v6609_v44 = vpack.c.bf16 %v3219_v18, %v10049_v3 }
 0x318   : > { %3143 = vrot.lane.b32.xlu0 %v7673_v8, %s7022_s29  ;;  %v3220_v57 = vmul.f32 %v8040_v40, %v3159_v26  ;;  %v10055_v26 = vld [vmem:[#allocation23_spill] sm:$0xff] }
 0x319   : > { %3139 = vrot.lane.b32.xlu1 %v7448_v6, %s7022_s29  ;;  %4838 = vmatpush1.bf16.msra.mxu1 %v6601_v41 }
 0x31a   : > { %v8058_v21 = vpop.permute.xlu0 %2104  ;;  %v8060_v24 = vpop.permute.xlu1 %3357  ;;  %v6610_v30 = vpack.c.bf16 %v3220_v57, %v7464_v9 }
 0x31b   : > { %10047 = vst [vmem:[#allocation101_spill] sm:$0xff] %v8058_v21  ;;  %10048 = vst [vmem:[#allocation102_spill] sm:$0xff] %v8060_v24 }
 0x31c   : > { %3135 = vrot.lane.b32.xlu0 %v7773_v19, %s7022_s29  ;;  %4839 = vmatprep.subr.bf16.mxu1 %v6610_v30 }
 0x31d   : > { %3363 = vrot.lane.b32.xlu1 %v7691_v59, %s7023_s25  ;;  %4840 = vmatpush1.bf16.msra.mxu1 %v6609_v44 }
 0x31e   : > { %v2117_v39 = vpop.permute.xlu0 %2116  ;;  %v8068_v43 = vpop.permute.xlu1 %3821 }
 0x31f   : > { %10050 = vst [vmem:[#allocation22_spill] sm:$0xff] %v8068_v43 }
 0x320   : > { %3141 = vrot.lane.b32.xlu0 %v7713_v58, %s7022_s29 }
 0x321   : > { %3369 = vrot.lane.b32.xlu1 %v7647_v60, %s7023_s25 }
 0x322   : > { %v8074_v9 = vpop.permute.xlu0 %2569  ;;  %v2338_v51 = vpop.permute.xlu1 %2337 }
 0x323   : > { %10051 = vst [vmem:[#allocation103_spill] sm:$0xff] %v8074_v9 }
 0x324   : > { %3147 = vrot.lane.b32.xlu0 %v10052_v28, %s7022_s29 }
 0x325   : > { %3375 = vrot.lane.b32.xlu1 %v7673_v8, %s7023_s25 }
 0x326   : > { %v2582_v46 = vpop.permute.xlu0 %2581  ;;  %v2350_v22 = vpop.permute.xlu1 %2349 }
 0x328   : > { %3371 = vrot.lane.b32.xlu0 %v7448_v6, %s7023_s25 }
 0x329   : > { %3367 = vrot.lane.b32.xlu1 %v7773_v19, %s7023_s25 }
 0x32a   : > { %v8084_v53 = vpop.permute.xlu0 %2122  ;;  %v8091_v49 = vpop.permute.xlu1 %2355 }
 0x32b   : > { %v8089_v55 = vsel %vm2130_vm1, %v2117_v39, %v8084_v53  ;;  %10054 = vst [vmem:[#allocation104_spill] sm:$0xff] %v8091_v49  ;;  %v8096_v18 = vsel %vm2361_vm3, %v2350_v22, %v8091_v49 }
 0x32c   : > { %10053 = vst [vmem:[#allocation63_spill] sm:$0xff] %v8089_v55  ;;  %3373 = vrot.lane.b32.xlu0 %v7713_v58, %s7023_s25  ;;  %v10091_v55 = vld [vmem:[#allocation30_spill] sm:$0xff] }
 0x32d   : > { %2112 = vrot.lane.b32.xlu1 %v10055_v26, %s7021_s15  ;;  %s6929_s15 = scalar_lea.vmem %s9701_s21, 256 }
 0x32e   : > { %v8102_v41 = vpop.permute.xlu0 %2587  ;;  %v8109_v30 = vpop.permute.xlu1 %2819  ;;  %p6930_p2 = scmp.ne.s32.totalorder %s9701_s21, %s6929_s15 }
 0x32f   : > { %10056 = vst [vmem:[#allocation23_spill] sm:$0xff] %v8102_v41  ;;  %v8107_v57 = vsel %vm2593_vm4, %v2582_v46, %v8102_v41  ;;  %10058 = vst [vmem:[#allocation106_spill] sm:$0xff] %v8109_v30 }
 0x330   : > { %10057 = vst [vmem:[#allocation105_spill] sm:$0xff] %v8107_v57  ;;  %3595 = vrot.lane.b32.xlu0 %v7691_v59, %s7028_s27  ;;  %p6931_p6 = pnand %p6930_p2, %p10347_p13 }
 0x331   : > { %3379 = vrot.lane.b32.xlu1 %v10052_v28, %s7023_s25 }
 0x332   : > { %v8115_v3 = vpop.permute.xlu0 %2110  ;;  %v8122_v12 = vpop.permute.xlu1 %3825  ;;  %p6932_p10 = pneg %p6931_p6 }
 0x333   : > { %10059 = vst [vmem:[#allocation107_spill] sm:$0xff] %v8115_v3  ;;  %v8120_v44 = vsel %vm2130_vm1, %v8115_v3, %v2117_v39  ;;  %10061 = vst [vmem:[#allocation109_spill] sm:$0xff] %v8122_v12 }
 0x334   : > { %10060 = vst [vmem:[#allocation108_spill] sm:$0xff] %v8120_v44  ;;  %2345 = vrot.lane.b32.xlu0 %v10055_v26, %s7024_s14 }
 0x335   : > { %3601 = vrot.lane.b32.xlu1 %v7647_v60, %s7028_s27 }
 0x336   : > { %v2344_v10 = vpop.permute.xlu0 %2343  ;;  %v8136_v17 = vpop.permute.xlu1 %2341 }
 0x337   : > { %v8130_v47 = vsel %vm2361_vm3, %v2344_v10, %v2350_v22  ;;  %v8134_v57 = vsel %vm2361_vm3, %v2338_v51, %v2344_v10 }
 0x338   : > { %3607 = vrot.lane.b32.xlu0 %v7673_v8, %s7028_s27 }
 0x339   : > { %2577 = vrot.lane.b32.xlu1 %v10055_v26, %s7026_s22 }
 0x33a   : > { %v2576_v39 = vpop.permute.xlu0 %2575  ;;  %v8151_v10 = vpop.permute.xlu1 %2353 }
 0x33b   : > { %v8144_v44 = vsel %vm2593_vm4, %v2576_v39, %v2582_v46  ;;  %v8149_v22 = vsel %vm2593_vm4, %v8074_v9, %v2576_v39 }
 0x33c   : > { %10062 = vst [vmem:[#allocation110_spill] sm:$0xff] %v8144_v44  ;;  %10063 = vst [vmem:[#allocation111_spill] sm:$0xff] %v8149_v22  ;;  %3599 = vrot.lane.b32.xlu0 %v7773_v19, %s7028_s27  ;;  %v10069_v22 = vld [vmem:[#allocation72_spill] sm:$0xff] }
 0x33d   : > { %3603 = vrot.lane.b32.xlu1 %v7448_v6, %s7028_s27  ;;  %v3163_v9 = vsel %vm3149_vm6, %v10069_v22, %v7991_v32 }
 0x33e   : > { %v8157_v3 = vpop.permute.xlu0 %3129  ;;  %v8159_v21 = vpop.permute.xlu1 %2359  ;;  %v3227_v22 = vmul.f32 %v8026_v42, %v3163_v9 }
 0x33f   : > { %10064 = vst [vmem:[#allocation112_spill] sm:$0xff] %v8157_v3  ;;  %10065 = vst [vmem:[#allocation113_spill] sm:$0xff] %v8159_v21  ;;  %v8165_v46 = vsel %vm2361_vm3, %v8151_v10, %v8159_v21 }
 0x340   : > { %10066 = vst [vmem:[#allocation114_spill] sm:$0xff] %v8165_v46  ;;  %2809 = vrot.lane.b32.xlu0 %v10055_v26, %s7027_s26  ;;  %v10070_v46 = vld [vmem:[#allocation79_spill] sm:$0xff] }
 0x341   : > { %3827 = vrot.lane.b32.xlu1 %v7691_v59, %s7025_s19  ;;  %v8184_v56 = vsub.s32 4, %v10070_v46  ;;  %v10071_v59 = vld [vmem:[#allocation65_spill] sm:$0xff]  ;;  %v8297_v21 = vsub.s32 5, %v10070_v46 }
 0x342   : > { %v8171_v39 = vpop.permute.xlu0 %3361  ;;  %v8173_v44 = vpop.permute.xlu1 %2823  ;;  %v3161_v23 = vsel %vm3149_vm6, %v10071_v59, %v8157_v3  ;;  %v3164_v11 = vsel %vm3149_vm6, %v10073_v13, %v10071_v59  ;;  %v2371_v59 = vsel %vm2361_vm3, %v7533_v27, %v2338_v51 }
 0x343   : > { %10067 = vst [vmem:[#allocation115_spill] sm:$0xff] %v8171_v39  ;;  %10068 = vst [vmem:[#allocation116_spill] sm:$0xff] %v8173_v44  ;;  %v3236_v13 = vmul.f32 %v8040_v40, %v3161_v23  ;;  %v3235_v44 = vmul.f32 %v8026_v42, %v3164_v11  ;;  %v8219_v30 = vrot.slane %v10076_v16, %v8184_v56  ;;  %v10083_v42 = vld [vmem:[#allocation82_spill] sm:$0xff]  ;;  %v8267_v11 = vld [vmem:[#allocation12 + $0x38] sm:$0xff] }
 0x344   : > { %3605 = vrot.lane.b32.xlu0 %v7713_v58, %s7028_s27  ;;  %10094 = vst [vmem:[#allocation42_spill] sm:$0xff] %v8297_v21 }
 0x345   : > { %3833 = vrot.lane.b32.xlu1 %v7647_v60, %s7025_s19  ;;  %v8201_v60 = vrot.slane %v7858_v5, %v8184_v56  ;;  %10077 = vst [vmem:[#allocation83_spill] sm:$0xff] %v8219_v30  ;;  %v6617_v23 = vpack.c.bf16 %v3235_v44, %v3227_v22  ;;  %v8248_v44 = vld [vmem:[#allocation12 + $0x30] sm:$0xff]  ;;  %v8251_v22 = vsub.s32 7, %v10070_v46 }
 0x346   : > { %v8190_v0 = vpop.permute.xlu0 %3593  ;;  %v8196_v48 = vpop.permute.xlu1 %3127 }
 0x347   : > { %10072 = vst [vmem:[#allocation65_spill] sm:$0xff] %v8190_v0  ;;  %10074 = vst [vmem:[#allocation117_spill] sm:$0xff] %v8196_v48  ;;  %v3160_v3 = vsel %vm3149_vm6, %v7991_v32, %v8196_v48  ;;  %v10078_v48 = vld [vmem:[#allocation59_spill] sm:$0xff] }
 0x348   : > { %10075 = vst [vmem:[#allocation118_spill] sm:$0xff] %v8201_v60  ;;  %3611 = vrot.lane.b32.xlu0 %v10052_v28, %s7028_s27  ;;  %v3228_v9 = vmul.f32 %v8040_v40, %v3160_v3  ;;  %v8227_v40 = vmul.f32 %v8201_v60, %v2371_v59  ;;  %v8242_v3 = vrot.slane %v7858_v5, %v10083_v42  ;;  %10085 = vst [vmem:[#allocation123_spill] sm:$0xff] %v8251_v22  ;;  %v10086_v59 = vld [vmem:[#allocation27_spill] sm:$0xff] }
 0x349   : > { %3133 = vrot.lane.b32.xlu1 %v10055_v26, %s7022_s29 }
 0x34a   : > { %v2109_v32 = vpop.permute.xlu0 %2108  ;;  %v8224_v41 = vpop.permute.xlu1 %3591  ;;  %v6618_v27 = vpack.c.bf16 %v3236_v13, %v3228_v9  ;;  %10080 = vst [vmem:[#allocation119_spill] sm:$0xff] %v8227_v40  ;;  %v2380_v9 = vsel %vm2361_vm3, %v10086_v59, %v7525_v25  ;;  %v10088_v40 = vld [vmem:[#allocation26_spill] sm:$0xff]  ;;  %v8277_v25 = vrot.slane %v7919_v52, %v10083_v42  ;;  %v8349_v59 = vrot.slane %v10076_v16, %v8251_v22 }
 0x34b   : > { %v2142_v1 = vsel %vm2130_vm1, %v10078_v48, %v2109_v32  ;;  %10079 = vst [vmem:[#allocation59_spill] sm:$0xff] %v8224_v41 }
 0x34c   : > { %v8230_v51 = vmul.f32 %v8219_v30, %v2142_v1  ;;  %3365 = vrot.lane.b32.xlu0 %v10055_v26, %s7023_s25  ;;  %4841 = vmatprep.subr.bf16.mxu1 %v6618_v27  ;;  %v8246_v1 = vrot.slane %v7948_v20, %v10083_v42  ;;  %v8260_v27 = vsub.s32 0, %v10070_v46  ;;  %v8294_v42 = vld [vmem:[#allocation12 + $0x40] sm:$0xff]  ;;  %v8300_v20 = vsub.s32 6, %v10070_v46  ;;  %v10098_v46 = vld [vmem:[#allocation32_spill] sm:$0xff] }
 0x34d   : > { %3145 = vrot.lane.b32.xlu1 %v7455_v7, %s7022_s29  ;;  %4842 = vmatpush1.bf16.msra.mxu1 %v6617_v23  ;;  %v8265_v23 = vrot.slane %v8248_v44, %v7824_v38  ;;  %s6933_s29 = sshll.u32 %s7030_s13, 4  ;;  %s6934_s29 = int_to_ptr.vmem [resolvable:$false] %s6933_s29 }
 0x34e   : > { %10081 = vst [vmem:[#allocation120_spill] sm:$0xff] %v8230_v51  ;;  %v2121_v48 = vpop.permute.xlu0 %2120  ;;  %v8238_v13 = vpop.permute.xlu1 %2106  ;;  %10084 = vst [vmem:[#allocation122_spill] sm:$0xff] %v8246_v1  ;;  %v10087_v51 = vld [vmem:[#allocation39_spill] sm:$0xff]  ;;  %p6936_p4 = scmp.lt.s32.totalorder %s9701_s21, %s6934_s29 }
 0x34f   : > { %10082 = vst [vmem:[#allocation121_spill] sm:$0xff] %v8238_v13  ;;  %v3394_v30 = vsel %vm3381_vm7, %v10088_v40, %v10087_v51  ;;  %10089 = vst [vmem:[#allocation39_spill] sm:$0xff] %v8277_v25  ;;  %v8282_v13 = vrot.slane %v8267_v11, %v7824_v38  ;;  %v3626_v40 = vsel %vm3613_vm8, %v10093_v62, %v10092_v31 }
 0x350   : > { %3377 = vrot.lane.b32.xlu0 %v7455_v7, %s7023_s25  ;;  %10095 = vst [vmem:[#allocation125_spill] sm:$0xff] %v8300_v20  ;;  %v8314_v62 = vrot.slane %v7858_v5, %v8251_v22  ;;  %s6935_s25 = scalar_lea.vmem %s6934_s29, 512 }
 0x351   : > { %3839 = vrot.lane.b32.xlu1 %v7673_v8, %s7025_s19  ;;  %v2612_v8 = vsel %vm2593_vm4, %v10091_v55, %v7569_v36  ;;  %v8310_v36 = vrot.slane %v8294_v42, %v7824_v38  ;;  %v8322_v55 = vsel %vm2825_vm5, %v10098_v46, %v7540_v29  ;;  %v8329_v38 = vrot.slane %v7858_v5, %v8297_v21  ;;  %v10103_v46 = vld [vmem:[#allocation45_spill] sm:$0xff]  ;;  %p6937_p7 = scmp.lt.s32.totalorder %s6935_s25, %s6929_s15 }
 0x352   : > { %v8284_v1 = vpop.permute.xlu0 %2573  ;;  %v8302_v49 = vpop.permute.xlu1 %2118  ;;  %10097 = vst [vmem:[#allocation127_spill] sm:$0xff] %v8314_v62  ;;  %10099 = vst [vmem:[#allocation128_spill] sm:$0xff] %v8322_v55  ;;  %v8341_v29 = vmul.f32 %v8282_v13, %v3626_v40  ;;  %v8359_v40 = vrot.slane %v10076_v16, %v8297_v21 }
 0x353   : > { %10090 = vst [vmem:[#allocation124_spill] sm:$0xff] %v8284_v1  ;;  %10096 = vst [vmem:[#allocation126_spill] sm:$0xff] %v8302_v49  ;;  %v8305_v1 = vmul.f32 %v8242_v3, %v2380_v9  ;;  %v8325_v9 = vmul.f32 %v8265_v23, %v3394_v30  ;;  %v8333_v49 = vrot.slane %v7858_v5, %v8300_v20  ;;  %v10104_v30 = vld [vmem:[#allocation29_spill] sm:$0xff]  ;;  %p6938_p3 = por %p6937_p7, %p6936_p4 }
 0x354   : > { %3835 = vrot.lane.b32.xlu0 %v7448_v6, %s7025_s19  ;;  %10100 = vst [vmem:[#allocation129_spill] sm:$0xff] %v8329_v38  ;;  %v8338_v6 = vmul.f32 %v8277_v25, %v2612_v8  ;;  %v3858_v55 = vsel %vm3845_vm9, %v10104_v30, %v10103_v46  ;;  %v2151_v8 = vsel %vm2130_vm1, %v10105_v34, %v7671_v4  ;;  %10106 = vst [vmem:[#allocation45_spill] sm:$0xff] %v8359_v40 }
 0x355   : > { %10101 = vst [vmem:[#allocation130_spill] sm:$0xff] %v8333_v49  ;;  %3597 = vrot.lane.b32.xlu1 %v10055_v26, %s7028_s27  ;;  %v8370_v25 = vmul.f32 %v8314_v62, %v8096_v18  ;;  %v8387_v18 = vmul.f32 %v8333_v49, %v8130_v47  ;;  %v10115_v49 = vld [vmem:[#allocation78_spill] sm:$0xff]  ;;  %p6939_p5 = pnand %p6938_p3, %p6932_p10 }
 0x356   : > { %10102 = vst [vmem:[#allocation131_spill] sm:$0xff] %v8338_v6  ;;  %v8351_v63 = vpop.permute.xlu0 %2126  ;;  %v8363_v6 = vrot.slane %v10076_v16, %v8300_v20  ;;  %v2115_v30 = vpop.permute.xlu1 %2114  ;;  %v8383_v20 = vmul.f32 %v8329_v38, %v8134_v57  ;;  %v3656_v57 = vrot.slane %v8267_v11, %v7831_v45  ;;  %v10116_v38 = vld [vmem:[#allocation54_spill] sm:$0xff] }
 0x357   : > { %v2133_v22 = vsel %vm2130_vm1, %v2121_v48, %v8351_v63  ;;  %10108 = vst [vmem:[#allocation132_spill] sm:$0xff] %v8370_v25  ;;  %v2136_v4 = vsel %vm2130_vm1, %v2115_v30, %v2121_v48  ;;  %v2139_v21 = vsel %vm2130_vm1, %v2109_v32, %v2115_v30  ;;  %10111 = vst [vmem:[#allocation135_spill] sm:$0xff] %v8387_v18  ;;  %v10122_v18 = vld [vmem:[#allocation56_spill] sm:$0xff] }
 0x358   : > { %10107 = vst [vmem:[#allocation46_spill] sm:$0xff] %v8363_v6  ;;  %v8373_v60 = vmul.f32 %v8349_v59, %v2133_v22  ;;  %3829 = vrot.lane.b32.xlu0 %v10055_v26, %s7025_s19  ;;  %10110 = vst [vmem:[#allocation134_spill] sm:$0xff] %v8383_v20  ;;  %v8390_v22 = vmul.f32 %v8359_v40, %v2139_v21  ;;  %v8393_v62 = vmul.f32 %v8363_v6, %v2136_v4  ;;  %v10114_v26 = vld [vmem:[#allocation86_spill] sm:$0xff]  ;;  %v10117_v21 = vld [vmem:[#allocation67_spill] sm:$0xff] }
 0x359   : > { %3609 = vrot.lane.b32.xlu1 %v7455_v7, %s7028_s27  ;;  %v8398_v32 = vmul.f32 %v8310_v36, %v3858_v55  ;;  %v8401_v48 = vmul.f32 %v10114_v26, %v2151_v8  ;;  %v3424_v30 = vrot.slane %v8248_v44, %v7831_v45  ;;  %v8413_v4 = vrot.slane %v8294_v42, %v7831_v45  ;;  %v10130_v40 = vld [vmem:[#allocation81_spill] sm:$0xff] }
 0x35a   : > { %10109 = vst [vmem:[#allocation133_spill] sm:$0xff] %v8373_v60  ;;  %10112 = vst [vmem:[#allocation136_spill] sm:$0xff] %v8390_v22  ;;  %v8405_v47 = vpop.permute.xlu0 %2591  ;;  %v2348_v8 = vpop.permute.xlu1 %2347  ;;  %v3396_v6 = vsel %vm3381_vm7, %v10116_v38, %v10115_v49  ;;  %v3395_v60 = vsel %vm3381_vm7, %v10117_v21, %v7985_v50  ;;  %v3391_v26 = vsel %vm3381_vm7, %v10087_v51, %v8060_v24  ;;  %v10121_v24 = vld [vmem:[#allocation73_spill] sm:$0xff] }
 0x35b   : > { %10113 = vst [vmem:[#allocation137_spill] sm:$0xff] %v8393_v62  ;;  %v8430_v45 = vsel %vm2361_vm3, %v2348_v8, %v8151_v10  ;;  %v8435_v55 = vsel %vm2361_vm3, %v8136_v17, %v2348_v8  ;;  %v8445_v62 = vrot.slane %v7919_v52, %v8184_v56  ;;  %v8449_v10 = vrot.slane %v10076_v16, %v8260_v27 }
 0x35c   : > { %10118 = vst [vmem:[#allocation86_spill] sm:$0xff] %v8430_v45  ;;  %10119 = vst [vmem:[#allocation78_spill] sm:$0xff] %v8435_v55  ;;  %3841 = vrot.lane.b32.xlu0 %v7455_v7, %s7025_s19  ;;  %v3393_v8 = vsel %vm3381_vm7, %v10115_v49, %v8171_v39  ;;  %v10120_v7 = vld [vmem:[#allocation47_spill] sm:$0xff]  ;;  %v3628_v22 = vsel %vm3613_vm8, %v10122_v18, %v10121_v24  ;;  %v8467_v16 = vrot.slane %v7858_v5, %v8260_v27 }
 0x35d   : > { %3831 = vrot.lane.b32.xlu1 %v7773_v19, %s7025_s19  ;;  %v2382_v51 = vsel %vm2361_vm3, %v10120_v7, %v7689_v2  ;;  %v3467_v19 = vmul.f32 %v8265_v23, %v3396_v6  ;;  %v3459_v39 = vmul.f32 %v8265_v23, %v3395_v60  ;;  %v3623_v2 = vsel %vm3613_vm8, %v10092_v31, %v8042_v35  ;;  %v10125_v23 = vld [vmem:[#allocation48_spill] sm:$0xff]  ;;  %v10127_v49 = vld [vmem:[#allocation55_spill] sm:$0xff] }
 0x35e   : > { %v8469_v20 = vpop.permute.xlu0 %3359  ;;  %v8483_v25 = vpop.permute.xlu1 %2571  ;;  %v3452_v45 = vmul.f32 %v3424_v30, %v3391_v26  ;;  %v3468_v55 = vmul.f32 %v3424_v30, %v3393_v8  ;;  %v3624_v6 = vsel %vm3613_vm8, %v8021_v54, %v8224_v41  ;;  %v8492_v31 = vmul.f32 %v8242_v3, %v2382_v51  ;;  %v10126_v8 = vld [vmem:[#allocation84_spill] sm:$0xff] }
 0x35f   : > { %10123 = vst [vmem:[#allocation54_spill] sm:$0xff] %v8469_v20  ;;  %v3392_v5 = vsel %vm3381_vm7, %v7985_v50, %v8469_v20  ;;  %10124 = vst [vmem:[#allocation67_spill] sm:$0xff] %v8483_v25  ;;  %v8498_v50 = vsel %vm2593_vm4, %v10125_v23, %v7729_v33  ;;  %v8501_v26 = vmul.f32 %v8282_v13, %v3628_v22  ;;  %v10128_v51 = vld [vmem:[#allocation60_spill] sm:$0xff] }
 0x360   : > { %v3460_v60 = vmul.f32 %v3424_v30, %v3392_v5  ;;  %3837 = vrot.lane.b32.xlu0 %v7713_v58, %s7025_s19  ;;  %v3860_v30 = vsel %vm3845_vm9, %v10127_v49, %v10126_v8  ;;  %v5304_v58 = vld [vmem:[%s9750_s6] sm:$0xff]  ;;  %v2381_v33 = vsel %vm2361_vm3, %v10128_v51, %v7833_v14  ;;  %v3684_v5 = vmul.f32 %v3656_v57, %v3623_v2 }
 0x361   : > { %3843 = vrot.lane.b32.xlu1 %v10052_v28, %s7025_s19  ;;  %v3625_v22 = vsel %vm3613_vm8, %v10121_v24, %v8190_v0  ;;  %v5305_v28 = vld [vmem:[%s9750_s6 + $0x8] sm:$0xff]  ;;  %v6633_v35 = vpack.c.bf16 %v8341_v29, %v3467_v19  ;;  %v6625_v25 = vpack.c.bf16 %v3459_v39, %v8325_v9  ;;  %v3627_v14 = vsel %vm3613_vm8, %v10130_v40, %v8021_v54 }
 0x362   : > { %v8520_v41 = vpop.permute.xlu0 %3823  ;;  %v6626_v20 = vpack.c.bf16 %v3460_v60, %v3452_v45  ;;  %v3692_v2 = vmul.f32 %v3656_v57, %v3624_v6  ;;  %v8531_v49 = vpop.permute.xlu1 %2583  ;;  %v8534_v24 = vmul.f32 %v8310_v36, %v3860_v30  ;;  %v2373_v45 = vsel %vm2361_vm3, %v7701_v37, %v8136_v17  ;;  %v5119_v19 = vld [vmem:[%s9749_s5 + $0x8] sm:$0xff]  ;;  %v10131_v37 = vld [vmem:[#allocation75_spill] sm:$0xff] }
 0x363   : > { %10129 = vst [vmem:[#allocation47_spill] sm:$0xff] %v8520_v41  ;;  %v6634_v29 = vpack.c.bf16 %v3684_v5, %v3468_v55  ;;  %v8541_v39 = vmul.f32 %v8242_v3, %v2381_v33  ;;  %v3700_v9 = vmul.f32 %v3656_v57, %v3625_v22  ;;  %v3856_v54 = vsel %vm3845_vm9, %v8017_v15, %v8520_v41  ;;  %v10132_v57 = vld [vmem:[#allocation24_spill] sm:$0xff]  ;;  %v5118_v6 = vld [vmem:[%s9749_s5] sm:$0xff]  ;;  %v10177_v41 = vld [vmem:[#allocation74_spill] sm:$0xff] }
 0x364   : > { %4843 = vmatprep.subr.bf16.mxu1 %v6626_v20  ;;  %5309 = vperm.xlu0 %6771, %v5304_v58   ;;  %v3859_v17 = vsel %vm3845_vm9, %v10131_v37, %v8017_v15  ;;  %v3691_v20 = vmul.f32 %v8282_v13, %v3627_v14  ;;  %v3855_v3 = vsel %vm3845_vm9, %v10103_v46, %v8068_v43  ;;  %v10133_v13 = vld [vmem:[#allocation118_spill] sm:$0xff]  ;;  %v10135_v46 = vld [vmem:[#allocation87_spill] sm:$0xff]  ;;  %v6796_v0 = vld [vmem:[#allocation2 + $0x88] sm:$0xff] }
 0x365   : > { %4844 = vmatpush1.bf16.msra.mxu1 %v6625_v25  ;;  %5314 = vperm.xlu1 %6772, %v5305_v28   ;;  %v2152_v25 = vsel %vm2130_vm1, %v8084_v53, %v10132_v57  ;;  %v3857_v15 = vsel %vm3845_vm9, %v10126_v8, %v8122_v12  ;;  %v8573_v60 = vmul.f32 %v10133_v13, %v2373_v45  ;;  %v10137_v8 = vld [vmem:[#allocation58_spill] sm:$0xff]  ;;  %v10141_v57 = vld [vmem:[#allocation104_spill] sm:$0xff] }
 0x366   : > { %v8563_v55 = vpop.permute.xlu0 %2339  ;;  %4845 = vmatprep.subr.bf16.mxu1 %v6634_v29  ;;  %v2125_v30 = vpop.permute.xlu1 %2124  ;;  %v6642_v58 = vpack.c.bf16 %v3700_v9, %v3692_v2  ;;  %v2154_v33 = vsel %vm2130_vm1, %v8351_v63, %v10105_v34  ;;  %v3924_v5 = vmul.f32 %v8413_v4, %v3856_v54  ;;  %v10138_v14 = vld [vmem:[#allocation90_spill] sm:$0xff]  ;;  %v2197_v29 = vmul.f32 %v8449_v10, %v2152_v25  ;;  %v5120_v34 = vld [vmem:[%s9749_s5 + $0x10] sm:$0xff]  ;;  %v10176_v25 = vld [vmem:[#allocation64_spill] sm:$0xff] }
 0x367   : > { %10134 = vst [vmem:[#allocation73_spill] sm:$0xff] %v8573_v60  ;;  %v2372_v53 = vsel %vm2361_vm3, %v10135_v46, %v8563_v55  ;;  %v2153_v28 = vsel %vm2130_vm1, %v2125_v30, %v10137_v8  ;;  %v10139_v45 = vld [vmem:[#allocation62_spill] sm:$0xff]  ;;  %v3923_v63 = vmul.f32 %v8310_v36, %v3859_v17  ;;  %v3916_v54 = vmul.f32 %v8413_v4, %v3855_v3  ;;  %v10142_v8 = vld [vmem:[#allocation124_spill] sm:$0xff] }
 0x368   : > { %v8585_v22 = vmul.f32 %v10133_v13, %v2372_v53  ;;  %5128 = vperm.xlu0 %6771, %v5119_v19   ;;  %v2613_v2 = vsel %vm2593_vm4, %v10139_v45, %v10138_v14  ;;  %v2205_v9 = vmul.f32 %v8449_v10, %v2153_v28  ;;  %v10140_v19 = vld [vmem:[#allocation27_spill] sm:$0xff]  ;;  %v2213_v53 = vmul.f32 %v8449_v10, %v2154_v33 }
 0x369   : > { %4846 = vmatpush1.bf16.msra.mxu1 %v6633_v35  ;;  %5123 = vperm.xlu1 %6772, %v5118_v6   ;;  %v2383_v13 = vsel %vm2361_vm3, %v10141_v57, %v10140_v19  ;;  %v6641_v35 = vpack.c.bf16 %v8501_v26, %v3691_v20  ;;  %v3932_v6 = vmul.f32 %v8413_v4, %v3857_v15  ;;  %v5306_v4 = vld [vmem:[%s9750_s6 + $0x10] sm:$0xff]  ;;  %v10146_v15 = vld [vmem:[#allocation126_spill] sm:$0xff] }
 0x36a   : > { %10136 = vst [vmem:[#allocation56_spill] sm:$0xff] %v8585_v22  ;;  %v8607_v46 = vpop.permute.xlu0 %2351  ;;  %4847 = vmatprep.subr.bf16.mxu1 %v6642_v58  ;;  %v6551_v36 = vpack.c.bf16 %v2205_v9, %v2197_v29  ;;  %v8612_v17 = vpop.permute.xlu1 %2579  ;;  %v6657_v3 = vpack.c.bf16 %v8534_v24, %v8534_v24  ;;  %v6650_v14 = vpack.c.bf16 %v3924_v5, %v3916_v54  ;;  %v10143_v58 = vld [vmem:[#allocation93_spill] sm:$0xff]  ;;  %v10147_v5 = vld [vmem:[#allocation39_spill] sm:$0xff]  ;;  %v10148_v9 = vld [vmem:[#allocation66_spill] sm:$0xff] }
 0x36b   : > { %v8620_v28 = vsel %vm2593_vm4, %v10142_v8, %v8612_v17  ;;  %v8624_v26 = vrot.slane %v10143_v58, %v8184_v56  ;;  %v2429_v10 = vmul.f32 %v8467_v16, %v2383_v13  ;;  %v10145_v24 = vld [vmem:[#allocation113_spill] sm:$0xff]  ;;  %v2132_v33 = vsel %vm2130_vm1, %v10146_v15, %v2125_v30 }
 0x36c   : > { %5133 = vperm.xlu0 %6771, %v5120_v34   ;;  %v2385_v20 = vsel %vm2361_vm3, %v10145_v24, %v10120_v7  ;;  %4755 = vmatpush1.bf16.msra.mxu0 %v6551_v36  ;;  %v2670_v29 = vmul.f32 %v10147_v5, %v2613_v2  ;;  %v2605_v34 = vsel %vm2593_vm4, %v10148_v9, %v10142_v8  ;;  %v10154_v8 = vld [vmem:[#allocation30_spill] sm:$0xff]  ;;  %v4737_v9 = vsel %vm1975_vm0, %v6657_v3, 0  ;;  %v10157_v3 = vld [vmem:[#allocation89_spill] sm:$0xff] }
 0x36d   : > { %10144 = vst [vmem:[#allocation48_spill] sm:$0xff] %v8624_v26  ;;  %4848 = vmatpush1.bf16.msra.mxu1 %v6641_v35  ;;  %v10149_v54 = vpack.c.bf16 %v8305_v1, %v8401_v48  ;;  %v6568_v7 = vpack.c.bf16 %v8492_v31, %v8541_v39  ;;  %v6649_v30 = vpack.c.bf16 %v3923_v63, %v8398_v32  ;;  %v10150_v31 = vld [vmem:[#allocation35_spill] sm:$0xff]  ;;  %v10184_v22 = vld [vmem:[#allocation69_spill] sm:$0xff] }
 0x36e   : > { %v8645_v19 = vpop.permute.xlu0 %2357  ;;  %4849 = vmatprep.subr.bf16.mxu1 %v6650_v14  ;;  %v6658_v57 = vpack.c.bf16 %v3932_v6, %v3932_v6  ;;  %v6559_v13 = vpack.c.bf16 %v2429_v10, %v2213_v53  ;;  %5319 = vperm.xlu1 %6772, %v5306_v4   ;;  %v2445_v1 = vmul.f32 %v8467_v16, %v2385_v20  ;;  %v5788_v39 = vld [vmem:[%s9752_s8] sm:$0x3] }
 0x36f   : > { %4756 = vmatprep.subr.bf16.mxu0 %v10149_v54  ;;  %v2384_v2 = vsel %vm2361_vm3, %v8645_v19, %v10128_v51  ;;  %v8654_v35 = vpop.permute.xlu1 %2801  ;;  %v2212_v48 = vmul.f32 %v8349_v59, %v2132_v33  ;;  %v2624_v51 = vrot.slane %v7919_v52, %v8260_v27  ;;  %v8669_v63 = vmul.f32 %v8445_v62, %v2605_v34  ;;  %v10155_v14 = vld [vmem:[#allocation23_spill] sm:$0xff] }
 0x370   : > { %v2437_v36 = vmul.f32 %v8467_v16, %v2384_v2  ;;  %v2835_v32 = vsel %vm2825_vm5, %v10150_v31, %v8654_v35  ;;  %4757 = vmatpush1.bf16.msra.mxu0 %v6559_v13  ;;  %v10153_v16 = vld [vmem:[#allocation63_spill] sm:$0xff]  ;;  %v2615_v4 = vsel %vm2593_vm4, %v10155_v14, %v10154_v8  ;;  %v2678_v52 = vmul.f32 %v10147_v5, %v8498_v50  ;;  %v10162_v31 = vld [vmem:[#allocation106_spill] sm:$0xff] }
 0x371   : > { %10151 = vst [vmem:[#allocation84_spill] sm:$0xff] %v8669_v63  ;;  %v8672_v6 = vmul.f32 %v8624_v26, %v2835_v32  ;;  %4850 = vmatpush1.bf16.msra.mxu1 %v6649_v30  ;;  %v2204_v53 = vmul.f32 %v8349_v59, %v10153_v16  ;;  %4758 = vmatprep.subr.bf16.mxu0 %v6568_v7  ;;  %v10156_v5 = vld [vmem:[#allocation131_spill] sm:$0xff]  ;;  %v10163_v16 = vld [vmem:[#allocation68_spill] sm:$0xff]  ;;  %v10175_v59 = vld [vmem:[#allocation50_spill] sm:$0xff] }
 0x372   : > { %v6567_v10 = vpack.c.bf16 %v2445_v1, %v2437_v36  ;;  %v8680_v24 = vpop.permute.xlu0 %2585  ;;  %6417 = vmatprep.subr.msk.bf16.mxu1 %vm1975_vm0, %v6658_v57  ;;  %v2856_v20 = vrot.slane %v10143_v58, %v8260_v27  ;;  %5791 = vperm.xlu1 %6772, %v5788_v39   ;;  %v2617_v34 = vsel %vm2593_vm4, %v8405_v47, %v10125_v23  ;;  %v8704_v30 = vld [vmem:[%s9748_s4] ss:$8 sps:$4 sm:$0xff]   ;;  %v10158_v57 = vld [vmem:[#allocation61_spill] sm:$0xff]  ;;  %v10160_v1 = vld [vmem:[#allocation122_spill] sm:$0xff] }
 0x373   : > { %10152 = vst [vmem:[#allocation60_spill] sm:$0xff] %v8672_v6  ;;  %v8689_v33 = vpop.permute.xlu1 %2589  ;;  %v6576_v54 = vpack.c.bf16 %v2670_v29, %v10156_v5  ;;  %v6558_v7 = vpack.c.bf16 %v2212_v48, %v2204_v53  ;;  %v2845_v13 = vsel %vm2825_vm5, %v10158_v57, %v10157_v3  ;;  %v2661_v2 = vmul.f32 %v2624_v51, %v2615_v4  ;;  %v10159_v29 = vld [vmem:[#allocation128_spill] sm:$0xff]  ;;  %v10164_v53 = vld [vmem:[#allocation49_spill] sm:$0xff] }
 0x374   : > { %v2616_v50 = vsel %vm2593_vm4, %v8689_v33, %v10139_v45  ;;  %4759 = vmatpush1.bf16.msra.mxu0 %v6567_v10  ;;  %v8713_v45 = vld [vmem:[%s9748_s4 + $0x14] ss:$8 sps:$4 sm:$0xff]   ;;  %v2894_v48 = vmul.f32 %v10160_v1, %v10159_v29  ;;  %v10161_v36 = vld [vmem:[#allocation32_spill] sm:$0xff]  ;;  %v2846_v8 = vsel %vm2825_vm5, %v10164_v53, %v10163_v16  ;;  %v2677_v14 = vmul.f32 %v2624_v51, %v2617_v34 }
 0x375   : > { %v2669_v23 = vmul.f32 %v2624_v51, %v2616_v50  ;;  %4852 = vmatpush1.bf16.msra.mxu1 %v4737_v9  ;;  %v2847_v32 = vsel %vm2825_vm5, %v10162_v31, %v10161_v36  ;;  %4760 = vmatprep.subr.bf16.mxu0 %v6576_v54  ;;  %v2902_v9 = vmul.f32 %v10160_v1, %v2845_v13  ;;  %v10165_v54 = vld [vmem:[#allocation116_spill] sm:$0xff]  ;;  %v10168_v16 = vld [vmem:[#allocation25_spill] sm:$0xff] }
 0x376   : > { %v8721_v39 = vpop.permute.xlu0 %2807  ;;  %4967 = vmatprep.subr.bf16.mxu1 %v6558_v7  ;;  %v6584_v50 = vpack.c.bf16 %v2894_v48, %v2678_v52  ;;  %v2893_v5 = vmul.f32 %v2856_v20, %v2847_v32  ;;  %v2849_v7 = vsel %vm2825_vm5, %v10165_v54, %v10164_v53  ;;  %v2910_v51 = vmul.f32 %v10160_v1, %v2846_v8  ;;  %v8751_v1 = vld [vmem:[%s9748_s4 + $0x10] ss:$8 sps:$4 sm:$0xff]   ;;  %v10169_v53 = vld [vmem:[#allocation43_spill] sm:$0xff] }
 0x377   : > { %v6575_v4 = vpack.c.bf16 %v2669_v23, %v2661_v2  ;;  %v8727_v10 = vpop.permute.xlu1 %2813  ;;  %v10166_v2 = vld [vmem:[#allocation82_spill] sm:$0xff]  ;;  %v2909_v48 = vmul.f32 %v2856_v20, %v2849_v7  ;;  %v3165_v8 = vsel %vm3149_vm6, %v10169_v53, %v10168_v16 }
 0x378   : > { %4858 = vmatmul.mubr.bf16.vlgmr.msra.gmra.mrb[8].mxu1 %v8704_v30  ;;  %v6583_v3 = vpack.c.bf16 %v2893_v5, %v2677_v14  ;;  %v10167_v23 = vld [vmem:[#allocation98_spill] sm:$0xff]  ;;  %v6592_v32 = vpack.c.bf16 %v2910_v51, %v2902_v9  ;;  %v6792_v51 = vld [vmem:[#allocation2 + $0x48] sm:$0xff] }
 0x379   : > { %4761 = vmatpush1.bf16.msra.mxu0 %v6575_v4  ;;  %6419 = vmatprep.mubr.msk.bf16.mxu1 %vm4717_vm2, %v8713_v45  ;;  %v3184_v29 = vrot.slane %v10167_v23, %v10166_v2  ;;  %v3180_v4 = vrot.slane %v10167_v23, %v8260_v27 }
 0x37a   : > { %4762 = vmatprep.subr.bf16.mxu0 %v6584_v50  ;;  %v8738_v34 = vpop.permute.xlu0 %2821  ;;  %v10172_v50 = vld [vmem:[#allocation33_spill] sm:$0xff] }
 0x37b   : > { %v2848_v52 = vsel %vm2825_vm5, %v8738_v34, %v10158_v57  ;;  %v8744_v13 = vpop.permute.xlu1 %2805  ;;  %v8760_v57 = vld [vmem:[%s9748_s4 + $0x24] ss:$8 sps:$4 sm:$0xff]   ;;  %v3168_v5 = vsel %vm3149_vm6, %v10172_v50, %v10169_v53  ;;  %v3218_v7 = vmul.f32 %v3184_v29, %v3165_v8  ;;  %v4035_v53 = vld [vmem:[%s9748_s4 + $0x30] sm:$0x11] }
 0x37c   : > { %v2901_v36 = vmul.f32 %v2856_v20, %v2848_v52  ;;  %10170 = vst [vmem:[#allocation81_spill] sm:$0xff] %v8760_v57  ;;  %v3217_v8 = vmul.f32 %v3180_v4, %v3168_v5  ;;  %v8797_v5 = vld [vmem:[%s9748_s4 + $0x20] ss:$8 sps:$4 sm:$0xff]   ;;  %v10183_v50 = vld [vmem:[#allocation37_spill] sm:$0xff] }
 0x37d   : > { %4763 = vmatpush1.bf16.msra.mxu0 %v6583_v3  ;;  %v6793_v3 = vld [vmem:[#allocation2 + $0x8] sm:$0xff]  ;;  %v6608_v63 = vpack.c.bf16 %v3218_v7, %v6796_v0  ;;  %10178 = vst [vmem:[#allocation24_spill] sm:$0xff] %v8797_v5 }
 0x37e   : > { %v6591_v14 = vpack.c.bf16 %v2909_v48, %v2901_v36  ;;  %4764 = vmatprep.subr.bf16.mxu0 %v6592_v32  ;;  %v8762_v20 = vpop.permute.xlu0 %2803  ;;  %v6600_v52 = vpack.c.bf16 %v6792_v51, %v6793_v3  ;;  %v10173_v48 = vld [vmem:[#allocation72_spill] sm:$0xff]  ;;  %v10174_v36 = vld [vmem:[#allocation95_spill] sm:$0xff]  ;;  %v3167_v51 = vsel %vm3149_vm6, %v10176_v25, %v10175_v59  ;;  %v10179_v59 = vld [vmem:[#allocation94_spill] sm:$0xff] }
 0x37f   : > { %v8766_v9 = vpop.permute.xlu1 %2811  ;;  %v3166_v32 = vsel %vm3149_vm6, %v10174_v36, %v10173_v48  ;;  %v6794_v48 = vld [vmem:[#allocation2 + $0x40] sm:$0xff]  ;;  %v3398_v6 = vsel %vm3381_vm7, %v10179_v59, %v10117_v21  ;;  %v3234_v7 = vmul.f32 %v3184_v29, %v3167_v51  ;;  %v3401_v60 = vsel %vm3381_vm7, %v10184_v22, %v10179_v59 }
 0x380   : > { %10171 = vst [vmem:[#allocation75_spill] sm:$0xff] %v8766_v9  ;;  %4868 = vmatmul.mubr.bf16.gmra.mrb[12].mxu1 %v8751_v1  ;;  %v3226_v43 = vmul.f32 %v3184_v29, %v3166_v32  ;;  %v3412_v29 = vrot.slane %v8248_v44, %v8260_v27 }
 0x381   : > { %4765 = vmatpush1.bf16.msra.mxu0 %v6591_v14  ;;  %6420 = vmatprep.mubr.msk.bf16.mxu1 %vm4717_vm2, %v8760_v57  ;;  %v6795_v14 = vld [vmem:[#allocation2] sm:$0xff] }
 0x382   : > { %4766 = vmatprep.subr.bf16.mxu0 %v6600_v52  ;;  %v8779_v16 = vpop.permute.xlu0 %2815  ;;  %v6599_v12 = vpack.c.bf16 %v6794_v48, %v6795_v14  ;;  %v3169_v52 = vsel %vm3149_vm6, %v10177_v41, %v10174_v36  ;;  %v8803_v48 = vcombine.high %v4035_v53, %v4035_v53  ;;  %v3416_v14 = vrot.slane %v8248_v44, %v10166_v2  ;;  %v10181_v36 = vld [vmem:[#allocation52_spill] sm:$0xff]  ;;  %v10182_v41 = vld [vmem:[#allocation26_spill] sm:$0xff] }
 0x383   : > { %v8788_v3 = vpop.permute.xlu1 %2817  ;;  %v3170_v0 = vsel %vm3149_vm6, %v10181_v36, %v10176_v25  ;;  %v3397_v21 = vsel %vm3381_vm7, %v10183_v50, %v10182_v41  ;;  %v3225_v57 = vmul.f32 %v3180_v4, %v3169_v52  ;;  %v10185_v41 = vld [vmem:[#allocation76_spill] sm:$0xff]  ;;  %v10191_v36 = vld [vmem:[#allocation51_spill] sm:$0xff] }
 0x384   : > { %10180 = vst [vmem:[#allocation118_spill] sm:$0xff] %v8803_v48  ;;  %v3458_v25 = vmul.f32 %v3416_v14, %v3398_v6  ;;  %v3233_v51 = vmul.f32 %v3180_v4, %v3170_v0  ;;  %v10186_v52 = vld [vmem:[#allocation28_spill] sm:$0xff]  ;;  %v3450_v59 = vmul.f32 %v3416_v14, %v3397_v21  ;;  %v10188_v0 = vld [vmem:[#allocation34_spill] sm:$0xff] }
 0x385   : > { %4767 = vmatpush1.bf16.msra.mxu0 %v6599_v12  ;;  %v6797_v12 = vld [vmem:[#allocation2 + $0x80] sm:$0xff]  ;;  %v3400_v6 = vsel %vm3381_vm7, %v10186_v52, %v10183_v50  ;;  %v3402_v50 = vsel %vm3381_vm7, %v10191_v36, %v10185_v41 }
 0x386   : > { %4768 = vmatprep.subr.bf16.mxu0 %v6608_v63  ;;  %v8811_v32 = vpop.permute.xlu0 %3131  ;;  %v6607_v26 = vpack.c.bf16 %v3217_v8, %v6797_v12  ;;  %v6616_v63 = vpack.c.bf16 %v3234_v7, %v3226_v43  ;;  %v3399_v8 = vsel %vm3381_vm7, %v10185_v41, %v10116_v38  ;;  %v3648_v43 = vrot.slane %v8267_v11, %v10166_v2  ;;  %v10189_v7 = vld [vmem:[#allocation40_spill] sm:$0xff] }
 0x387   : > { %v8817_v9 = vpop.permute.xlu1 %3137  ;;  %v3629_v38 = vsel %vm3613_vm8, %v10189_v7, %v10188_v0  ;;  %v6615_v12 = vpack.c.bf16 %v3233_v51, %v3225_v57  ;;  %v3466_v21 = vmul.f32 %v3416_v14, %v3399_v8  ;;  %v6624_v52 = vpack.c.bf16 %v3458_v25, %v3450_v59  ;;  %v10194_v57 = vld [vmem:[#allocation36_spill] sm:$0xff]  ;;  %v10196_v25 = vld [vmem:[#allocation53_spill] sm:$0xff] }
 0x388   : > { %4878 = vmatmul.mubr.bf16.gmra.mrb[16].mxu1 %v8797_v5  ;;  %v3644_v5 = vrot.slane %v8267_v11, %v8260_v27  ;;  %v3632_v51 = vsel %vm3613_vm8, %v10194_v57, %v10189_v7  ;;  %v3682_v41 = vmul.f32 %v3648_v43, %v3629_v38  ;;  %v10195_v14 = vld [vmem:[#allocation80_spill] sm:$0xff]  ;;  %v3465_v0 = vmul.f32 %v3412_v29, %v3402_v50  ;;  %v10200_v38 = vld [vmem:[#allocation85_spill] sm:$0xff] }
 0x389   : > { %4769 = vmatpush1.bf16.msra.mxu0 %v6607_v26  ;;  %6421 = vmatprep.mubr.msk.bf16.mxu1 %vm4717_vm2, %v8803_v48  ;;  %v3457_v26 = vmul.f32 %v3412_v29, %v3401_v60  ;;  %v8850_v48 = vcombine.low %v4035_v53, %v4035_v53  ;;  %v3866_v53 = vsel %vm3845_vm9, %v10196_v25, %v10195_v14 }
 0x38a   : > { %4770 = vmatprep.subr.bf16.mxu0 %v6616_v63  ;;  %v8838_v4 = vpop.permute.xlu0 %3143  ;;  %v3449_v63 = vmul.f32 %v3412_v29, %v3400_v6  ;;  %v3876_v6 = vrot.slane %v8294_v42, %v8260_v27  ;;  %v6632_v57 = vpack.c.bf16 %v3682_v41, %v3466_v21  ;;  %v3681_v36 = vmul.f32 %v3644_v5, %v3632_v51  ;;  %v8888_v29 = vld [vmem:[%s9748_s4 + $0x4] ss:$8 sps:$4 sm:$0xff]   ;;  %v10206_v51 = vld [vmem:[#allocation29_spill] sm:$0xff] }
 0x38b   : > { %10187 = vst [vmem:[#allocation87_spill] sm:$0xff] %v8838_v4  ;;  %v8844_v22 = vpop.permute.xlu1 %3139  ;;  %10192 = vst [vmem:[#allocation90_spill] sm:$0xff] %v8850_v48  ;;  %v10193_v4 = vld [vmem:[#allocation97_spill] sm:$0xff]  ;;  %v10207_v41 = vld [vmem:[#allocation44_spill] sm:$0xff] }
 0x38c   : > { %10190 = vst [vmem:[#allocation58_spill] sm:$0xff] %v8844_v22  ;;  %v3630_v60 = vsel %vm3613_vm8, %v10193_v4, %v10130_v40  ;;  %v10198_v40 = vld [vmem:[#allocation71_spill] sm:$0xff]  ;;  %v3633_v25 = vsel %vm3613_vm8, %v10200_v38, %v10193_v4  ;;  %v3929_v27 = vmul.f32 %v3876_v6, %v3866_v53  ;;  %v10201_v22 = vld [vmem:[#allocation96_spill] sm:$0xff]  ;;  %10202 = vst [vmem:[#allocation104_spill] sm:$0xff] %v8888_v29 }
 0x38d   : > { %4771 = vmatpush1.bf16.msra.mxu0 %v6615_v12  ;;  %v3631_v59 = vsel %vm3613_vm8, %v10198_v40, %v10122_v18  ;;  %v6623_v12 = vpack.c.bf16 %v3457_v26, %v3449_v63  ;;  %v3862_v18 = vsel %vm3845_vm9, %v10201_v22, %v10131_v37  ;;  %v3880_v4 = vrot.slane %v8294_v42, %v10166_v2  ;;  %v10203_v26 = vld [vmem:[#allocation57_spill] sm:$0xff]  ;;  %v10204_v63 = vld [vmem:[#allocation55_spill] sm:$0xff] }
 0x38e   : > { %4772 = vmatprep.subr.bf16.mxu0 %v6624_v52  ;;  %v8866_v8 = vpop.permute.xlu0 %3135  ;;  %v3690_v52 = vmul.f32 %v3648_v43, %v3630_v60  ;;  %v3634_v50 = vsel %vm3613_vm8, %v10203_v26, %v10198_v40  ;;  %v3698_v21 = vmul.f32 %v3648_v43, %v3631_v59  ;;  %v3863_v37 = vsel %vm3845_vm9, %v10195_v14, %v10204_v63  ;;  %v10209_v40 = vld [vmem:[#allocation31_spill] sm:$0xff]  ;;  %v10210_v59 = vld [vmem:[#allocation77_spill] sm:$0xff] }
 0x38f   : > { %10197 = vst [vmem:[#allocation62_spill] sm:$0xff] %v8866_v8  ;;  %v8874_v7 = vpop.permute.xlu1 %3363  ;;  %v3861_v53 = vsel %vm3845_vm9, %v10207_v41, %v10206_v51  ;;  %v6631_v2 = vpack.c.bf16 %v3681_v36, %v3465_v0  ;;  %v3864_v43 = vsel %vm3845_vm9, %v10209_v40, %v10207_v41  ;;  %v3922_v14 = vmul.f32 %v3880_v4, %v3862_v18  ;;  %v8920_v0 = vld [vmem:[#allocation2 + $0x68] sm:$0xff]  ;;  %v8926_v40 = vld [vmem:[#allocation2 + $0x70] sm:$0xff]  ;;  %v10221_v41 = vld [vmem:[#allocation123_spill] sm:$0xff] }
 0x390   : > { %10199 = vst [vmem:[#allocation27_spill] sm:$0xff] %v8874_v7  ;;  %4888 = vmatmul.mubr.bf16.gmra.mrb[20].mxu1 %v8850_v48  ;;  %v6640_v63 = vpack.c.bf16 %v3698_v21, %v3690_v52  ;;  %v3697_v26 = vmul.f32 %v3644_v5, %v3634_v50  ;;  %v6655_v48 = vpack.c.bf16 %v3929_v27, %v3929_v27  ;;  %10212 = vst [vmem:[#allocation126_spill] sm:$0xff] %v8920_v0  ;;  %v8922_v51 = vld [vmem:[#allocation2 + $0x28] sm:$0xff]  ;;  %v8932_v52 = vld [vmem:[#allocation2 + $0x60] sm:$0xff] }
 0x391   : > { %4773 = vmatpush1.bf16.msra.mxu0 %v6623_v12  ;;  %6428 = vmatprep.mubr.msk.bf16.mxu1 %vm4717_vm2, %v8888_v29  ;;  %v3689_v12 = vmul.f32 %v3644_v5, %v3633_v25  ;;  %v3930_v29 = vmul.f32 %v3880_v4, %v3863_v37  ;;  %v3914_v36 = vmul.f32 %v3880_v4, %v3861_v53  ;;  %v8934_v27 = vld [vmem:[#allocation2 + $0x20] sm:$0xff]  ;;  %v8940_v53 = vld [vmem:[#allocation2 + $0x78] sm:$0xff]  ;;  %v10223_v18 = vld [vmem:[#allocation125_spill] sm:$0xff] }
 0x392   : > { %4774 = vmatprep.subr.bf16.mxu0 %v6632_v57  ;;  %v8902_v60 = vpop.permute.xlu0 %3141  ;;  %v3865_v57 = vsel %vm3845_vm9, %v10210_v59, %v10201_v22  ;;  %10213 = vst [vmem:[#allocation39_spill] sm:$0xff] %v8922_v51  ;;  %10214 = vst [vmem:[#allocation66_spill] sm:$0xff] %v8926_v40  ;;  %v8928_v22 = vld [vmem:[#allocation2 + $0x30] sm:$0xff]  ;;  %v3913_v4 = vmul.f32 %v3876_v6, %v3864_v43  ;;  %v6807_v5 = vld [vmem:[#allocation12 + $0x10] sm:$0xff] }
 0x393   : > { %10205 = vst [vmem:[#allocation124_spill] sm:$0xff] %v8902_v60  ;;  %v8908_v38 = vpop.permute.xlu1 %3369  ;;  %10215 = vst [vmem:[#allocation35_spill] sm:$0xff] %v8928_v22  ;;  %v3921_v50 = vmul.f32 %v3876_v6, %v3865_v57  ;;  %v6639_v21 = vpack.c.bf16 %v3697_v26, %v3689_v12  ;;  %v8947_v59 = vrot.slane %v6807_v5, %v10221_v41  ;;  %v10222_v22 = vld [vmem:[#allocation42_spill] sm:$0xff]  ;;  %v10228_v0 = vld [vmem:[#allocation41_spill] sm:$0xff] }
 0x394   : > { %10208 = vst [vmem:[#allocation93_spill] sm:$0xff] %v8908_v38  ;;  %10216 = vst [vmem:[#allocation63_spill] sm:$0xff] %v8932_v52  ;;  %v8950_v40 = vrot.slane %v6807_v5, %v10222_v22  ;;  %v8953_v43 = vrot.slane %v6807_v5, %v10223_v18  ;;  %v6648_v6 = vpack.c.bf16 %v3922_v14, %v3914_v36  ;;  %v10225_v52 = vld [vmem:[#allocation38_spill] sm:$0xff]  ;;  %v6808_v5 = vld [vmem:[#allocation12 + $0x18] sm:$0xff] }
 0x395   : > { %4775 = vmatpush1.bf16.msra.mxu0 %v6631_v2  ;;  %10217 = vst [vmem:[#allocation30_spill] sm:$0xff] %v8934_v27  ;;  %10219 = vst [vmem:[#allocation131_spill] sm:$0xff] %v8940_v53  ;;  %v8942_v2 = vld [vmem:[#allocation2 + $0x38] sm:$0xff]  ;;  %v6656_v26 = vpack.c.bf16 %v3930_v29, %v3930_v29  ;;  %v8957_v12 = vrot.slane %v10143_v58, %v10222_v22  ;;  %v8961_v57 = vrot.slane %v10143_v58, %v10223_v18  ;;  %v10224_v27 = vld [vmem:[#allocation101_spill] sm:$0xff] }
 0x396   : > { %4776 = vmatprep.subr.bf16.mxu0 %v6640_v63  ;;  %v8918_v25 = vpop.permute.xlu0 %3147  ;;  %10220 = vst [vmem:[#allocation89_spill] sm:$0xff] %v8942_v2  ;;  %v4731_v63 = vsel %vm1975_vm0, %v6655_v48, 0  ;;  %v2140_v51 = vsel %vm2130_vm1, %v10225_v52, %v10224_v27  ;;  %v8969_v14 = vrot.slane %v6808_v5, %v10221_v41  ;;  %v8973_v29 = vrot.slane %v10167_v23, %v8184_v56  ;;  %v10229_v2 = vld [vmem:[#allocation121_spill] sm:$0xff]  ;;  %v10230_v5 = vld [vmem:[#allocation88_spill] sm:$0xff] }
 0x397   : > { %10211 = vst [vmem:[#allocation113_spill] sm:$0xff] %v8918_v25  ;;  %v8938_v37 = vpop.permute.xlu1 %3375  ;;  %v8977_v58 = vrot.slane %v10167_v23, %v10222_v22  ;;  %v6647_v48 = vpack.c.bf16 %v3921_v50, %v3913_v4  ;;  %v2141_v53 = vsel %vm2130_vm1, %v10230_v5, %v10229_v2  ;;  %v9001_v50 = vrot.slane %v10167_v23, %v10221_v41  ;;  %v10235_v5 = vld [vmem:[#allocation83_spill] sm:$0xff]  ;;  %v10254_v60 = vld [vmem:[#allocation92_spill] sm:$0xff] }
 0x398   : > { %10218 = vst [vmem:[#allocation23_spill] sm:$0xff] %v8938_v37  ;;  %v8991_v37 = vrot.slane %v10167_v23, %v10223_v18  ;;  %v9022_v23 = vrot.slane %v8267_v11, %v8184_v56 }
 0x399   : > { %4777 = vmatpush1.bf16.msra.mxu0 %v6639_v21  ;;  %v10227_v21 = vld [vmem:[#allocation103_spill] sm:$0xff] }
 0x39a   : > { %4778 = vmatprep.subr.bf16.mxu0 %v6648_v6  ;;  %v8979_v36 = vpop.permute.xlu0 %3371  ;;  %v2603_v52 = vsel %vm2593_vm4, %v10228_v0, %v10227_v21  ;;  %v10232_v6 = vld [vmem:[#allocation107_spill] sm:$0xff]  ;;  %v9005_v0 = vrot.slane %v8248_v44, %v8184_v56  ;;  %v9009_v21 = vrot.slane %v8248_v44, %v10222_v22  ;;  %10238 = vst [vmem:[#allocation49_spill] sm:$0xff] %v9022_v23 }
 0x39b   : > { %10226 = vst [vmem:[#allocation61_spill] sm:$0xff] %v8979_v36  ;;  %v8993_v25 = vpop.permute.xlu1 %3367  ;;  %v2137_v4 = vsel %vm2130_vm1, %v10224_v27, %v10232_v6  ;;  %v2201_v36 = vmul.f32 %v10235_v5, %v2140_v51  ;;  %v9018_v27 = vrot.slane %v8248_v44, %v10221_v41  ;;  %v9025_v6 = vmul.f32 %v8445_v62, %v2603_v52  ;;  %v10243_v52 = vld [vmem:[#allocation45_spill] sm:$0xff] }
 0x39c   : > { %10231 = vst [vmem:[#allocation128_spill] sm:$0xff] %v8993_v25  ;;  %10233 = vst [vmem:[#allocation122_spill] sm:$0xff] %v9005_v0  ;;  %v9014_v25 = vrot.slane %v8248_v44, %v10223_v18  ;;  %v9037_v44 = vrot.slane %v8267_v11, %v10223_v18 }
 0x39d   : > { %10234 = vst [vmem:[#allocation32_spill] sm:$0xff] %v9009_v21  ;;  %10237 = vst [vmem:[#allocation68_spill] sm:$0xff] %v9018_v27  ;;  %4779 = vmatpush1.bf16.msra.mxu0 %v6647_v48  ;;  %v2209_v21 = vmul.f32 %v10235_v5, %v2141_v53  ;;  %v10242_v48 = vld [vmem:[#allocation105_spill] sm:$0xff]  ;;  %v2202_v27 = vmul.f32 %v10243_v52, %v2137_v4  ;;  %v9046_v53 = vrot.slane %v8267_v11, %v10221_v41  ;;  %v10246_v5 = vld [vmem:[#allocation108_spill] sm:$0xff] }
 0x39e   : > { %10236 = vst [vmem:[#allocation106_spill] sm:$0xff] %v9014_v25  ;;  %6412 = vmatprep.subr.msk.bf16.mxu0 %vm1975_vm0, %v6656_v26  ;;  %v9029_v51 = vpop.permute.xlu0 %3373  ;;  %v9033_v25 = vrot.slane %v8267_v11, %v10222_v22  ;;  %10241 = vst [vmem:[#allocation98_spill] sm:$0xff] %v9037_v44  ;;  %v9041_v23 = vmul.f32 %v8947_v59, %v10242_v48  ;;  %v9050_v26 = vrot.slane %v8294_v42, %v8184_v56  ;;  %v10249_v11 = vld [vmem:[#allocation111_spill] sm:$0xff] }
 0x39f   : > { %10239 = vst [vmem:[#allocation116_spill] sm:$0xff] %v9029_v51  ;;  %v2113_v0 = vpop.permute.xlu1 %2112  ;;  %10244 = vst [vmem:[#allocation25_spill] sm:$0xff] %v9046_v53  ;;  %v9062_v48 = vrot.slane %v8294_v42, %v10222_v22  ;;  %v9066_v53 = vmul.f32 %v8950_v40, %v10249_v11  ;;  %v2363_v56 = vsel %vm2361_vm3, %v8607_v46, %v8645_v19  ;;  %v10251_v22 = vld [vmem:[#allocation114_spill] sm:$0xff]  ;;  %v10253_v11 = vld [vmem:[#allocation67_spill] sm:$0xff] }
 0x3a0   : > { %10240 = vst [vmem:[#allocation82_spill] sm:$0xff] %v9033_v25  ;;  %10245 = vst [vmem:[#allocation43_spill] sm:$0xff] %v9050_v26  ;;  %v10247_v25 = vld [vmem:[#allocation46_spill] sm:$0xff]  ;;  %v2135_v44 = vsel %vm2130_vm1, %v2113_v0, %v10146_v15  ;;  %v2138_v4 = vsel %vm2130_vm1, %v10229_v2, %v2113_v0  ;;  %v10252_v0 = vld [vmem:[#allocation127_spill] sm:$0xff]  ;;  %v6555_v38 = vpack.c.bf16 %v2209_v21, %v2201_v36 }
 0x3a1   : > { %v2203_v51 = vmul.f32 %v10247_v25, %v10246_v5  ;;  %10248 = vst [vmem:[#allocation72_spill] sm:$0xff] %v9062_v48  ;;  %v2210_v5 = vmul.f32 %v10243_v52, %v2138_v4  ;;  %v2211_v15 = vmul.f32 %v10247_v25, %v2135_v44  ;;  %4781 = vmatpush1.bf16.msra.mxu0 %v4731_v63  ;;  %v10250_v26 = vld [vmem:[#allocation110_spill] sm:$0xff]  ;;  %v10257_v52 = vld [vmem:[#allocation129_spill] sm:$0xff] }
 0x3a2   : > { %v9076_v2 = vmul.f32 %v8953_v43, %v10250_v26  ;;  %v2452_v48 = vmul.f32 %v10252_v0, %v10251_v22  ;;  %v2604_v7 = vsel %vm2593_vm4, %v10254_v60, %v10253_v11  ;;  %v9084_v8 = vpop.permute.xlu0 %3595  ;;  %v2595_v19 = vsel %vm2593_vm4, %v8531_v49, %v8689_v33  ;;  %v10256_v21 = vld [vmem:[#allocation78_spill] sm:$0xff] }
 0x3a3   : > { %10255 = vst [vmem:[#allocation95_spill] sm:$0xff] %v9084_v8  ;;  %v2832_v25 = vsel %vm2825_vm5, %v8654_v35, %v8721_v39  ;;  %v6557_v63 = vpack.c.bf16 %v2211_v15, %v2203_v51  ;;  %v9094_v44 = vpop.permute.xlu1 %3379  ;;  %v6556_v36 = vpack.c.bf16 %v2210_v5, %v2202_v27  ;;  %v2450_v26 = vmul.f32 %v10257_v52, %v10256_v21  ;;  %v10258_v60 = vld [vmem:[#allocation86_spill] sm:$0xff] }
 0x3a4   : > { %v10259_v4 = vld [vmem:[#allocation130_spill] sm:$0xff]  ;;  %v2444_v8 = vmul.f32 %v10252_v0, %v2363_v56  ;;  %v2829_v33 = vsel %vm2825_vm5, %v8721_v39, %v8727_v10  ;;  %4787 = vmatmul.mubr.bf16.vlgmr.msra.gmra.mrb[8].mxu0 %v8704_v30  ;;  %v9107_v35 = vmul.f32 %v8445_v62, %v2604_v7  ;;  %v2596_v27 = vsel %vm2593_vm4, %v8680_v24, %v8405_v47  ;;  %v10260_v56 = vld [vmem:[#allocation132_spill] sm:$0xff]  ;;  %v10261_v47 = vld [vmem:[#allocation133_spill] sm:$0xff] }
 0x3a5   : > { %v2451_v22 = vmul.f32 %v10259_v4, %v10258_v60  ;;  %v2826_v51 = vsel %vm2825_vm5, %v8727_v10, %v10162_v31  ;;  %4896 = vmatprep.subr.bf16.mxu0 %v6556_v36  ;;  %4968 = vmatpush1.bf16.msra.mxu1 %v6557_v63  ;;  %v2599_v39 = vsel %vm2593_vm4, %v8612_v17, %v8680_v24  ;;  %v10263_v24 = vld [vmem:[#allocation134_spill] sm:$0xff]  ;;  %v10264_v0 = vld [vmem:[#allocation136_spill] sm:$0xff]  ;;  %v10266_v60 = vld [vmem:[#allocation135_spill] sm:$0xff] }
 0x3a6   : > { %v2676_v62 = vmul.f32 %v8947_v59, %v2595_v19  ;;  %v9123_v7 = vmul.f32 %v8957_v12, %v2832_v25  ;;  %4897 = vmatpush1.bf16.msra.mxu0 %v6555_v38  ;;  %v10262_v5 = vpack.c.bf16 %v10260_v56, %v10261_v47  ;;  %v2346_v15 = vpop.permute.xlu0 %2345  ;;  %v9129_v31 = vmul.f32 %v8961_v57, %v2829_v33  ;;  %v10267_v33 = vld [vmem:[#allocation137_spill] sm:$0xff] }
 0x3a7   : > { %v2366_v10 = vsel %vm2361_vm3, %v2346_v15, %v8607_v46  ;;  %v2369_v17 = vsel %vm2361_vm3, %v8563_v55, %v2346_v15  ;;  %v10265_v19 = vpack.c.bf16 %v10263_v24, %v10264_v0  ;;  %v9140_v38 = vpop.permute.xlu1 %3601  ;;  %6414 = vmatprep.mubr.msk.bf16.mxu0 %vm4717_vm2, %v8713_v45  ;;  %v2900_v25 = vmul.f32 %v8969_v14, %v2826_v51  ;;  %v10278_v24 = vld [vmem:[#allocation75_spill] sm:$0xff] }
 0x3a8   : > { %4969 = vmatprep.subr.bf16.mxu1 %v10262_v5  ;;  %v2442_v63 = vmul.f32 %v10257_v52, %v2369_v17  ;;  %v2443_v36 = vmul.f32 %v10259_v4, %v2366_v10  ;;  %v6574_v46 = vpack.c.bf16 %v2452_v48, %v2444_v8  ;;  %v2682_v21 = vmul.f32 %v8950_v40, %v8620_v28  ;;  %v10269_v4 = vld [vmem:[#allocation119_spill] sm:$0xff]  ;;  %v10270_v28 = vld [vmem:[#allocation120_spill] sm:$0xff] }
 0x3a9   : > { %4898 = vmatprep.subr.bf16.mxu0 %v10265_v19  ;;  %v9150_v55 = vmul.f32 %v8953_v43, %v2599_v39  ;;  %v10268_v56 = vpack.c.bf16 %v10266_v60, %v10267_v33  ;;  %v9157_v47 = vrot.slane %v8294_v42, %v10223_v18  ;;  %v9161_v52 = vrot.slane %v8294_v42, %v10221_v41  ;;  %v10280_v60 = vld [vmem:[#allocation87_spill] sm:$0xff] }
 0x3aa   : > { %v2684_v8 = vmul.f32 %v8947_v59, %v2596_v27  ;;  %v6573_v48 = vpack.c.bf16 %v2451_v22, %v2443_v36  ;;  %v10271_v51 = vpack.c.bf16 %v10269_v4, %v10270_v28  ;;  %v9167_v39 = vpop.permute.xlu0 %3607  ;;  %v6572_v5 = vpack.c.bf16 %v2450_v26, %v2442_v63 }
 0x3ab   : > { %4970 = vmatpush1.bf16.msra.mxu1 %v10268_v56  ;;  %v6579_v15 = vpack.c.bf16 %v9107_v35, %v9025_v6  ;;  %v6589_v18 = vpack.c.bf16 %v9129_v31, %v9150_v55  ;;  %v2578_v10 = vpop.permute.xlu1 %2577  ;;  %v6582_v42 = vpack.c.bf16 %v2676_v62, %v9041_v23  ;;  %v6588_v59 = vpack.c.bf16 %v9123_v7, %v2682_v21  ;;  %v10274_v7 = vld [vmem:[#allocation100_spill] sm:$0xff]  ;;  %v10282_v56 = vld [vmem:[#allocation33_spill] sm:$0xff] }
 0x3ac   : > { %4899 = vmatpush1.bf16.msra.mxu0 %v10271_v51  ;;  %4971 = vmatprep.subr.bf16.mxu1 %v6574_v46  ;;  %v2827_v41 = vsel %vm2825_vm5, %v8779_v16, %v8738_v34  ;;  %v2598_v26 = vsel %vm2593_vm4, %v2578_v10, %v8531_v49  ;;  %v2601_v6 = vsel %vm2593_vm4, %v10253_v11, %v2578_v10  ;;  %v10272_v49 = vld [vmem:[#allocation70_spill] sm:$0xff]  ;;  %v10273_v11 = vld [vmem:[#allocation91_spill] sm:$0xff]  ;;  %v10276_v31 = vld [vmem:[#allocation56_spill] sm:$0xff] }
 0x3ad   : > { %4797 = vmatmul.mubr.bf16.gmra.mrb[12].mxu0 %v8751_v1  ;;  %v6590_v22 = vpack.c.bf16 %v2900_v25, %v2684_v8  ;;  %v2828_v23 = vsel %vm2825_vm5, %v8788_v3, %v10165_v54  ;;  %v2674_v35 = vmul.f32 %v8950_v40, %v2601_v6  ;;  %v2675_v34 = vmul.f32 %v8953_v43, %v2598_v26  ;;  %v10275_v40 = vld [vmem:[#allocation73_spill] sm:$0xff]  ;;  %v10283_v26 = vld [vmem:[#allocation24_spill] sm:$0xff] }
 0x3ae   : > { %4900 = vmatprep.subr.bf16.mxu0 %v6572_v5  ;;  %v2837_v27 = vsel %vm2825_vm5, %v10272_v49, %v8744_v13  ;;  %v2836_v62 = vsel %vm2825_vm5, %v10273_v11, %v8762_v20  ;;  %v3156_v54 = vsel %vm3149_vm6, %v10274_v7, %v8811_v32  ;;  %v10277_v43 = vpack.c.bf16 %v10275_v40, %v10276_v31  ;;  %v9207_v17 = vpop.permute.xlu0 %3599  ;;  %v10279_v46 = vld [vmem:[#allocation81_spill] sm:$0xff]  ;;  %v10289_v11 = vld [vmem:[#allocation60_spill] sm:$0xff] }
 0x3af   : > { %4972 = vmatpush1.bf16.msra.mxu1 %v6573_v48  ;;  %v2834_v0 = vsel %vm2825_vm5, %v8744_v13, %v10278_v24  ;;  %v2831_v19 = vsel %vm2825_vm5, %v10278_v24, %v8788_v3  ;;  %v6581_v25 = vpack.c.bf16 %v2675_v34, %v9076_v2  ;;  %v9218_v63 = vpop.permute.xlu1 %3603  ;;  %v6580_v36 = vpack.c.bf16 %v2674_v35, %v9066_v53  ;;  %v10281_v2 = vld [vmem:[#allocation48_spill] sm:$0xff]  ;;  %v10284_v35 = vld [vmem:[#allocation62_spill] sm:$0xff]  ;;  %v6810_v31 = vld [vmem:[#allocation2 + $0xb0] sm:$0xff] }
 0x3b0   : > { %4901 = vmatpush1.bf16.msra.mxu0 %v10277_v43  ;;  %4973 = vmatprep.subr.bf16.mxu1 %v6582_v42  ;;  %v2908_v21 = vmul.f32 %v8969_v14, %v2827_v41  ;;  %v2916_v55 = vmul.f32 %v8969_v14, %v2828_v23  ;;  %v3153_v13 = vsel %vm3149_vm6, %v8811_v32, %v8817_v9  ;;  %v9262_v23 = vld [vmem:[#allocation2 + $0xa0] sm:$0xff]  ;;  %v10286_v34 = vld [vmem:[#allocation118_spill] sm:$0xff]  ;;  %v10292_v43 = vld [vmem:[#allocation124_spill] sm:$0xff] }
 0x3b1   : > { %6415 = vmatprep.mubr.msk.bf16.mxu0 %vm4717_vm2, %v10279_v46  ;;  %v3150_v3 = vsel %vm3149_vm6, %v8817_v9, %v10280_v60  ;;  %v2905_v33 = vmul.f32 %v10281_v2, %v2836_v62  ;;  %v9235_v53 = vmul.f32 %v8973_v29, %v3156_v54  ;;  %v3171_v14 = vsel %vm3149_vm6, %v10280_v60, %v10282_v56  ;;  %v10290_v62 = vld [vmem:[#allocation84_spill] sm:$0xff]  ;;  %v6812_v56 = vld [vmem:[#allocation2 + $0xb8] sm:$0xff] }
 0x3b2   : > { %4902 = vmatprep.subr.bf16.mxu0 %v6580_v36  ;;  %v2913_v8 = vmul.f32 %v10281_v2, %v2837_v27  ;;  %v2914_v32 = vmul.f32 %v8957_v12, %v2834_v0  ;;  %v2915_v48 = vmul.f32 %v8961_v57, %v2831_v19  ;;  %v2810_v9 = vpop.permute.xlu0 %2809  ;;  %v9245_v4 = vmul.f32 %v8977_v58, %v3153_v13  ;;  %v10293_v0 = vld [vmem:[#allocation93_spill] sm:$0xff]  ;;  %v6811_v36 = vld [vmem:[#allocation2 + $0xa8] sm:$0xff]  ;;  %v10296_v2 = vld [vmem:[#allocation23_spill] sm:$0xff] }
 0x3b3   : > { %4974 = vmatpush1.bf16.msra.mxu1 %v6581_v25  ;;  %v9248_v28 = vmul.f32 %v8991_v37, %v3150_v3  ;;  %v2830_v51 = vsel %vm2825_vm5, %v2810_v9, %v8779_v16  ;;  %v2833_v5 = vsel %vm2825_vm5, %v8762_v20, %v2810_v9  ;;  %v9256_v10 = vpop.permute.xlu1 %3827  ;;  %v6598_v6 = vpack.c.bf16 %v2916_v55, %v2908_v21  ;;  %v10285_v20 = vld [vmem:[#allocation112_spill] sm:$0xff]  ;;  %v10294_v55 = vld [vmem:[#allocation113_spill] sm:$0xff] }
 0x3b4   : > { %4903 = vmatpush1.bf16.msra.mxu0 %v6579_v15  ;;  %4975 = vmatprep.subr.bf16.mxu1 %v6590_v22  ;;  %v3224_v15 = vmul.f32 %v9001_v50, %v3171_v14  ;;  %v2906_v42 = vmul.f32 %v8957_v12, %v2833_v5  ;;  %v2907_v41 = vmul.f32 %v8961_v57, %v2830_v51  ;;  %v10287_v12 = vld [vmem:[#allocation27_spill] sm:$0xff]  ;;  %v10288_v57 = vld [vmem:[#allocation102_spill] sm:$0xff]  ;;  %v10295_v60 = vld [vmem:[#allocation52_spill] sm:$0xff] }
 0x3b5   : > { %4904 = vmatprep.subr.bf16.mxu0 %v6588_v59  ;;  %4807 = vmatmul.mubr.bf16.gmra.mrb[16].mxu0 %v10283_v26  ;;  %v6595_v22 = vpack.c.bf16 %v2913_v8, %v2905_v33  ;;  %v6611_v16 = vpack.c.bf16 %v9235_v53, %v9262_v23  ;;  %v3158_v59 = vsel %vm3149_vm6, %v10285_v20, %v10284_v35  ;;  %v10298_v9 = vld [vmem:[#allocation28_spill] sm:$0xff]  ;;  %v10300_v51 = vld [vmem:[#allocation115_spill] sm:$0xff] }
 0x3b6   : > { %6416 = vmatprep.mubr.msk.bf16.mxu0 %vm4717_vm2, %v10286_v34  ;;  %v3388_v49 = vsel %vm3381_vm7, %v10288_v57, %v10287_v12  ;;  %v6597_v27 = vpack.c.bf16 %v2915_v48, %v2907_v41  ;;  %v10291_v7 = vpack.c.bf16 %v10289_v11, %v10290_v62  ;;  %v9279_v54 = vpop.permute.xlu0 %3605  ;;  %v6596_v40 = vpack.c.bf16 %v2914_v32, %v2906_v42  ;;  %v10297_v32 = vld [vmem:[#allocation122_spill] sm:$0xff]  ;;  %v10303_v20 = vld [vmem:[#allocation131_spill] sm:$0xff] }
 0x3b7   : > { %4976 = vmatpush1.bf16.msra.mxu1 %v6589_v18  ;;  %v6613_v18 = vpack.c.bf16 %v9248_v28, %v6810_v31  ;;  %v3155_v24 = vsel %vm3149_vm6, %v10284_v35, %v10292_v43  ;;  %v3385_v19 = vsel %vm3381_vm7, %v10287_v12, %v10293_v0  ;;  %v9290_v25 = vpop.permute.xlu1 %3833  ;;  %v6612_v21 = vpack.c.bf16 %v9245_v4, %v6811_v36  ;;  %v10299_v28 = vld [vmem:[#allocation128_spill] sm:$0xff]  ;;  %v10306_v11 = vld [vmem:[#allocation106_spill] sm:$0xff] }
 0x3b8   : > { %4905 = vmatpush1.bf16.msra.mxu0 %v10291_v7  ;;  %4977 = vmatprep.subr.bf16.mxu1 %v6598_v6  ;;  %v3152_v13 = vsel %vm3149_vm6, %v10292_v43, %v10294_v55  ;;  %v3173_v3 = vsel %vm3149_vm6, %v10294_v55, %v10295_v60  ;;  %v3382_v33 = vsel %vm3381_vm7, %v10293_v0, %v10296_v2  ;;  %v10302_v6 = vld [vmem:[#allocation116_spill] sm:$0xff]  ;;  %v10307_v7 = vld [vmem:[#allocation95_spill] sm:$0xff]  ;;  %v10313_v60 = vld [vmem:[#allocation58_spill] sm:$0xff] }
 0x3b9   : > { %4906 = vmatprep.subr.bf16.mxu0 %v6596_v40  ;;  %v6614_v14 = vpack.c.bf16 %v3224_v15, %v6812_v56  ;;  %v9306_v8 = vmul.f32 %v8973_v29, %v3158_v59  ;;  %v9309_v48 = vmul.f32 %v10297_v32, %v3388_v49  ;;  %v3403_v4 = vsel %vm3381_vm7, %v10296_v2, %v10298_v9  ;;  %v10301_v15 = vld [vmem:[#allocation32_spill] sm:$0xff]  ;;  %v10304_v59 = vld [vmem:[#allocation89_spill] sm:$0xff]  ;;  %v10308_v40 = vld [vmem:[#allocation99_spill] sm:$0xff] }
 0x3ba   : > { %v3390_v5 = vsel %vm3381_vm7, %v10300_v51, %v10299_v28  ;;  %v3238_v42 = vmul.f32 %v8977_v58, %v3155_v24  ;;  %v9321_v41 = vmul.f32 %v10301_v15, %v3385_v19  ;;  %v3387_v35 = vsel %vm3381_vm7, %v10299_v28, %v10302_v6  ;;  %v9330_v57 = vpop.permute.xlu0 %3611  ;;  %v10310_v24 = vld [vmem:[#allocation39_spill] sm:$0xff]  ;;  %v10312_v19 = vld [vmem:[#allocation68_spill] sm:$0xff]  ;;  %v10314_v2 = vld [vmem:[#allocation90_spill] sm:$0xff] }
 0x3bb   : > { %4978 = vmatpush1.bf16.msra.mxu1 %v6597_v27  ;;  %v10305_v12 = vpack.c.bf16 %v10303_v20, %v10304_v59  ;;  %v3239_v49 = vmul.f32 %v8991_v37, %v3152_v13  ;;  %v3240_v27 = vmul.f32 %v9001_v50, %v3173_v3  ;;  %v9335_v62 = vmul.f32 %v10306_v11, %v3382_v33  ;;  %v3134_v43 = vpop.permute.xlu1 %3133  ;;  %v10315_v56 = vld [vmem:[#allocation117_spill] sm:$0xff]  ;;  %v10316_v28 = vld [vmem:[#allocation66_spill] sm:$0xff]  ;;  %v10317_v51 = vld [vmem:[#allocation35_spill] sm:$0xff] }
 0x3bc   : > { %4907 = vmatpush1.bf16.msra.mxu0 %v6595_v22  ;;  %v3620_v31 = vsel %vm3613_vm8, %v10308_v40, %v10307_v7  ;;  %v10309_v22 = vld [vmem:[#allocation126_spill] sm:$0xff]  ;;  %v9345_v36 = vmul.f32 %v10312_v19, %v3403_v4  ;;  %v9348_v55 = vmul.f32 %v10297_v32, %v3390_v5  ;;  %v3617_v13 = vsel %vm3613_vm8, %v10307_v7, %v9140_v38  ;;  %v10319_v20 = vld [vmem:[#allocation104_spill] sm:$0xff]  ;;  %v10320_v59 = vld [vmem:[#allocation49_spill] sm:$0xff] }
 0x3bd   : > { %4979 = vmatprep.subr.bf16.mxu1 %v10305_v12  ;;  %v10311_v0 = vpack.c.bf16 %v10309_v22, %v10310_v24  ;;  %v3154_v3 = vsel %vm3149_vm6, %v3134_v43, %v10313_v60  ;;  %4817 = vmatmul.mubr.bf16.gmra.mrb[20].mxu0 %v10314_v2  ;;  %v9359_v33 = vmul.f32 %v10301_v15, %v3387_v35  ;;  %v10321_v7 = vld [vmem:[#allocation51_spill] sm:$0xff] }
 0x3be   : > { %v3157_v9 = vsel %vm3149_vm6, %v10315_v56, %v3134_v43  ;;  %v3230_v4 = vmul.f32 %v8977_v58, %v3154_v3  ;;  %v10318_v5 = vpack.c.bf16 %v10316_v28, %v10317_v51  ;;  %6423 = vmatprep.mubr.msk.bf16.mxu0 %vm4717_vm2, %v10319_v20  ;;  %v9371_v12 = vmul.f32 %v10320_v59, %v3620_v31  ;;  %v10322_v40 = vld [vmem:[#allocation63_spill] sm:$0xff]  ;;  %v10323_v43 = vld [vmem:[#allocation30_spill] sm:$0xff]  ;;  %v3366_v24 = vpop.permute.xlu0 %3365 }
 0x3bf   : > { %4908 = vmatprep.subr.bf16.mxu0 %v10311_v0  ;;  %v3384_v35 = vsel %vm3381_vm7, %v10302_v6, %v9094_v44  ;;  %v3405_v58 = vsel %vm3381_vm7, %v9094_v44, %v10321_v7  ;;  %v10324_v22 = vpack.c.bf16 %v10322_v40, %v10323_v43  ;;  %v10325_v0 = vld [vmem:[#allocation82_spill] sm:$0xff]  ;;  %v3614_v31 = vsel %vm3613_vm8, %v9140_v38, %v9167_v39  ;;  %v10326_v6 = vld [vmem:[#allocation36_spill] sm:$0xff]  ;;  %v10327_v44 = vld [vmem:[#allocation61_spill] sm:$0xff]  ;;  %v3146_v51 = vpop.permute.xlu1 %3145 }
 0x3c0   : > { %4980 = vmatpush1.bf16.msra.mxu1 %v10318_v5  ;;  %v9385_v3 = vmul.f32 %v10325_v0, %v3617_v13  ;;  %v3635_v56 = vsel %vm3613_vm8, %v9167_v39, %v10326_v6  ;;  %v3386_v28 = vsel %vm3381_vm7, %v3366_v24, %v10327_v44  ;;  %v10328_v13 = vld [vmem:[#allocation54_spill] sm:$0xff]  ;;  %v3151_v38 = vsel %vm3149_vm6, %v10313_v60, %v3146_v51  ;;  %v10331_v60 = vld [vmem:[#allocation25_spill] sm:$0xff] }
 0x3c1   : > { %4909 = vmatpush1.bf16.msra.mxu0 %v10324_v22  ;;  %4981 = vmatprep.subr.bf16.mxu1 %v6614_v14  ;;  %v3229_v14 = vmul.f32 %v8973_v29, %v3157_v9  ;;  %v3389_v5 = vsel %vm3381_vm7, %v10328_v13, %v3366_v24  ;;  %v10329_v20 = vld [vmem:[#allocation74_spill] sm:$0xff]  ;;  %v3462_v7 = vmul.f32 %v10301_v15, %v3386_v28  ;;  %v10334_v28 = vld [vmem:[#allocation59_spill] sm:$0xff] }
 0x3c2   : > { %4910 = vmatprep.subr.bf16.mxu0 %v6612_v21  ;;  %v3172_v39 = vsel %vm3149_vm6, %v3146_v51, %v10329_v20  ;;  %v3231_v40 = vmul.f32 %v8991_v37, %v3151_v38  ;;  %v6620_v29 = vpack.c.bf16 %v3238_v42, %v3230_v4  ;;  %v9412_v9 = vmul.f32 %v10306_v11, %v3384_v35  ;;  %v10330_v22 = vld [vmem:[#allocation98_spill] sm:$0xff]  ;;  %v3378_v15 = vpop.permute.xlu0 %3377  ;;  %v10337_v20 = vld [vmem:[#allocation72_spill] sm:$0xff] }
 0x3c3   : > { %v3232_v21 = vmul.f32 %v9001_v50, %v3172_v39  ;;  %v3472_v43 = vmul.f32 %v10312_v19, %v3405_v58  ;;  %v9416_v24 = vmul.f32 %v10330_v22, %v3614_v31  ;;  %v3688_v6 = vmul.f32 %v10331_v60, %v3635_v56  ;;  %v3840_v4 = vpop.permute.xlu1 %3839 }
 0x3c4   : > { %4982 = vmatpush1.bf16.msra.mxu1 %v6613_v18  ;;  %v6621_v37 = vpack.c.bf16 %v3239_v49, %v3231_v40  ;;  %v3383_v50 = vsel %vm3381_vm7, %v10327_v44, %v3378_v15  ;;  %v10332_v18 = vld [vmem:[#allocation69_spill] sm:$0xff]  ;;  %v6619_v58 = vpack.c.bf16 %v9306_v8, %v3229_v14  ;;  %v3461_v31 = vmul.f32 %v10297_v32, %v3389_v5  ;;  %v10335_v14 = vld [vmem:[#allocation22_spill] sm:$0xff] }
 0x3c5   : > { %4911 = vmatpush1.bf16.msra.mxu0 %v6611_v16  ;;  %v3404_v42 = vsel %vm3381_vm7, %v3378_v15, %v10332_v18  ;;  %v6622_v35 = vpack.c.bf16 %v3240_v27, %v3232_v21  ;;  %v3463_v53 = vmul.f32 %v10306_v11, %v3383_v50  ;;  %v6635_v16 = vpack.c.bf16 %v9371_v12, %v9348_v55  ;;  %v10333_v49 = vld [vmem:[#allocation65_spill] sm:$0xff] }
 0x3c6   : > { %4912 = vmatprep.subr.bf16.mxu0 %v6620_v29  ;;  %v3464_v23 = vmul.f32 %v10312_v19, %v3404_v42  ;;  %v3622_v56 = vsel %vm3613_vm8, %v10333_v49, %v9207_v17  ;;  %v6628_v44 = vpack.c.bf16 %v3462_v7, %v9321_v41  ;;  %v6636_v8 = vpack.c.bf16 %v9385_v3, %v9359_v33  ;;  %v3836_v11 = vpop.permute.xlu0 %3835  ;;  %v10336_v5 = vld [vmem:[#allocation57_spill] sm:$0xff]  ;;  %v10338_v29 = vld [vmem:[#allocation31_spill] sm:$0xff] }
 0x3c7   : > { %4983 = vmatprep.subr.bf16.mxu1 %v6622_v35  ;;  %v3619_v32 = vsel %vm3613_vm8, %v9207_v17, %v9279_v54  ;;  %v6629_v27 = vpack.c.bf16 %v3463_v53, %v9335_v62  ;;  %v6637_v55 = vpack.c.bf16 %v9416_v24, %v9412_v9  ;;  %v3849_v41 = vsel %vm3845_vm9, %v9256_v10, %v9290_v25  ;;  %v3598_v33 = vpop.permute.xlu1 %3597 }
 0x3c8   : > { %4984 = vmatpush1.bf16.msra.mxu1 %v6621_v37  ;;  %v6630_v19 = vpack.c.bf16 %v3464_v23, %v9345_v36  ;;  %v3616_v17 = vsel %vm3613_vm8, %v9279_v54, %v9330_v57  ;;  %v6638_v62 = vpack.c.bf16 %v3688_v6, %v3472_v43  ;;  %v3701_v12 = vmul.f32 %v10320_v59, %v3622_v56  ;;  %v10340_v6 = vld [vmem:[#allocation85_spill] sm:$0xff]  ;;  %v10342_v56 = vld [vmem:[#allocation43_spill] sm:$0xff] }
 0x3c9   : > { %4913 = vmatpush1.bf16.msra.mxu0 %v6619_v58  ;;  %v6627_v36 = vpack.c.bf16 %v3461_v31, %v9309_v48  ;;  %v3618_v3 = vsel %vm3613_vm8, %v3598_v33, %v9218_v63  ;;  %v3621_v51 = vsel %vm3613_vm8, %v10334_v28, %v3598_v33  ;;  %v3852_v54 = vsel %vm3845_vm9, %v10335_v14, %v9256_v10  ;;  %v10341_v23 = vld [vmem:[#allocation77_spill] sm:$0xff] }
 0x3ca   : > { %4914 = vmatprep.subr.bf16.mxu0 %v6628_v44  ;;  %4985 = vmatprep.subr.bf16.mxu1 %v6630_v19  ;;  %v3702_v13 = vmul.f32 %v10325_v0, %v3619_v32  ;;  %v3637_v48 = vsel %vm3613_vm8, %v9330_v57, %v10336_v5  ;;  %v3694_v38 = vmul.f32 %v10325_v0, %v3618_v3  ;;  %v3830_v21 = vpop.permute.xlu0 %3829 }
 0x3cb   : > { %v3918_v39 = vmul.f32 %v10337_v20, %v3849_v41  ;;  %v3703_v7 = vmul.f32 %v10330_v22, %v3616_v17  ;;  %v3693_v40 = vmul.f32 %v10320_v59, %v3621_v51  ;;  %v3846_v10 = vsel %vm3845_vm9, %v9290_v25, %v3840_v4  ;;  %v3610_v0 = vpop.permute.xlu1 %3609  ;;  %v10339_v59 = vld [vmem:[#allocation47_spill] sm:$0xff]  ;;  %v10344_v51 = vld [vmem:[#allocation53_spill] sm:$0xff] }
 0x3cc   : > { %4986 = vmatpush1.bf16.msra.mxu1 %v6629_v27  ;;  %v3867_v9 = vsel %vm3845_vm9, %v3840_v4, %v10338_v29  ;;  %v3850_v57 = vsel %vm3845_vm9, %v3830_v21, %v3836_v11  ;;  %v3704_v43 = vmul.f32 %v10331_v60, %v3637_v48  ;;  %v3853_v24 = vsel %vm3845_vm9, %v10339_v59, %v3830_v21 }
 0x3cd   : > { %4915 = vmatpush1.bf16.msra.mxu0 %v6627_v36  ;;  %4987 = vmatprep.subr.bf16.mxu1 %v6638_v62  ;;  %v3615_v25 = vsel %vm3613_vm8, %v9218_v63, %v3610_v0  ;;  %v3636_v15 = vsel %vm3613_vm8, %v3610_v0, %v10340_v6  ;;  %v3926_v37 = vmul.f32 %v10337_v20, %v3850_v57 }
 0x3ce   : > { %4916 = vmatprep.subr.bf16.mxu0 %v6636_v8  ;;  %v3695_v50 = vmul.f32 %v10330_v22, %v3615_v25  ;;  %v3696_v18 = vmul.f32 %v10331_v60, %v3636_v15  ;;  %v6644_v42 = vpack.c.bf16 %v3702_v13, %v3694_v38  ;;  %v3919_v4 = vmul.f32 %v9157_v47, %v3846_v10  ;;  %v3842_v31 = vpop.permute.xlu0 %3841 }
 0x3cf   : > { %v3920_v35 = vmul.f32 %v9161_v52, %v3867_v9  ;;  %v6643_v58 = vpack.c.bf16 %v3701_v12, %v3693_v40  ;;  %v3847_v53 = vsel %vm3845_vm9, %v3836_v11, %v3842_v31  ;;  %v3868_v49 = vsel %vm3845_vm9, %v3842_v31, %v10341_v23  ;;  %v3832_v22 = vpop.permute.xlu1 %3831 }
 0x3d0   : > { %4988 = vmatpush1.bf16.msra.mxu1 %v6637_v55  ;;  %v6645_v63 = vpack.c.bf16 %v3703_v7, %v3695_v50  ;;  %v6646_v60 = vpack.c.bf16 %v3704_v43, %v3696_v18  ;;  %v3925_v44 = vmul.f32 %v10342_v56, %v3853_v24  ;;  %v3927_v8 = vmul.f32 %v9157_v47, %v3847_v53 }
 0x3d1   : > { %4917 = vmatpush1.bf16.msra.mxu0 %v6635_v16  ;;  %v3928_v32 = vmul.f32 %v9161_v52, %v3868_v49  ;;  %v10343_v16 = vld [vmem:[#allocation109_spill] sm:$0xff]  ;;  %v6652_v11 = vpack.c.bf16 %v3926_v37, %v3918_v39  ;;  %v3917_v55 = vmul.f32 %v10342_v56, %v3852_v54 }
 0x3d2   : > { %4918 = vmatprep.subr.bf16.mxu0 %v6644_v42  ;;  %v3854_v27 = vsel %vm3845_vm9, %v10343_v16, %v3832_v22  ;;  %4989 = vmatprep.subr.bf16.mxu1 %v6646_v60  ;;  %v6653_v41 = vpack.c.bf16 %v3927_v8, %v3919_v4  ;;  %v3838_v17 = vpop.permute.xlu0 %3837 }
 0x3d3   : > { %v3933_v19 = vmul.f32 %v10342_v56, %v3854_v27  ;;  %v6654_v33 = vpack.c.bf16 %v3928_v32, %v3920_v35  ;;  %v3851_v62 = vsel %vm3845_vm9, %v3832_v22, %v3838_v17  ;;  %v3844_v12 = vpop.permute.xlu1 %3843  ;;  %v6651_v36 = vpack.c.bf16 %v3925_v44, %v3917_v55 }
 0x3d4   : > { %4990 = vmatpush1.bf16.msra.mxu1 %v6645_v63  ;;  %v3934_v3 = vmul.f32 %v10337_v20, %v3851_v62  ;;  %v3848_v28 = vsel %vm3845_vm9, %v3838_v17, %v3844_v12  ;;  %v3869_v14 = vsel %vm3845_vm9, %v3844_v12, %v10344_v51 }
 0x3d5   : > { %4919 = vmatpush1.bf16.msra.mxu0 %v6643_v58  ;;  %4991 = vmatprep.subr.bf16.mxu1 %v6654_v33  ;;  %v6659_v54 = vpack.c.bf16 %v3933_v19, %v3933_v19  ;;  %v3935_v13 = vmul.f32 %v9157_v47, %v3848_v28  ;;  %v3936_v5 = vmul.f32 %v9161_v52, %v3869_v14 }
 0x3d6   : > { %4920 = vmatprep.subr.bf16.mxu0 %v6652_v11  ;;  %v6660_v48 = vpack.c.bf16 %v3934_v3, %v3934_v3 }
 0x3d7   : > { %v6661_v38 = vpack.c.bf16 %v3935_v13, %v3935_v13  ;;  %v6662_v39 = vpack.c.bf16 %v3936_v5, %v3936_v5  ;;  %v4743_v20 = vsel %vm1975_vm0, %v6659_v54, 0 }
 0x3d8   : > { %4992 = vmatpush1.bf16.msra.mxu1 %v6653_v41 }
 0x3d9   : > { %4921 = vmatpush1.bf16.msra.mxu0 %v6651_v36  ;;  %6427 = vmatprep.subr.msk.bf16.mxu1 %vm1975_vm0, %v6662_v39  ;;  %v4749_v61 = vsel %vm1975_vm0, %v6661_v38, 0 }
 0x3da   : > { %6422 = vmatprep.subr.msk.bf16.mxu0 %vm1975_vm0, %v6660_v48 }
 0x3dc   : > { %4994 = vmatpush1.bf16.msra.mxu1 %v4749_v61 }
 0x3dd   : > { %4923 = vmatpush1.bf16.msra.mxu0 %v4743_v20 }
 0x3df   : > { %5000 = vmatmul.mubr.bf16.vlgmr.msra.gmra.mrb[24].mxu1 %v8704_v30 }
 0x3e0   : > { %4929 = vmatmul.mubr.bf16.vlgmr.msra.gmra.mrb[24].mxu0 %v8704_v30  ;;  %6429 = vmatprep.mubr.msk.bf16.mxu1 %vm4717_vm2, %v8713_v45  ;;  %v10345_v30 = vmov 0  }
 0x3e1   : > { %6424 = vmatprep.mubr.msk.bf16.mxu0 %vm4717_vm2, %v8713_v45 }
 0x3e3   : > { %v9550_v45 = vpop.permute.xlu0 %5309 }
 0x3e7   : > { %5010 = vmatmul.mubr.bf16.gmra.mrb[28].mxu1 %v8751_v1  ;;  %v9554_v47 = vpop.permute.xlu0 %5128 }
 0x3e8   : > { %4939 = vmatmul.mubr.bf16.gmra.mrb[28].mxu0 %v8751_v1  ;;  %6430 = vmatprep.mubr.msk.bf16.mxu1 %vm4717_vm2, %v10279_v46  ;;  %v9552_v1 = vpop.permute.xlu1 %5314 }
 0x3e9   : > { %6425 = vmatprep.mubr.msk.bf16.mxu0 %vm4717_vm2, %v10279_v46 }
 0x3eb   : > { %v9562_v24 = vpop.permute.xlu0 %5133 }
 0x3ec   : > { %v9556_v46 = vpop.permute.xlu1 %5123 }
 0x3ef   : > { %5020 = vmatmul.mubr.bf16.gmra.mrb[32].mxu1 %v10283_v26 }
 0x3f0   : > { %4949 = vmatmul.mubr.bf16.gmra.mrb[32].mxu0 %v10283_v26  ;;  %6431 = vmatprep.mubr.msk.bf16.mxu1 %vm4717_vm2, %v10286_v34  ;;  %v9568_v51 = vpop.permute.xlu1 %5319 }
 0x3f1   : > { %6426 = vmatprep.mubr.msk.bf16.mxu0 %vm4717_vm2, %v10286_v34 }
 0x3f7   : > { %5030 = vmatmul.mubr.bf16.gmra.mrb[36].mxu1 %v10314_v2 }
 0x3f8   : > { %4959 = vmatmul.mubr.bf16.gmra.mrb[36].mxu0 %v10314_v2  ;;  %5697 = vmatprep.mubr.bf16.mxu1 %v10345_v30 }
 0x3f9   : > { %5656 = vmatprep.mubr.bf16.mxu0 %v10345_v30 }
 0x44b   : > { %v4859_v52 = vpop.f32.mrb[8].mxu1 }
 0x44c   : > { %v4861_v26 = vpop.f32.mrb[9].mxu1  ;;  %v5138_v34 = vadd.f32 %v9556_v46, %v4859_v52 }
 0x44d   : > { %v4863_v7 = vpop.f32.mrb[10].mxu1  ;;  %v5139_v40 = vadd.f32 %v9556_v46, %v4861_v26 }
 0x44e   : > { %v4865_v2 = vpop.f32.mrb[11].mxu1  ;;  %v5162_v21 = vadd.f32 3.0, %v5138_v34  ;;  %v5146_v10 = vadd.f32 %v9554_v47, %v4863_v7 }
 0x44f   : > { %v5163_v29 = vadd.f32 3.0, %v5139_v40  ;;  %v5147_v9 = vadd.f32 %v9554_v47, %v4865_v2 }
 0x450   : > { %v5186_v57 = vmax.f32 %v5162_v21, 0.0  ;;  %v5170_v0 = vadd.f32 3.0, %v5146_v10 }
 0x451   : > { %v5187_v43 = vmax.f32 %v5163_v29, 0.0  ;;  %v5171_v59 = vadd.f32 3.0, %v5147_v9 }
 0x452   : > { %v5210_v25 = vmin.f32 %v5186_v57, 6.0  ;;  %v5194_v6 = vmax.f32 %v5170_v0, 0.0 }
 0x453   : > { %v4869_v15 = vpop.f32.mrb[12].mxu1  ;;  %v5211_v37 = vmin.f32 %v5187_v43, 6.0  ;;  %v5195_v50 = vmax.f32 %v5171_v59, 0.0 }
 0x454   : > { %v4871_v18 = vpop.f32.mrb[13].mxu1  ;;  %v5234_v42 = vmul.f32 %v5210_v25, %v5138_v34  ;;  %v5218_v4 = vmin.f32 %v5194_v6, 6.0  ;;  %v5154_v35 = vadd.f32 %v9562_v24, %v4869_v15 }
 0x455   : > { %v4873_v58 = vpop.f32.mrb[14].mxu1  ;;  %v5235_v31 = vmul.f32 %v5211_v37, %v5139_v40  ;;  %v5219_v63 = vmin.f32 %v5195_v50, 6.0  ;;  %v5155_v53 = vadd.f32 %v9562_v24, %v4871_v18 }
 0x456   : > { %v4875_v23 = vpop.f32.mrb[15].mxu1  ;;  %v5324_v49 = vadd.f32 %v9550_v45, %v4873_v58  ;;  %v5258_v22 = vmul.f32 0.16666667, %v5234_v42  ;;  %v5242_v60 = vmul.f32 %v5218_v4, %v5146_v10  ;;  %v5178_v56 = vadd.f32 3.0, %v5154_v35 }
 0x457   : > { %v5325_v44 = vadd.f32 %v9550_v45, %v4875_v23  ;;  %v5259_v8 = vmul.f32 0.16666667, %v5235_v31  ;;  %v5243_v32 = vmul.f32 %v5219_v63, %v5147_v9  ;;  %v5179_v16 = vadd.f32 3.0, %v5155_v53 }
 0x458   : > { %v5348_v27 = vadd.f32 3.0, %v5324_v49  ;;  %v5266_v19 = vmul.f32 0.16666667, %v5242_v60  ;;  %v5202_v11 = vmax.f32 %v5178_v56, 0.0 }
 0x459   : > { %v5349_v55 = vadd.f32 3.0, %v5325_v44  ;;  %v5267_v41 = vmul.f32 0.16666667, %v5243_v32  ;;  %v5203_v17 = vmax.f32 %v5179_v16, 0.0 }
 0x45a   : > { %v5372_v33 = vmax.f32 %v5348_v27, 0.0  ;;  %v5500_v62 = vpack.c.bf16 %v5266_v19, %v5258_v22  ;;  %v5226_v12 = vmin.f32 %v5202_v11, 6.0 }
 0x45b   : > { %v4879_v36 = vpop.f32.mrb[16].mxu1  ;;  %v5373_v3 = vmax.f32 %v5349_v55, 0.0  ;;  %v5501_v28 = vpack.c.bf16 %v5267_v41, %v5259_v8  ;;  %v5227_v14 = vmin.f32 %v5203_v17, 6.0 }
 0x45c   : > { %v4881_v54 = vpop.f32.mrb[17].mxu1  ;;  %v5332_v13 = vadd.f32 %v9552_v1, %v4879_v36  ;;  %v5396_v5 = vmin.f32 %v5372_v33, 6.0  ;;  %v5533_v48 = vrot.slane %v5500_v62, 4  ;;  %v5250_v38 = vmul.f32 %v5226_v12, %v5154_v35 }
 0x45d   : > { %v4883_v39 = vpop.f32.mrb[18].mxu1  ;;  %v5333_v20 = vadd.f32 %v9552_v1, %v4881_v54  ;;  %v5397_v61 = vmin.f32 %v5373_v3, 6.0  ;;  %v5534_v52 = vrot.slane %v5501_v28, 4  ;;  %v5251_v26 = vmul.f32 %v5227_v14, %v5155_v53 }
 0x45e   : > { %v4885_v34 = vpop.f32.mrb[19].mxu1  ;;  %v5356_v7 = vadd.f32 3.0, %v5332_v13  ;;  %5573 = vst [vmem:[#allocation5 + $0x50] sm:$0xf0] %v5533_v48  ;;  %v5340_v40 = vadd.f32 %v9568_v51, %v4883_v39  ;;  %v5274_v2 = vmul.f32 0.16666667, %v5250_v38  ;;  %v5420_v57 = vmul.f32 %v5396_v5, %v5324_v49 }
 0x45f   : > { %v5357_v21 = vadd.f32 3.0, %v5333_v20  ;;  %5574 = vst [vmem:[#allocation5 + $0x58] sm:$0xf0] %v5534_v52  ;;  %v5341_v10 = vadd.f32 %v9568_v51, %v4885_v34  ;;  %v5275_v29 = vmul.f32 0.16666667, %v5251_v26  ;;  %v5421_v25 = vmul.f32 %v5397_v61, %v5325_v44 }
 0x460   : > { %v5380_v9 = vmax.f32 %v5356_v7, 0.0  ;;  %v5364_v0 = vadd.f32 3.0, %v5340_v40  ;;  %v5508_v43 = vpack.c.bf16 %v5274_v2, %v5274_v2  ;;  %v5444_v63 = vmul.f32 0.16666667, %v5420_v57 }
 0x461   : > { %v5381_v59 = vmax.f32 %v5357_v21, 0.0  ;;  %v5365_v6 = vadd.f32 3.0, %v5341_v10  ;;  %v5509_v15 = vpack.c.bf16 %v5275_v29, %v5275_v29  ;;  %v5445_v60 = vmul.f32 0.16666667, %v5421_v25 }
 0x462   : > { %v5404_v37 = vmin.f32 %v5380_v9, 6.0  ;;  %v5388_v50 = vmax.f32 %v5364_v0, 0.0  ;;  %v5543_v18 = vrot.slane %v5508_v43, 4 }
 0x463   : > { %v5405_v42 = vmin.f32 %v5381_v59, 6.0  ;;  %v5389_v4 = vmax.f32 %v5365_v6, 0.0  ;;  %v5545_v35 = vrot.slane %v5509_v15, 4  ;;  %v4889_v58 = vpop.f32.mrb[20].mxu1 }
 0x464   : > { %v5428_v31 = vmul.f32 %v5404_v37, %v5332_v13  ;;  %v5412_v53 = vmin.f32 %v5388_v50, 6.0  ;;  %v5544_v23 = vsel %vm1975_vm0, %v5533_v48, %v5543_v18  ;;  %5088 = vst [vmem:[#allocation4 + $0x190] sm:$0x3] %v4889_v58  ;;  %v4891_v49 = vpop.f32.mrb[21].mxu1 }
 0x465   : > { %v5429_v22 = vmul.f32 %v5405_v42, %v5333_v20  ;;  %v5413_v56 = vmin.f32 %v5389_v4, 6.0  ;;  %v5546_v44 = vsel %vm1975_vm0, %v5534_v52, %v5545_v35  ;;  %5089 = vst [vmem:[#allocation4 + $0x198] sm:$0x3] %v4891_v49  ;;  %v4893_v8 = vpop.f32.mrb[22].mxu1  ;;  %v9582_v20 = vld [vmem:[%s9751_s7] sm:$0x1] }
 0x466   : > { %v5452_v32 = vmul.f32 0.16666667, %v5428_v31  ;;  %v5436_v16 = vmul.f32 %v5412_v53, %v5340_v40  ;;  %v4894_v27 = vpop.f32.mrb[23].mxu1 }
 0x467   : > { %v5453_v19 = vmul.f32 0.16666667, %v5429_v22  ;;  %v5437_v11 = vmul.f32 %v5413_v56, %v5341_v10 }
 0x468   : > { %v5468_v55 = vpack.c.bf16 %v5452_v32, %v5444_v63  ;;  %v5460_v41 = vmul.f32 0.16666667, %v5436_v16 }
 0x469   : > { %v5469_v17 = vpack.c.bf16 %v5453_v19, %v5445_v60  ;;  %v5461_v33 = vmul.f32 0.16666667, %v5437_v11 }
 0x46a   : > { %v5476_v62 = vpack.c.bf16 %v5460_v41, %v5460_v41 }
 0x46b   : > { %v5477_v12 = vpack.c.bf16 %v5461_v33, %v5461_v33  ;;  %5665 = vmatprep.subr.bf16.mxu1 %v5469_v17 }
 0x46c   : > { %5492 = vst [vmem:[#allocation5 + $0x50] sm:$0xf] %v5476_v62  ;;  %5666 = vmatpush1.bf16.msra.mxu1 %v5468_v55 }
 0x46d   : > { %5493 = vst [vmem:[#allocation5 + $0x58] sm:$0xf] %v5477_v12 }
 0x473   : > { %v5598_v36 = vld [vmem:[#allocation5 + $0x50] sm:$0xff] }
 0x474   : > { %v5599_v3 = vld [vmem:[#allocation5 + $0x58] sm:$0xff] }
 0x475   : > { %5667 = vmatprep.subr.bf16.mxu1 %v5599_v3 }
 0x476   : > { %5668 = vmatpush1.bf16.msra.mxu1 %v5598_v36 }
 0x477   : > { %v4788_v28 = vpop.f32.mrb[8].mxu0  ;;  %5669 = vmatprep.subr.bf16.mxu1 %v5546_v44 }
 0x478   : > { %v5136_v14 = vadd.f32 %v9556_v46, %v4788_v28  ;;  %v4790_v54 = vpop.f32.mrb[9].mxu0 }
 0x479   : > { %v5137_v13 = vadd.f32 %v9556_v46, %v4790_v54  ;;  %v4792_v5 = vpop.f32.mrb[10].mxu0 }
 0x47a   : > { %v5160_v48 = vadd.f32 3.0, %v5136_v14  ;;  %v5144_v38 = vadd.f32 %v9554_v47, %v4792_v5  ;;  %v4794_v39 = vpop.f32.mrb[11].mxu0  ;;  %5670 = vmatpush1.bf16.msra.mxu1 %v5544_v23 }
 0x47b   : > { %v5161_v61 = vadd.f32 3.0, %v5137_v13  ;;  %v5145_v52 = vadd.f32 %v9554_v47, %v4794_v39 }
 0x47c   : > { %v5184_v26 = vmax.f32 %v5160_v48, 0.0  ;;  %v5168_v34 = vadd.f32 3.0, %v5144_v38 }
 0x47d   : > { %v5185_v7 = vmax.f32 %v5161_v61, 0.0  ;;  %v5169_v40 = vadd.f32 3.0, %v5145_v52  ;;  %6433 = vmatmul.mubr.msk.bf16.vlgmr.msra.gmra.mrb[40].mxu1 %vm5620_vm10, %v9582_v20 }
 0x47e   : > { %v5208_v2 = vmin.f32 %v5184_v26, 6.0  ;;  %v5192_v21 = vmax.f32 %v5168_v34, 0.0  ;;  %5779 = vmatprep.mubr.bf16.mxu1 %v10345_v30 }
 0x47f   : > { %v5209_v10 = vmin.f32 %v5185_v7, 6.0  ;;  %v5193_v29 = vmax.f32 %v5169_v40, 0.0 }
 0x480   : > { %v4798_v9 = vpop.f32.mrb[12].mxu0  ;;  %v5232_v57 = vmul.f32 %v5208_v2, %v5136_v14  ;;  %v5216_v0 = vmin.f32 %v5192_v21, 6.0 }
 0x481   : > { %v5152_v43 = vadd.f32 %v9562_v24, %v4798_v9  ;;  %v4800_v59 = vpop.f32.mrb[13].mxu0  ;;  %v5233_v25 = vmul.f32 %v5209_v10, %v5137_v13  ;;  %v5217_v6 = vmin.f32 %v5193_v29, 6.0 }
 0x482   : > { %v5153_v15 = vadd.f32 %v9562_v24, %v4800_v59  ;;  %v4802_v37 = vpop.f32.mrb[14].mxu0  ;;  %v5240_v50 = vmul.f32 %v5216_v0, %v5144_v38  ;;  %v5256_v63 = vmul.f32 0.16666667, %v5232_v57 }
 0x483   : > { %v5176_v18 = vadd.f32 3.0, %v5152_v43  ;;  %v5322_v42 = vadd.f32 %v9550_v45, %v4802_v37  ;;  %v4804_v4 = vpop.f32.mrb[15].mxu0  ;;  %v5241_v35 = vmul.f32 %v5217_v6, %v5145_v52  ;;  %v5257_v22 = vmul.f32 0.16666667, %v5233_v25 }
 0x484   : > { %v5177_v58 = vadd.f32 3.0, %v5153_v15  ;;  %v5323_v31 = vadd.f32 %v9550_v45, %v4804_v4  ;;  %v5264_v53 = vmul.f32 0.16666667, %v5240_v50 }
 0x485   : > { %v5200_v23 = vmax.f32 %v5176_v18, 0.0  ;;  %v5346_v49 = vadd.f32 3.0, %v5322_v42  ;;  %v5265_v60 = vmul.f32 0.16666667, %v5241_v35 }
 0x486   : > { %v5201_v56 = vmax.f32 %v5177_v58, 0.0  ;;  %v5347_v44 = vadd.f32 3.0, %v5323_v31  ;;  %v5498_v16 = vpack.c.bf16 %v5264_v53, %v5256_v63 }
 0x487   : > { %v5224_v8 = vmin.f32 %v5200_v23, 6.0  ;;  %v5370_v32 = vmax.f32 %v5346_v49, 0.0  ;;  %v5499_v55 = vpack.c.bf16 %v5265_v60, %v5257_v22 }
 0x488   : > { %v5225_v27 = vmin.f32 %v5201_v56, 6.0  ;;  %v5371_v19 = vmax.f32 %v5347_v44, 0.0  ;;  %v4808_v11 = vpop.f32.mrb[16].mxu0  ;;  %v5531_v12 = vrot.slane %v5498_v16, 4 }
 0x489   : > { %v5248_v41 = vmul.f32 %v5224_v8, %v5152_v43  ;;  %v5394_v17 = vmin.f32 %v5370_v32, 6.0  ;;  %v5330_v33 = vadd.f32 %v9552_v1, %v4808_v11  ;;  %v4810_v62 = vpop.f32.mrb[17].mxu0  ;;  %v5532_v54 = vrot.slane %v5499_v55, 4 }
 0x48a   : > { %v5249_v36 = vmul.f32 %v5225_v27, %v5153_v15  ;;  %v5395_v3 = vmin.f32 %v5371_v19, 6.0  ;;  %v5331_v28 = vadd.f32 %v9552_v1, %v4810_v62  ;;  %v4812_v14 = vpop.f32.mrb[18].mxu0  ;;  %5571 = vst [vmem:[#allocation5 + $0x40] sm:$0xf0] %v5531_v12 }
 0x48b   : > { %v5272_v13 = vmul.f32 0.16666667, %v5248_v41  ;;  %v5354_v5 = vadd.f32 3.0, %v5330_v33  ;;  %v5338_v48 = vadd.f32 %v9568_v51, %v4812_v14  ;;  %v4814_v38 = vpop.f32.mrb[19].mxu0  ;;  %5572 = vst [vmem:[#allocation5 + $0x48] sm:$0xf0] %v5532_v54  ;;  %v5418_v34 = vmul.f32 %v5394_v17, %v5322_v42 }
 0x48c   : > { %v5273_v39 = vmul.f32 0.16666667, %v5249_v36  ;;  %v5355_v61 = vadd.f32 3.0, %v5331_v28  ;;  %v5339_v52 = vadd.f32 %v9568_v51, %v4814_v38  ;;  %v5419_v21 = vmul.f32 %v5395_v3, %v5323_v31 }
 0x48d   : > { %v5506_v26 = vpack.c.bf16 %v5272_v13, %v5272_v13  ;;  %v5378_v7 = vmax.f32 %v5354_v5, 0.0  ;;  %v5362_v40 = vadd.f32 3.0, %v5338_v48  ;;  %v5442_v15 = vmul.f32 0.16666667, %v5418_v34 }
 0x48e   : > { %v5507_v2 = vpack.c.bf16 %v5273_v39, %v5273_v39  ;;  %v5379_v10 = vmax.f32 %v5355_v61, 0.0  ;;  %v5363_v29 = vadd.f32 3.0, %v5339_v52  ;;  %v5443_v4 = vmul.f32 0.16666667, %v5419_v21 }
 0x48f   : > { %v5539_v9 = vrot.slane %v5506_v26, 4  ;;  %v5402_v57 = vmin.f32 %v5378_v7, 6.0  ;;  %v5386_v0 = vmax.f32 %v5362_v40, 0.0 }
 0x490   : > { %v5541_v43 = vrot.slane %v5507_v2, 4  ;;  %v5403_v59 = vmin.f32 %v5379_v10, 6.0  ;;  %v5387_v25 = vmax.f32 %v5363_v29, 0.0  ;;  %v4818_v6 = vpop.f32.mrb[20].mxu0 }
 0x491   : > { %v5426_v37 = vmul.f32 %v5402_v57, %v5330_v33  ;;  %v5410_v50 = vmin.f32 %v5386_v0, 6.0  ;;  %5086 = vst [vmem:[#allocation4 + $0x180] sm:$0x3] %v4818_v6  ;;  %v4820_v18 = vpop.f32.mrb[21].mxu0  ;;  %v5540_v42 = vsel %vm1975_vm0, %v5531_v12, %v5539_v9 }
 0x492   : > { %v5427_v35 = vmul.f32 %v5403_v59, %v5331_v28  ;;  %v5411_v58 = vmin.f32 %v5387_v25, 6.0  ;;  %5087 = vst [vmem:[#allocation4 + $0x188] sm:$0x3] %v4820_v18  ;;  %v4822_v31 = vpop.f32.mrb[22].mxu0  ;;  %v5542_v63 = vsel %vm1975_vm0, %v5532_v54, %v5541_v43 }
 0x493   : > { %v5450_v53 = vmul.f32 0.16666667, %v5426_v37  ;;  %v5434_v23 = vmul.f32 %v5410_v50, %v5338_v48  ;;  %v4823_v49 = vpop.f32.mrb[23].mxu0 }
 0x494   : > { %v5451_v22 = vmul.f32 0.16666667, %v5427_v35  ;;  %v5435_v60 = vmul.f32 %v5411_v58, %v5339_v52 }
 0x495   : > { %v5458_v56 = vmul.f32 0.16666667, %v5434_v23  ;;  %v5466_v44 = vpack.c.bf16 %v5450_v53, %v5442_v15 }
 0x496   : > { %v5459_v8 = vmul.f32 0.16666667, %v5435_v60  ;;  %v5467_v32 = vpack.c.bf16 %v5451_v22, %v5443_v4 }
 0x497   : > { %v5474_v16 = vpack.c.bf16 %v5458_v56, %v5458_v56 }
 0x498   : > { %5624 = vmatprep.subr.bf16.mxu0 %v5467_v32  ;;  %v5475_v27 = vpack.c.bf16 %v5459_v8, %v5459_v8 }
 0x499   : > { %5490 = vst [vmem:[#allocation5 + $0x40] sm:$0xf] %v5474_v16  ;;  %5625 = vmatpush1.bf16.msra.mxu0 %v5466_v44 }
 0x49a   : > { %5491 = vst [vmem:[#allocation5 + $0x48] sm:$0xf] %v5475_v27 }
 0x4a0   : > { %v5596_v11 = vld [vmem:[#allocation5 + $0x40] sm:$0xff] }
 0x4a1   : > { %v5597_v19 = vld [vmem:[#allocation5 + $0x48] sm:$0xff] }
 0x4a2   : > { %5626 = vmatprep.subr.bf16.mxu0 %v5597_v19 }
 0x4a3   : > { %5627 = vmatpush1.bf16.msra.mxu0 %v5596_v11 }
 0x4a4   : > { %5628 = vmatprep.subr.bf16.mxu0 %v5542_v63 }
 0x4a7   : > { %5629 = vmatpush1.bf16.msra.mxu0 %v5540_v42 }
 0x4aa   : > { %6432 = vmatmul.mubr.msk.bf16.vlgmr.msra.gmra.mrb[40].mxu0 %vm5620_vm10, %v9582_v20 }
 0x4ab   : > { %5738 = vmatprep.mubr.bf16.mxu0 %v10345_v30 }
 0x4b2   : > { %v5001_v41 = vpop.f32.mrb[24].mxu1 }
 0x4b3   : > { %v4930_v55 = vpop.f32.mrb[24].mxu0  ;;  %v5142_v33 = vadd.f32 %v9556_v46, %v5001_v41  ;;  %v5003_v12 = vpop.f32.mrb[25].mxu1 }
 0x4b4   : > { %v5140_v17 = vadd.f32 %v9556_v46, %v4930_v55  ;;  %v4932_v62 = vpop.f32.mrb[25].mxu0  ;;  %v5143_v3 = vadd.f32 %v9556_v46, %v5003_v12  ;;  %v5005_v14 = vpop.f32.mrb[26].mxu1 }
 0x4b5   : > { %v5141_v36 = vadd.f32 %v9556_v46, %v4932_v62  ;;  %v4934_v28 = vpop.f32.mrb[26].mxu0  ;;  %v5166_v13 = vadd.f32 3.0, %v5142_v33  ;;  %v5150_v30 = vadd.f32 %v9554_v47, %v5005_v14  ;;  %v5007_v38 = vpop.f32.mrb[27].mxu1 }
 0x4b6   : > { %v5164_v54 = vadd.f32 3.0, %v5140_v17  ;;  %v5148_v5 = vadd.f32 %v9554_v47, %v4934_v28  ;;  %v4936_v48 = vpop.f32.mrb[27].mxu0  ;;  %v5167_v61 = vadd.f32 3.0, %v5143_v3  ;;  %v5151_v26 = vadd.f32 %v9554_v47, %v5007_v38 }
 0x4b7   : > { %v5165_v39 = vadd.f32 3.0, %v5141_v36  ;;  %v5149_v52 = vadd.f32 %v9554_v47, %v4936_v48  ;;  %v5190_v7 = vmax.f32 %v5166_v13, 0.0  ;;  %v5174_v46 = vadd.f32 3.0, %v5150_v30 }
 0x4b8   : > { %v5188_v34 = vmax.f32 %v5164_v54, 0.0  ;;  %v5172_v40 = vadd.f32 3.0, %v5148_v5  ;;  %v5191_v21 = vmax.f32 %v5167_v61, 0.0  ;;  %v5175_v29 = vadd.f32 3.0, %v5151_v26 }
 0x4b9   : > { %v5189_v2 = vmax.f32 %v5165_v39, 0.0  ;;  %v5173_v10 = vadd.f32 3.0, %v5149_v52  ;;  %v5214_v57 = vmin.f32 %v5190_v7, 6.0  ;;  %v5198_v43 = vmax.f32 %v5174_v46, 0.0 }
 0x4ba   : > { %v5212_v9 = vmin.f32 %v5188_v34, 6.0  ;;  %v5196_v0 = vmax.f32 %v5172_v40, 0.0  ;;  %v5215_v25 = vmin.f32 %v5191_v21, 6.0  ;;  %v5199_v15 = vmax.f32 %v5175_v29, 0.0  ;;  %v5011_v50 = vpop.f32.mrb[28].mxu1 }
 0x4bb   : > { %v5213_v59 = vmin.f32 %v5189_v2, 6.0  ;;  %v5197_v6 = vmax.f32 %v5173_v10, 0.0  ;;  %v4940_v37 = vpop.f32.mrb[28].mxu0  ;;  %v5238_v47 = vmul.f32 %v5214_v57, %v5142_v33  ;;  %v5222_v4 = vmin.f32 %v5198_v43, 6.0  ;;  %v5013_v58 = vpop.f32.mrb[29].mxu1 }
 0x4bc   : > { %v5236_v18 = vmul.f32 %v5212_v9, %v5140_v17  ;;  %v5220_v42 = vmin.f32 %v5196_v0, 6.0  ;;  %v4942_v35 = vpop.f32.mrb[29].mxu0  ;;  %v5239_v63 = vmul.f32 %v5215_v25, %v5143_v3  ;;  %v5223_v23 = vmin.f32 %v5199_v15, 6.0  ;;  %v5015_v22 = vpop.f32.mrb[30].mxu1 }
 0x4bd   : > { %v5237_v31 = vmul.f32 %v5213_v59, %v5141_v36  ;;  %v5221_v53 = vmin.f32 %v5197_v6, 6.0  ;;  %v4944_v49 = vpop.f32.mrb[30].mxu0  ;;  %v5246_v44 = vmul.f32 %v5222_v4, %v5150_v30  ;;  %v5017_v32 = vpop.f32.mrb[31].mxu1  ;;  %v9611_v16 = vmul.f32 0.16666667, %v5238_v47 }
 0x4be   : > { %v9609_v60 = vmul.f32 0.16666667, %v5236_v18  ;;  %v5244_v56 = vmul.f32 %v5220_v42, %v5148_v5  ;;  %v4946_v8 = vpop.f32.mrb[31].mxu0  ;;  %v9615_v19 = vmul.f32 0.16666667, %v5239_v63  ;;  %v5247_v55 = vmul.f32 %v5223_v23, %v5151_v26 }
 0x4bf   : > { %v9613_v27 = vmul.f32 0.16666667, %v5237_v31  ;;  %v5245_v11 = vmul.f32 %v5221_v53, %v5149_v52  ;;  %v5156_v41 = vadd.f32 %v9562_v24, %v4940_v37  ;;  %v5158_v17 = vadd.f32 %v9562_v24, %v5011_v50 }
 0x4c0   : > { %v9619_v33 = vmul.f32 0.16666667, %v5244_v56  ;;  %v9621_v62 = vmul.f32 0.16666667, %v5246_v44  ;;  %v5157_v12 = vadd.f32 %v9562_v24, %v4942_v35  ;;  %v5159_v36 = vadd.f32 %v9562_v24, %v5013_v58 }
 0x4c1   : > { %v5180_v3 = vadd.f32 3.0, %v5156_v41  ;;  %v5182_v28 = vadd.f32 3.0, %v5158_v17  ;;  %v5326_v14 = vadd.f32 %v9550_v45, %v4944_v49  ;;  %v5328_v54 = vadd.f32 %v9550_v45, %v5015_v22 }
 0x4c2   : > { %v5181_v13 = vadd.f32 3.0, %v5157_v12  ;;  %v5183_v5 = vadd.f32 3.0, %v5159_v36  ;;  %v5327_v30 = vadd.f32 %v9550_v45, %v4946_v8  ;;  %v5329_v48 = vadd.f32 %v9550_v45, %v5017_v32  ;;  %v5021_v39 = vpop.f32.mrb[32].mxu1 }
 0x4c3   : > { %v4950_v38 = vpop.f32.mrb[32].mxu0  ;;  %v5204_v61 = vmax.f32 %v5180_v3, 0.0  ;;  %v5206_v52 = vmax.f32 %v5182_v28, 0.0  ;;  %v5350_v26 = vadd.f32 3.0, %v5326_v14  ;;  %v5352_v34 = vadd.f32 3.0, %v5328_v54  ;;  %v5023_v24 = vpop.f32.mrb[33].mxu1 }
 0x4c4   : > { %v4952_v7 = vpop.f32.mrb[33].mxu0  ;;  %v5205_v40 = vmax.f32 %v5181_v13, 0.0  ;;  %v5207_v46 = vmax.f32 %v5183_v5, 0.0  ;;  %v5351_v2 = vadd.f32 3.0, %v5327_v30  ;;  %v5353_v21 = vadd.f32 3.0, %v5329_v48  ;;  %v5025_v29 = vpop.f32.mrb[34].mxu1 }
 0x4c5   : > { %v4954_v10 = vpop.f32.mrb[34].mxu0  ;;  %v5228_v9 = vmin.f32 %v5204_v61, 6.0  ;;  %v5230_v57 = vmin.f32 %v5206_v52, 6.0  ;;  %v5374_v0 = vmax.f32 %v5350_v26, 0.0  ;;  %v5376_v43 = vmax.f32 %v5352_v34, 0.0  ;;  %v5027_v45 = vpop.f32.mrb[35].mxu1 }
 0x4c6   : > { %v4956_v59 = vpop.f32.mrb[35].mxu0  ;;  %v5229_v25 = vmin.f32 %v5205_v40, 6.0  ;;  %v5231_v6 = vmin.f32 %v5207_v46, 6.0  ;;  %v5375_v15 = vmax.f32 %v5351_v2, 0.0  ;;  %v5377_v37 = vmax.f32 %v5353_v21, 0.0 }
 0x4c7   : > { %v5252_v50 = vmul.f32 %v5228_v9, %v5156_v41  ;;  %v5254_v18 = vmul.f32 %v5230_v57, %v5158_v17  ;;  %v5398_v47 = vmin.f32 %v5374_v0, 6.0  ;;  %v5400_v42 = vmin.f32 %v5376_v43, 6.0 }
 0x4c8   : > { %v5253_v4 = vmul.f32 %v5229_v25, %v5157_v12  ;;  %v5255_v35 = vmul.f32 %v5231_v6, %v5159_v36  ;;  %v5399_v58 = vmin.f32 %v5375_v15, 6.0  ;;  %v5401_v31 = vmin.f32 %v5377_v37, 6.0 }
 0x4c9   : > { %v9629_v63 = vmul.f32 0.16666667, %v5252_v50  ;;  %v9631_v53 = vmul.f32 0.16666667, %v5254_v18  ;;  %v5422_v23 = vmul.f32 %v5398_v47, %v5326_v14  ;;  %v5424_v49 = vmul.f32 %v5400_v42, %v5328_v54 }
 0x4ca   : > { %v5277_v22 = vmul.f32 0.16666667, %v5253_v4  ;;  %v5279_v56 = vmul.f32 0.16666667, %v5255_v35  ;;  %v5423_v44 = vmul.f32 %v5399_v58, %v5327_v30  ;;  %v5425_v8 = vmul.f32 %v5401_v31, %v5329_v48  ;;  %v5031_v32 = vpop.f32.mrb[36].mxu1 }
 0x4cb   : > { %v9633_v3 = vmul.f32 0.16666667, %v5245_v11  ;;  %v9635_v41 = vmul.f32 0.16666667, %v5247_v55  ;;  %v5510_v17 = vpack.c.bf16 %v9629_v63, %v9629_v63  ;;  %v5512_v12 = vpack.c.bf16 %v9631_v53, %v9631_v53  ;;  %5092 = vst [vmem:[#allocation4 + $0x1b0] sm:$0x3] %v5031_v32 }
 0x4cc   : > { %v5033_v36 = vpop.f32.mrb[37].mxu1  ;;  %v5511_v28 = vpack.c.bf16 %v5277_v22, %v5277_v22  ;;  %v5513_v14 = vpack.c.bf16 %v5279_v56, %v5279_v56  ;;  %v9641_v54 = vmul.f32 0.16666667, %v5422_v23  ;;  %v9643_v13 = vmul.f32 0.16666667, %v5424_v49 }
 0x4cd   : > { %5093 = vst [vmem:[#allocation4 + $0x1b8] sm:$0x3] %v5033_v36  ;;  %v5035_v5 = vpop.f32.mrb[38].mxu1  ;;  %v9645_v11 = vmul.f32 0.16666667, %v5423_v44  ;;  %v5334_v30 = vadd.f32 %v9552_v1, %v4950_v38  ;;  %v5336_v48 = vadd.f32 %v9552_v1, %v5021_v39  ;;  %v5335_v34 = vadd.f32 %v9552_v1, %v4952_v7 }
 0x4ce   : > { %v9647_v55 = vmul.f32 0.16666667, %v5425_v8  ;;  %v5036_v61 = vpop.f32.mrb[39].mxu1  ;;  %v9651_v52 = vrot.slane %v5511_v28, 4  ;;  %v9653_v26 = vrot.slane %v5513_v14, 4  ;;  %v5337_v40 = vadd.f32 %v9552_v1, %v5023_v24 }
 0x4cf   : > { %v5358_v46 = vadd.f32 3.0, %v5334_v30  ;;  %v5360_v2 = vadd.f32 3.0, %v5336_v48  ;;  %v5342_v21 = vadd.f32 %v9568_v51, %v4954_v10  ;;  %v5344_v9 = vadd.f32 %v9568_v51, %v5025_v29 }
 0x4d0   : > { %v5359_v57 = vadd.f32 3.0, %v5335_v34  ;;  %v5361_v0 = vadd.f32 3.0, %v5337_v40  ;;  %v5343_v38 = vadd.f32 %v9568_v51, %v4956_v59  ;;  %v5345_v39 = vadd.f32 %v9568_v51, %v5027_v45 }
 0x4d1   : > { %v5382_v43 = vmax.f32 %v5358_v46, 0.0  ;;  %v5384_v25 = vmax.f32 %v5360_v2, 0.0  ;;  %v5366_v6 = vadd.f32 3.0, %v5342_v21  ;;  %v5368_v15 = vadd.f32 3.0, %v5344_v9 }
 0x4d2   : > { %v5383_v37 = vmax.f32 %v5359_v57, 0.0  ;;  %v5385_v7 = vmax.f32 %v5361_v0, 0.0  ;;  %v5367_v50 = vadd.f32 3.0, %v5343_v38  ;;  %v5369_v1 = vadd.f32 3.0, %v5345_v39  ;;  %v4960_v0 = vpop.f32.mrb[36].mxu0 }
 0x4d3   : > { %v5406_v24 = vmin.f32 %v5382_v43, 6.0  ;;  %v5408_v18 = vmin.f32 %v5384_v25, 6.0  ;;  %v5390_v47 = vmax.f32 %v5366_v6, 0.0  ;;  %v5392_v10 = vmax.f32 %v5368_v15, 0.0  ;;  %5090 = vst [vmem:[#allocation4 + $0x1a0] sm:$0x3] %v4960_v0 }
 0x4d4   : > { %v5407_v42 = vmin.f32 %v5383_v37, 6.0  ;;  %v5409_v29 = vmin.f32 %v5385_v7, 6.0  ;;  %v5391_v4 = vmax.f32 %v5367_v50, 0.0  ;;  %v5393_v35 = vmax.f32 %v5369_v1, 0.0  ;;  %v5615_v50 = vld [vmem:[#allocation4 + $0x198] sm:$0x3] }
 0x4d5   : > { %v5430_v58 = vmul.f32 %v5406_v24, %v5334_v30  ;;  %v5432_v59 = vmul.f32 %v5408_v18, %v5336_v48  ;;  %v5414_v31 = vmin.f32 %v5390_v47, 6.0  ;;  %v5416_v51 = vmin.f32 %v5392_v10, 6.0  ;;  %v5792_v24 = vpop.permute.xlu1 %5791 }
 0x4d6   : > { %v5431_v45 = vmul.f32 %v5407_v42, %v5335_v34  ;;  %v5433_v23 = vmul.f32 %v5409_v29, %v5337_v40  ;;  %v5415_v49 = vmin.f32 %v5391_v4, 6.0  ;;  %v5417_v22 = vmin.f32 %v5393_v35, 6.0 }
 0x4d7   : > { %v5454_v56 = vmul.f32 0.16666667, %v5430_v58  ;;  %v5456_v44 = vmul.f32 0.16666667, %v5432_v59  ;;  %v5438_v8 = vmul.f32 %v5414_v31, %v5342_v21  ;;  %v5440_v32 = vmul.f32 %v5416_v51, %v5344_v9  ;;  %v5612_v31 = vld [vmem:[#allocation4 + $0x180] sm:$0x3] }
 0x4d8   : > { %v5455_v36 = vmul.f32 0.16666667, %v5431_v45  ;;  %v5457_v28 = vmul.f32 0.16666667, %v5433_v23  ;;  %v5439_v14 = vmul.f32 %v5415_v49, %v5343_v38  ;;  %v5441_v5 = vmul.f32 %v5417_v22, %v5345_v39  ;;  %v4962_v39 = vpop.f32.mrb[37].mxu0 }
 0x4d9   : > { %v5462_v61 = vmul.f32 0.16666667, %v5438_v8  ;;  %v5464_v46 = vmul.f32 0.16666667, %v5440_v32  ;;  %v5470_v2 = vpack.c.bf16 %v5454_v56, %v9641_v54  ;;  %v5472_v30 = vpack.c.bf16 %v5456_v44, %v9643_v13  ;;  %5091 = vst [vmem:[#allocation4 + $0x1a8] sm:$0x3] %v4962_v39 }
 0x4da   : > { %v5463_v48 = vmul.f32 0.16666667, %v5439_v14  ;;  %v5465_v57 = vmul.f32 0.16666667, %v5441_v5  ;;  %v5471_v34 = vpack.c.bf16 %v5455_v36, %v9645_v11  ;;  %v5473_v40 = vpack.c.bf16 %v5457_v28, %v9647_v55  ;;  %v4964_v25 = vpop.f32.mrb[38].mxu0  ;;  %v10346_v8 = vld [vmem:[#allocation79_spill] sm:$0xff] }
 0x4db   : > { %v5478_v43 = vpack.c.bf16 %v5462_v61, %v5462_v61  ;;  %v5480_v21 = vpack.c.bf16 %v5464_v46, %v5464_v46  ;;  %v5503_v9 = vpack.c.bf16 %v9633_v3, %v9613_v27  ;;  %v5505_v38 = vpack.c.bf16 %v9635_v41, %v9615_v19  ;;  %v4965_v41 = vpop.f32.mrb[39].mxu0  ;;  %v5616_v46 = vld [vmem:[#allocation4 + $0x1a0] sm:$0x3] }
 0x4dc   : > { %v5547_v54 = vrot.slane %v5510_v17, 4  ;;  %5706 = vmatprep.subr.bf16.mxu0 %v5471_v34  ;;  %5747 = vmatprep.subr.bf16.mxu1 %v5473_v40  ;;  %v5479_v13 = vpack.c.bf16 %v5463_v48, %v5463_v48  ;;  %v5481_v11 = vpack.c.bf16 %v5465_v57, %v5465_v57  ;;  %v5502_v55 = vpack.c.bf16 %v9619_v33, %v9609_v60  ;;  %v5618_v48 = vld [vmem:[#allocation4 + $0x1b0] sm:$0x3] }
 0x4dd   : > { %v5551_v27 = vrot.slane %v5512_v12, 4  ;;  %5494 = vst [vmem:[#allocation5 + $0x60] sm:$0xf] %v5478_v43  ;;  %5496 = vst [vmem:[#allocation5 + $0x70] sm:$0xf] %v5480_v21  ;;  %5707 = vmatpush1.bf16.msra.mxu0 %v5470_v2  ;;  %5748 = vmatpush1.bf16.msra.mxu1 %v5472_v30  ;;  %v5536_v19 = vrot.slane %v5503_v9, 4  ;;  %v5504_v3 = vpack.c.bf16 %v9621_v62, %v9611_v16 }
 0x4de   : > { %v5538_v63 = vrot.slane %v5505_v38, 4  ;;  %5495 = vst [vmem:[#allocation5 + $0x68] sm:$0xf] %v5479_v13  ;;  %5497 = vst [vmem:[#allocation5 + $0x78] sm:$0xf] %v5481_v11  ;;  %v5535_v17 = vrot.slane %v5502_v55, 4 }
 0x4df   : > { %5576 = vst [vmem:[#allocation5 + $0x68] sm:$0xf0] %v5536_v19  ;;  %v5537_v60 = vrot.slane %v5504_v3, 4  ;;  %v5550_v33 = vsel %vm1975_vm0, %v5536_v19, %v9651_v52  ;;  %v5614_v52 = vld [vmem:[#allocation4 + $0x190] sm:$0x3] }
 0x4e0   : > { %5578 = vst [vmem:[#allocation5 + $0x78] sm:$0xf0] %v5538_v63  ;;  %v5554_v53 = vsel %vm1975_vm0, %v5538_v63, %v9653_v26  ;;  %5575 = vst [vmem:[#allocation5 + $0x60] sm:$0xf0] %v5535_v17  ;;  %v5548_v12 = vsel %vm1975_vm0, %v5535_v17, %v5547_v54  ;;  %v7029_v35 = vmov 1983009808  }
 0x4e1   : > { %5577 = vst [vmem:[#allocation5 + $0x70] sm:$0xf0] %v5537_v60  ;;  %v5552_v6 = vsel %vm1975_vm0, %v5537_v60, %v5551_v27  ;;  %v5813_v58 = vunpack.c.l.s4 %v7029_v35  ;;  %v5617_v34 = vld [vmem:[#allocation4 + $0x1a8] sm:$0x3]  ;;  %v5619_v21 = vld [vmem:[#allocation4 + $0x1b8] sm:$0x3] }
 0x4e3   : > { %v5814_v59 = vunpack.c.0.s8 %v5813_v58 }
 0x4e5   : > { %v5817_v32 = vsub.s32 %v5814_v59, %v10346_v8 }
 0x4e6   : > { %v5601_v16 = vld [vmem:[#allocation5 + $0x68] sm:$0xff] }
 0x4e7   : > { %v5603_v62 = vld [vmem:[#allocation5 + $0x78] sm:$0xff]  ;;  %5708 = vmatprep.subr.bf16.mxu0 %v5601_v16  ;;  %v5600_v15 = vld [vmem:[#allocation5 + $0x60] sm:$0xff] }
 0x4e8   : > { %5749 = vmatprep.subr.bf16.mxu1 %v5603_v62  ;;  %5709 = vmatpush1.bf16.msra.mxu0 %v5600_v15  ;;  %v5602_v37 = vld [vmem:[#allocation5 + $0x70] sm:$0xff] }
 0x4e9   : > { %5750 = vmatpush1.bf16.msra.mxu1 %v5602_v37  ;;  %5710 = vmatprep.subr.bf16.mxu0 %v5550_v33 }
 0x4ea   : > { %5751 = vmatprep.subr.bf16.mxu1 %v5554_v53 }
 0x4ec   : > { %5711 = vmatpush1.bf16.msra.mxu0 %v5548_v12 }
 0x4ed   : > { %5752 = vmatpush1.bf16.msra.mxu1 %v5552_v6 }
 0x4ef   : > { %6434 = vmatmul.mubr.msk.bf16.vlgmr.msra.gmra.mrb[44].mxu0 %vm5620_vm10, %v9582_v20 }
 0x4f0   : > { %6435 = vmatmul.mubr.msk.bf16.vlgmr.msra.gmra.mrb[44].mxu1 %vm5620_vm10, %v9582_v20  ;;  %v5613_v20 = vld [vmem:[#allocation4 + $0x188] sm:$0x3] }
 0x550   : > { %v5699_v26 = vpop.f32.mrb[40].mxu1 }
 0x551   : > { %v5700_v7 = vadd.f32 %v5699_v26, %v5614_v52  ;;  %v5701_v1 = vpop.f32.mrb[41].mxu1 }
 0x552   : > { %v5702_v18 = vadd.f32 %v5701_v1, %v5615_v50  ;;  %v5703_v47 = vpop.f32.mrb[42].mxu1 }
 0x553   : > { %v5796_v10 = vadd.f32 %v5792_v24, %v5700_v7  ;;  %v5704_v42 = vpop.f32.mrb[43].mxu1 }
 0x554   : > { %v5797_v29 = vadd.f32 %v5792_v24, %v5702_v18 }
 0x556   : > { %v5811_v4 = vcombine.low %v5796_v10, %v5797_v29 }
 0x558   : > { %v5825_v14 = vrot.slane %v5811_v4, %v5817_v32 }
 0x57d   : > { %v5658_v51 = vpop.f32.mrb[40].mxu0 }
 0x57e   : > { %v5659_v45 = vadd.f32 %v5658_v51, %v5612_v31  ;;  %v5660_v23 = vpop.f32.mrb[41].mxu0 }
 0x57f   : > { %v5661_v49 = vadd.f32 %v5660_v23, %v5613_v20  ;;  %v5662_v22 = vpop.f32.mrb[42].mxu0 }
 0x580   : > { %v5794_v56 = vadd.f32 %v5792_v24, %v5659_v45  ;;  %v5663_v44 = vpop.f32.mrb[43].mxu0 }
 0x581   : > { %v5795_v36 = vadd.f32 %v5792_v24, %v5661_v49 }
 0x583   : > { %v5810_v28 = vcombine.low %v5794_v56, %v5795_v36 }
 0x585   : > { %v5818_v5 = vrot.slane %v5810_v28, %v5817_v32 }
 0x587   : > { %v5826_v61 = vcombine.low %v5818_v5, %v5825_v14 }
 0x589   : > { %5846 = vst [vmem:[%s9691_s20] sm:$0xff] %v5826_v61 }
 0x5c2   : > { %v5740_v2 = vpop.f32.mrb[44].mxu0 }
 0x5c3   : > { %v5741_v30 = vadd.f32 %v5740_v2, %v5616_v46  ;;  %v5781_v57 = vpop.f32.mrb[44].mxu1  ;;  %v5742_v40 = vpop.f32.mrb[45].mxu0 }
 0x5c4   : > { %v5782_v0 = vadd.f32 %v5781_v57, %v5618_v48  ;;  %v5743_v43 = vadd.f32 %v5742_v40, %v5617_v34  ;;  %v5783_v9 = vpop.f32.mrb[45].mxu1  ;;  %v5744_v38 = vpop.f32.mrb[46].mxu0 }
 0x5c5   : > { %v5798_v39 = vadd.f32 %v5792_v24, %v5741_v30  ;;  %v5784_v54 = vadd.f32 %v5783_v9, %v5619_v21  ;;  %v5785_v13 = vpop.f32.mrb[46].mxu1  ;;  %v5745_v11 = vpop.f32.mrb[47].mxu0 }
 0x5c6   : > { %v5800_v55 = vadd.f32 %v5792_v24, %v5782_v0  ;;  %v5799_v25 = vadd.f32 %v5792_v24, %v5743_v43  ;;  %v5786_v27 = vpop.f32.mrb[47].mxu1 }
 0x5c7   : > { %v5801_v19 = vadd.f32 %v5792_v24, %v5784_v54 }
 0x5c8   : > { %v5827_v63 = vcombine.low %v5798_v39, %v5799_v25 }
 0x5c9   : > { %v5828_v3 = vcombine.low %v5800_v55, %v5801_v19 }
 0x5ca   : > { %v5835_v41 = vrot.slane %v5827_v63, %v5817_v32 }
 0x5cb   : > { %v5842_v17 = vrot.slane %v5828_v3, %v5817_v32 }
 0x5cd   : > { %v5843_v60 = vcombine.low %v5835_v41, %v5842_v17 }
 0x5cf   : > { %5847 = vst [vmem:[%s9691_s20 + $0x8] sm:$0xff] %v5843_v60 }
 0x5d0   : > { %6942 = shalt.err (!%p6939_p5)
}
 0x5d1   : > { %s6943_s2 = scalar_lea.hbm %s9699_s23, 256  ;;  %s6947_s22 = scalar_lea.hbm %s9753_s9, 512 }
 0x5d2   : > { %p6944_p9 = scmp.ne.s32.totalorder %s9699_s23, %s6943_s2  ;;  %p6948_p11 = scmp.lt.u32.totalorder %s9699_s23, %s9753_s9 }
 0x5d3   : > { %p6949_p1 = scmp.lt.u32.totalorder %s6947_s22, %s6943_s2  ;;  %p6951_p2 = scmp.lt.u32.totalorder %s6943_s2, %s9699_s23 }
 0x5d4   : > { %p6945_p0 = pnand %p6944_p9, %p10347_p13 }
 0x5d5   : > { %p6950_p12 = por %p6949_p1, %p6948_p11 }
 0x5d6   : > { %p6946_p8 = pneg %p6945_p0 }
 0x5d7   : > { %p6952_p6 = por %p6951_p2, %p6950_p12 }
 0x5d9   : > { %p6953_p10 = pnand %p6952_p6, %p6946_p8 }
 0x5db   : > { %6956 = shalt.err (!%p6953_p10)
}
 0x5dc   : > { %6694 = dma.vmem_to_hbm [thread:$0]  (%p10347_p13), %s9701_s21, 256, %s9699_s23, %s5849_s18  }
 0x5dd PF: > { %s10348_s3 = sld [smem:[#allocation20_spill]]  ;;  %s5875_s20 = sand.u32 1, %s6995_s30  }
 0x5de   : > { %p10350_p7 = scmp.ge.s32.totalorder %s7007_s12, 2  ;;  %s5876_s16 = scalar_lea.sflag [#allocation8], %s5875_s20 }
 0x5e3   : > { %p10349_p4 = scmp.ne.s32.totalorder %s10348_s3, 0 }
 0x5e5   : > { %p6711_p3 = pnand %p10350_p7, %p10349_p4 }
 0x5e7   : > { %6990 = dma.done.wait (!%p6711_p3), %s5876_s16, 256  }
 0x5e8   : > { %6992 = vsyncadd (!%p6711_p3), %s5876_s16, 4294967040  ;;  %s10351_s0 = sld [smem:[#allocation21_spill]]  ;;  %p26_p5 = scmp.ge.s32.totalorder %s7191_s24, 4  }
 0x5e9   : > { %s10352_s30 = smov %s6999_s10  ;;  %s10353_s10 = smov %s7003_s11 }
 0x5ea   : > { %s10355_s12 = smov %s7191_s24  ;;  %28 = sbr.rel (!%p26_p5) target bundleno = 12 (0xc), region = 129 }
 0x5ee   : > { %s10354_s11 = smov %s10351_s0 }
 0x5f1   :  { %5881 = vsyncpa [#allocation7], 1 }
 0x5f2   :  { %5883 = vsyncpa [#allocation7 + $0x1], 1 }
 0x5f3   :  { %5884 = vsyncpa [#allocation10], 1 }
 0x5f4   :  { %5886 = vsyncpa [#allocation10 + $0x1], 1 }
 0x5f5   :  { %5887 = vsyncpa [#allocation13], 1 }
 0x5f6   :  { %5888 = vsyncpa [#allocation8], 1 }
 0x5f7   :  { %5890 = vsyncpa [#allocation8 + $0x1], 1 }

</bundles_post_ra>
